<compile_context>
chip_gen: v7x
topology: tpu7x:2x2x1
jax: 0.10.0
libtpu: 0.0.40
codegen_flags: <defaults>
</compile_context>

<pallas_src>
import functools

import jax
import jax.numpy as jnp
from jax.experimental import pallas as pl
from jax.experimental.pallas import tpu as pltpu

NEG_SLOPE = 0.2
BN_EPS = 1e-5


def _lrelu(v):
    # max(v, 0.2*v) == LeakyReLU(0.2) and is one VPU op cheaper than where().
    return jnp.maximum(v, NEG_SLOPE * v)


# --------------------------------------------------------------------------
# Fused Pallas kernel: per grid step, S batch elements -> pooled feat (S,2048)
# --------------------------------------------------------------------------
def _fused_gcn_kernel(adj_ref, xw0_ref,
                      t0_ref,
                      w1_ref, t1_ref,
                      w2_ref, t2_ref,
                      w3_ref, t3_ref,
                      w4a_ref, w4b_ref, w4c_ref, w4d_ref, t4_ref,
                      o_ref):
    f32, bf16 = jnp.float32, jnp.bfloat16
    S, N, _ = adj_ref.shape

    # Per-element adjacency tiles (already bf16 from the wrapper).
    adjs = [adj_ref[s] for s in range(S)]                      # each (N, N)

    def a_matmul(h_f32):
        """Per-batch-element A @ H on a row-stacked (S*N, C) activation."""
        h_bf = h_f32.astype(bf16)
        outs = [jnp.dot(adjs[s], h_bf[s * N:(s + 1) * N, :],
                        preferred_element_type=f32) for s in range(S)]
        return outs[0] if S == 1 else jnp.concatenate(outs, axis=0)

    def w_matmul(p_f32, w_ref):
        return jnp.dot(p_f32.astype(bf16), w_ref[...], preferred_element_type=f32)

    # ---- layer 0: BN0 scale folded into W0 in the wrapper (xw0 = x @ (W0*s0))
    ah0 = [jnp.dot(adjs[s], xw0_ref[s], preferred_element_type=f32)
           for s in range(S)]
    ah0 = ah0[0] if S == 1 else jnp.concatenate(ah0, axis=0)   # (S*N, 64) f32
    x0 = _lrelu(ah0 + t0_ref[...])

    # ---- layers 1-3: y = (A @ x) @ (W*s) + t ; keep A-products p_l for layer 4
    p1 = a_matmul(x0)                                          # (S*N, 64)
    x1 = _lrelu(w_matmul(p1, w1_ref) + t1_ref[...])            # (S*N, 64)
    p2 = a_matmul(x1)                                          # (S*N, 64)
    x2 = _lrelu(w_matmul(p2, w2_ref) + t2_ref[...])            # (S*N, 128)
    p3 = a_matmul(x2)                                          # (S*N, 128)
    x3 = _lrelu(w_matmul(p3, w3_ref) + t3_ref[...])            # (S*N, 256)

    # ---- layer 4: A @ concat(x0..x3) == concat(p1, p2, p3, A@x3).  Avoid the
    # lane-unaligned concat by accumulating the four row-blocks of W4 directly.
    p4 = a_matmul(x3)                                          # (S*N, 256)
    y4 = w_matmul(p1, w4a_ref)
    y4 = y4 + w_matmul(p2, w4b_ref)
    y4 = y4 + w_matmul(p3, w4c_ref)
    y4 = y4 + w_matmul(p4, w4d_ref)
    x4 = _lrelu(y4 + t4_ref[...])                              # (S*N, 1024) f32

    # ---- GlobalPooling: mean via ones-row matmul on the MXU (slack there in
    # the epilogue), max via the VPU sublane reduction.
    inv_n = jnp.float32(1.0 / N)
    ones_row = jnp.ones((1, N), f32)
    for s in range(S):
        xs = x4[s * N:(s + 1) * N, :]
        mx = jnp.max(xs, axis=0, keepdims=True)                          # (1,1024)
        mn = jnp.dot(ones_row, xs, preferred_element_type=f32) * inv_n   # (1,1024)
        o_ref[s] = jnp.concatenate([mx, mn], axis=-1)                    # (1,2048)


def _rep_spec(shape):
    """Replicated (grid-constant) full-array block — fetched once into VMEM."""
    return pl.BlockSpec(shape, lambda b: (0,) * len(shape))


def _default_stack(batch):
    """Batch elements per grid step.  2-stacking fills the 256-row MXU on
    v6e/v7x; v5e's 128-row MXU is already full at M=128; on v7x keep >=2 grid
    steps so both TensorCores stay busy."""
    try:
        kind = jax.devices()[0].device_kind.lower()
    except Exception:  # pragma: no cover - defensive
        return 1
    if batch % 2 != 0:
        return 1
    if "v6" in kind:
        return 2
    if ("v7" in kind or "tpu7" in kind) and batch >= 4:
        return 2
    return 1


def _classifier(folded, feat):
    """fc0 -> LeakyReLU -> bn0 -> (drop: eval id) -> fc1 -> LeakyReLU -> bn1
    -> (drop: eval id) -> fc2(+b).  Runs in plain XLA, batched over B."""
    bf16, f32 = jnp.bfloat16, jnp.float32
    s0, t0 = folded["cbn0"]
    s1, t1 = folded["cbn1"]
    h = jnp.dot(feat.astype(bf16), folded["w_fc0"], preferred_element_type=f32)
    h = _lrelu(h) * s0 + t0
    h = jnp.dot(h.astype(bf16), folded["w_fc1"], preferred_element_type=f32)
    h = _lrelu(h) * s1 + t1
    return (jnp.dot(h.astype(bf16), folded["w_fc2"], preferred_element_type=f32)
            + folded["b_fc2"])


def multilayer_gcn_forward(folded, adj, x_cn, stack=None):
    """adj:(B,N,N) f32, x_cn:(B,3,N) f32 (PyTorch channels-first) -> (B,classes)."""
    B, N, _ = adj.shape
    if stack is None:
        stack = _default_stack(B)
    if B % stack != 0:
        stack = 1
    S = int(stack)

    bf16, f32 = jnp.bfloat16, jnp.float32
    adj_b = adj.astype(bf16)                               # halves per-step DMA
    x = jnp.transpose(x_cn, (0, 2, 1)).astype(bf16)        # (B, N, 3)
    # Layer-0 channel matmul hoisted out of the kernel (K=3 operands are
    # <2% MXU-efficient and force 3->128 lane padding in VMEM).
    xw0 = jnp.einsum("bnc,co->bno", x, folded["w0f"],
                     preferred_element_type=f32).astype(bf16)   # (B, N, 64)

    args = [adj_b, xw0,
            folded["t0"],
            folded["w1f"], folded["t1"],
            folded["w2f"], folded["t2"],
            folded["w3f"], folded["t3"],
            folded["w4a"], folded["w4b"], folded["w4c"], folded["w4d"],
            folded["t4"]]

    in_specs = [pl.BlockSpec((S, N, N), lambda b: (b, 0, 0)),
                pl.BlockSpec((S, N, xw0.shape[-1]), lambda b: (b, 0, 0))]
    in_specs += [_rep_spec(a.shape) for a in args[2:]]

    feat_dim = 2 * folded["t4"].shape[-1]                  # 2048
    pooled = pl.pallas_call(
        _fused_gcn_kernel,
        out_shape=jax.ShapeDtypeStruct((B, 1, feat_dim), jnp.float32),
        grid=(B // S,),
        in_specs=in_specs,
        out_specs=pl.BlockSpec((S, 1, feat_dim), lambda b: (b, 0, 0)),
        compiler_params=pltpu.CompilerParams(
            dimension_semantics=("parallel",),             # megacore sharding
            vmem_limit_bytes=32 * 1024 * 1024),
    )(*args)

    feat = pooled.reshape(B, feat_dim)
    return _classifier(folded, feat)


# --------------------------------------------------------------------------
# Pure-JAX references
#   1) numerics-matched: same folded bf16 weights / casts / matmul structure
#   2) f32 high-precision with raw (unfolded) params: sanity bound on drift
# --------------------------------------------------------------------------
def ref_forward_matched(folded, adj, x_cn):
    bf16, f32 = jnp.bfloat16, jnp.float32
    adj_b = adj.astype(bf16)
    x = jnp.transpose(x_cn, (0, 2, 1)).astype(bf16)
    xw0 = jnp.einsum("bnc,co->bno", x, folded["w0f"],
                     preferred_element_type=f32).astype(bf16)

    def amm(h):
        return jnp.einsum("bnm,bmc->bnc", adj_b, h.astype(bf16),
                          preferred_element_type=f32)

    def wmm(p, w):
        return jnp.einsum("bnc,co->bno", p.astype(bf16), w,
                          preferred_element_type=f32)

    x0 = _lrelu(jnp.einsum("bnm,bmc->bnc", adj_b, xw0,
                           preferred_element_type=f32) + folded["t0"])
    p1 = amm(x0); x1 = _lrelu(wmm(p1, folded["w1f"]) + folded["t1"])
    p2 = amm(x1); x2 = _lrelu(wmm(p2, folded["w2f"]) + folded["t2"])
    p3 = amm(x2); x3 = _lrelu(wmm(p3, folded["w3f"]) + folded["t3"])
    p4 = amm(x3)
    y4 = (wmm(p1, folded["w4a"]) + wmm(p2, folded["w4b"])
          + wmm(p3, folded["w4c"]) + wmm(p4, folded["w4d"]))
    x4 = _lrelu(y4 + folded["t4"])
    feat = jnp.concatenate([jnp.max(x4, axis=1), jnp.mean(x4, axis=1)], axis=-1)
    return _classifier(folded, feat)


def ref_forward_f32(params, adj, x_cn):
    hp = functools.partial(jnp.einsum, precision="highest")
    f32 = jnp.float32

    def gcn(a, h, w, sc, sh):
        y = hp("bnm,bmo->bno", a, hp("bnc,co->bno", h, w))
        return _lrelu(y * sc + sh)

    x = jnp.transpose(x_cn, (0, 2, 1)).astype(f32)
    x0 = gcn(adj, x,  params["w0"], *params["bn0"])
    x1 = gcn(adj, x0, params["w1"], *params["bn1"])
    x2 = gcn(adj, x1, params["w2"], *params["bn2"])
    x3 = gcn(adj, x2, params["w3"], *params["bn3"])
    xc = jnp.concatenate([x0, x1, x2, x3], axis=-1)
    x4 = gcn(adj, xc, params["w4"], *params["bn4"])
    feat = jnp.concatenate([jnp.max(x4, axis=1), jnp.mean(x4, axis=1)], axis=-1)

    s0, t0 = params["cbn0"]
    s1, t1 = params["cbn1"]
    h = _lrelu(hp("bi,io->bo", feat, params["w_fc0"])) * s0 + t0
    h = _lrelu(hp("bi,io->bo", h, params["w_fc1"])) * s1 + t1
    return hp("bi,io->bo", h, params["w_fc2"]) + params["b_fc2"]


# --------------------------------------------------------------------------
# Deterministic parameter construction + deployment-time folding
# --------------------------------------------------------------------------
def make_bn(key, c):
    k1, k2, k3, k4 = jax.random.split(key, 4)
    gamma = 1.0 + 0.1 * jax.random.normal(k1, (c,), jnp.float32)
    beta = 0.1 * jax.random.normal(k2, (c,), jnp.float32)
    mean = 0.1 * jax.random.normal(k3, (c,), jnp.float32)
    var = jax.random.uniform(k4, (c,), jnp.float32, 0.5, 1.5)
    scale = gamma / jnp.sqrt(var + BN_EPS)
    shift = beta - mean * scale
    return scale.reshape(1, c), shift.reshape(1, c)


def make_linear(key, cin, cout):
    return jax.random.normal(key, (cin, cout), jnp.float32) * jnp.sqrt(2.0 / cin)


def make_params(key, num_classes=40):
    keys = jax.random.split(key, 16)
    p = {}
    gcn_dims = [(3, 64), (64, 64), (64, 128), (128, 256), (512, 1024)]
    for i, (ci, co) in enumerate(gcn_dims):
        p[f"w{i}"] = make_linear(keys[i], ci, co)
        p[f"bn{i}"] = make_bn(keys[5 + i], co)
    p["w_fc0"] = make_linear(keys[10], 2048, 512)   # Linear weights as (in, out)
    p["w_fc1"] = make_linear(keys[11], 512, 256)
    p["w_fc2"] = make_linear(keys[12], 256, num_classes)
    p["b_fc2"] = 0.01 * jax.random.normal(keys[13], (1, num_classes), jnp.float32)
    p["cbn0"] = make_bn(keys[14], 512)
    p["cbn1"] = make_bn(keys[15], 256)
    return p


def fold_params(params):
    """Fold eval-mode BN scales into bf16 GCN weights; split W4 by row blocks."""
    bf16 = jnp.bfloat16
    f = {}
    for i in range(5):
        s, t = params[f"bn{i}"]
        f[f"t{i}"] = t
        wf = (params[f"w{i}"] * s).astype(bf16)     # per-output-channel scale
        if i == 4:
            f["w4a"], f["w4b"], f["w4c"], f["w4d"] = (
                wf[0:64], wf[64:128], wf[128:256], wf[256:512])
        else:
            f[f"w{i}f"] = wf
    f["w_fc0"] = params["w_fc0"].astype(bf16)
    f["w_fc1"] = params["w_fc1"].astype(bf16)
    f["w_fc2"] = params["w_fc2"].astype(bf16)
    f["b_fc2"] = params["b_fc2"]
    f["cbn0"] = params["cbn0"]
    f["cbn1"] = params["cbn1"]
    return f


# --------------------------------------------------------------------------
if __name__ == "__main__":
    B, N, C_IN, NUM_CLASSES = 2, 128, 3, 40

    root = jax.random.PRNGKey(0)
    k_params, k_x, k_adj = jax.random.split(root, 3)

    params = make_params(k_params, NUM_CLASSES)
    folded = fold_params(params)

    # PyTorch-style inputs: point cloud (B, 3, N), adjacency (B, N, N)
    x = jax.random.normal(k_x, (B, C_IN, N), jnp.float32)
    a = jax.random.uniform(k_adj, (B, N, N), jnp.float32)
    a = a + jnp.transpose(a, (0, 2, 1)) + 2.0 * jnp.eye(N, dtype=jnp.float32)[None]
    adj = a / jnp.sum(a, axis=-1, keepdims=True)     # row-normalized symmetric-ish

    fwd = jax.jit(multilayer_gcn_forward, static_argnames=("stack",))
    out = jax.block_until_ready(fwd(folded, adj, x))           # auto stack choice
    assert out.shape == (B, NUM_CLASSES) and out.dtype == jnp.float32

    # 1) exact-wiring check against a numerics-matched JAX reference
    ref_m = jax.block_until_ready(jax.jit(ref_forward_matched)(folded, adj, x))
    assert bool(jnp.allclose(out, ref_m, rtol=5e-3, atol=5e-3)), (
        f"matched-ref max abs diff {float(jnp.max(jnp.abs(out - ref_m)))}")

    # 2) loose sanity bound on bf16 / BN-fold drift vs a full-f32 reference
    ref_f = jax.block_until_ready(jax.jit(ref_forward_f32)(params, adj, x))
    assert bool(jnp.allclose(out, ref_f, rtol=1.5e-1, atol=1.5e-1)), (
        f"f32-ref max abs diff {float(jnp.max(jnp.abs(out - ref_f)))}")

    # 3) exercise both grid layouts (per-element and 2-stacked) explicitly
    if B % 2 == 0:
        out_s1 = jax.block_until_ready(fwd(folded, adj, x, stack=1))
        out_s2 = jax.block_until_ready(fwd(folded, adj, x, stack=2))
        assert bool(jnp.allclose(out_s1, out_s2, rtol=2e-3, atol=2e-3)), (
            f"stacked/unstacked diff {float(jnp.max(jnp.abs(out_s1 - out_s2)))}")

    print("KERNEL_OK")
</pallas_src>

<mosaic_0001>
module attributes {stable_mosaic.version = 11 : i64} {
  func.func @_fused_gcn_kernel(%arg0: i32, %arg1: memref<1x128x128xbf16, #tpu.memory_space<vmem>>, %arg2: memref<1x128x64xbf16, #tpu.memory_space<vmem>>, %arg3: memref<1x64xf32, #tpu.memory_space<vmem>>, %arg4: memref<64x64xbf16, #tpu.memory_space<vmem>>, %arg5: memref<1x64xf32, #tpu.memory_space<vmem>>, %arg6: memref<64x128xbf16, #tpu.memory_space<vmem>>, %arg7: memref<1x128xf32, #tpu.memory_space<vmem>>, %arg8: memref<128x256xbf16, #tpu.memory_space<vmem>>, %arg9: memref<1x256xf32, #tpu.memory_space<vmem>>, %arg10: memref<64x1024xbf16, #tpu.memory_space<vmem>>, %arg11: memref<64x1024xbf16, #tpu.memory_space<vmem>>, %arg12: memref<128x1024xbf16, #tpu.memory_space<vmem>>, %arg13: memref<256x1024xbf16, #tpu.memory_space<vmem>>, %arg14: memref<1x1024xf32, #tpu.memory_space<vmem>>, %arg15: memref<1x1x2048xf32, #tpu.memory_space<vmem>>) attributes {dimension_semantics = [#tpu.dimension_semantics<parallel>], iteration_bounds = array<i64: 2>, scalar_prefetch = 0 : i64, scratch_operands = 0 : i64, tpu.core_type = #tpu.core_type<tc>, window_params = [{transform_indices = @transform_0, window_bounds = array<i64: 1, 128, 128>}, {transform_indices = @transform_1, window_bounds = array<i64: 1, 128, 64>}, {pipeline_mode = #tpu.pipeline_mode<synchronous>, transform_indices = @transform_2, window_bounds = array<i64: 1, 64>}, {pipeline_mode = #tpu.pipeline_mode<synchronous>, transform_indices = @transform_3, window_bounds = array<i64: 64, 64>}, {pipeline_mode = #tpu.pipeline_mode<synchronous>, transform_indices = @transform_4, window_bounds = array<i64: 1, 64>}, {pipeline_mode = #tpu.pipeline_mode<synchronous>, transform_indices = @transform_5, window_bounds = array<i64: 64, 128>}, {pipeline_mode = #tpu.pipeline_mode<synchronous>, transform_indices = @transform_6, window_bounds = array<i64: 1, 128>}, {pipeline_mode = #tpu.pipeline_mode<synchronous>, transform_indices = @transform_7, window_bounds = array<i64: 128, 256>}, {pipeline_mode = #tpu.pipeline_mode<synchronous>, transform_indices = @transform_8, window_bounds = array<i64: 1, 256>}, {pipeline_mode = #tpu.pipeline_mode<synchronous>, transform_indices = @transform_9, window_bounds = array<i64: 64, 1024>}, {pipeline_mode = #tpu.pipeline_mode<synchronous>, transform_indices = @transform_10, window_bounds = array<i64: 64, 1024>}, {pipeline_mode = #tpu.pipeline_mode<synchronous>, transform_indices = @transform_11, window_bounds = array<i64: 128, 1024>}, {pipeline_mode = #tpu.pipeline_mode<synchronous>, transform_indices = @transform_12, window_bounds = array<i64: 256, 1024>}, {pipeline_mode = #tpu.pipeline_mode<synchronous>, transform_indices = @transform_13, window_bounds = array<i64: 1, 1024>}, {transform_indices = @transform_14, window_bounds = array<i64: 1, 1, 2048>}]} {
    %c0 = arith.constant 0 : index
    %c0_0 = arith.constant 0 : index
    %c0_1 = arith.constant 0 : index
    %0 = vector.load %arg1[%c0, %c0_0, %c0_1] : memref<1x128x128xbf16, #tpu.memory_space<vmem>>, vector<1x128x128xbf16>
    %1 = vector.shape_cast %0 : vector<1x128x128xbf16> to vector<128x128xbf16>
    %c0_2 = arith.constant 0 : index
    %c0_3 = arith.constant 0 : index
    %c0_4 = arith.constant 0 : index
    %2 = vector.load %arg2[%c0_2, %c0_3, %c0_4] : memref<1x128x64xbf16, #tpu.memory_space<vmem>>, vector<1x128x64xbf16>
    %3 = vector.shape_cast %2 : vector<1x128x64xbf16> to vector<128x64xbf16>
    %cst = arith.constant dense<0.000000e+00> : vector<128x64xf32>
    %4 = tpu.matmul %1, %3, %cst {dimension_numbers = #tpu.dot_dimension_numbers<[1], [0], [0], [1], [0, 0, 1, 1], [], []>} : vector<128x128xbf16>, vector<128x64xbf16>, vector<128x64xf32> -> vector<128x64xf32>
    %c0_5 = arith.constant 0 : index
    %c0_6 = arith.constant 0 : index
    %5 = vector.load %arg3[%c0_5, %c0_6] : memref<1x64xf32, #tpu.memory_space<vmem>>, vector<1x64xf32>
    %6 = vector.broadcast %5 : vector<1x64xf32> to vector<128x64xf32>
    %7 = arith.addf %4, %6 : vector<128x64xf32>
    %cst_7 = arith.constant 2.000000e-01 : f32
    %8 = vector.broadcast %cst_7 : f32 to vector<128x64xf32>
    %9 = arith.mulf %8, %7 : vector<128x64xf32>
    %10 = arith.maximumf %7, %9 : vector<128x64xf32>
    %11 = arith.truncf %10 : vector<128x64xf32> to vector<128x64xbf16>
    %cst_8 = arith.constant dense<0.000000e+00> : vector<128x64xf32>
    %12 = tpu.matmul %1, %11, %cst_8 {dimension_numbers = #tpu.dot_dimension_numbers<[1], [0], [0], [1], [0, 0, 1, 1], [], []>} : vector<128x128xbf16>, vector<128x64xbf16>, vector<128x64xf32> -> vector<128x64xf32>
    %13 = arith.truncf %12 : vector<128x64xf32> to vector<128x64xbf16>
    %c0_9 = arith.constant 0 : index
    %c0_10 = arith.constant 0 : index
    %14 = vector.load %arg4[%c0_9, %c0_10] : memref<64x64xbf16, #tpu.memory_space<vmem>>, vector<64x64xbf16>
    %cst_11 = arith.constant dense<0.000000e+00> : vector<128x64xf32>
    %15 = tpu.matmul %13, %14, %cst_11 {dimension_numbers = #tpu.dot_dimension_numbers<[1], [0], [0], [1], [0, 0, 1, 1], [], []>} : vector<128x64xbf16>, vector<64x64xbf16>, vector<128x64xf32> -> vector<128x64xf32>
    %c0_12 = arith.constant 0 : index
    %c0_13 = arith.constant 0 : index
    %16 = vector.load %arg5[%c0_12, %c0_13] : memref<1x64xf32, #tpu.memory_space<vmem>>, vector<1x64xf32>
    %17 = vector.broadcast %16 : vector<1x64xf32> to vector<128x64xf32>
    %18 = arith.addf %15, %17 : vector<128x64xf32>
    %cst_14 = arith.constant 2.000000e-01 : f32
    %19 = vector.broadcast %cst_14 : f32 to vector<128x64xf32>
    %20 = arith.mulf %19, %18 : vector<128x64xf32>
    %21 = arith.maximumf %18, %20 : vector<128x64xf32>
    %22 = arith.truncf %21 : vector<128x64xf32> to vector<128x64xbf16>
    %cst_15 = arith.constant dense<0.000000e+00> : vector<128x64xf32>
    %23 = tpu.matmul %1, %22, %cst_15 {dimension_numbers = #tpu.dot_dimension_numbers<[1], [0], [0], [1], [0, 0, 1, 1], [], []>} : vector<128x128xbf16>, vector<128x64xbf16>, vector<128x64xf32> -> vector<128x64xf32>
    %24 = arith.truncf %23 : vector<128x64xf32> to vector<128x64xbf16>
    %c0_16 = arith.constant 0 : index
    %c0_17 = arith.constant 0 : index
    %25 = vector.load %arg6[%c0_16, %c0_17] : memref<64x128xbf16, #tpu.memory_space<vmem>>, vector<64x128xbf16>
    %cst_18 = arith.constant dense<0.000000e+00> : vector<128x128xf32>
    %26 = tpu.matmul %24, %25, %cst_18 {dimension_numbers = #tpu.dot_dimension_numbers<[1], [0], [0], [1], [0, 0, 1, 1], [], []>} : vector<128x64xbf16>, vector<64x128xbf16>, vector<128x128xf32> -> vector<128x128xf32>
    %c0_19 = arith.constant 0 : index
    %c0_20 = arith.constant 0 : index
    %27 = vector.load %arg7[%c0_19, %c0_20] : memref<1x128xf32, #tpu.memory_space<vmem>>, vector<1x128xf32>
    %28 = vector.broadcast %27 : vector<1x128xf32> to vector<128x128xf32>
    %29 = arith.addf %26, %28 : vector<128x128xf32>
    %cst_21 = arith.constant 2.000000e-01 : f32
    %30 = vector.broadcast %cst_21 : f32 to vector<128x128xf32>
    %31 = arith.mulf %30, %29 : vector<128x128xf32>
    %32 = arith.maximumf %29, %31 : vector<128x128xf32>
    %33 = arith.truncf %32 : vector<128x128xf32> to vector<128x128xbf16>
    %cst_22 = arith.constant dense<0.000000e+00> : vector<128x128xf32>
    %34 = tpu.matmul %1, %33, %cst_22 {dimension_numbers = #tpu.dot_dimension_numbers<[1], [0], [0], [1], [0, 0, 1, 1], [], []>} : vector<128x128xbf16>, vector<128x128xbf16>, vector<128x128xf32> -> vector<128x128xf32>
    %35 = arith.truncf %34 : vector<128x128xf32> to vector<128x128xbf16>
    %c0_23 = arith.constant 0 : index
    %c0_24 = arith.constant 0 : index
    %36 = vector.load %arg8[%c0_23, %c0_24] : memref<128x256xbf16, #tpu.memory_space<vmem>>, vector<128x256xbf16>
    %cst_25 = arith.constant dense<0.000000e+00> : vector<128x256xf32>
    %37 = tpu.matmul %35, %36, %cst_25 {dimension_numbers = #tpu.dot_dimension_numbers<[1], [0], [0], [1], [0, 0, 1, 1], [], []>} : vector<128x128xbf16>, vector<128x256xbf16>, vector<128x256xf32> -> vector<128x256xf32>
    %c0_26 = arith.constant 0 : index
    %c0_27 = arith.constant 0 : index
    %38 = vector.load %arg9[%c0_26, %c0_27] : memref<1x256xf32, #tpu.memory_space<vmem>>, vector<1x256xf32>
    %39 = vector.broadcast %38 : vector<1x256xf32> to vector<128x256xf32>
    %40 = arith.addf %37, %39 : vector<128x256xf32>
    %cst_28 = arith.constant 2.000000e-01 : f32
    %41 = vector.broadcast %cst_28 : f32 to vector<128x256xf32>
    %42 = arith.mulf %41, %40 : vector<128x256xf32>
    %43 = arith.maximumf %40, %42 : vector<128x256xf32>
    %44 = arith.truncf %43 : vector<128x256xf32> to vector<128x256xbf16>
    %cst_29 = arith.constant dense<0.000000e+00> : vector<128x256xf32>
    %45 = tpu.matmul %1, %44, %cst_29 {dimension_numbers = #tpu.dot_dimension_numbers<[1], [0], [0], [1], [0, 0, 1, 1], [], []>} : vector<128x128xbf16>, vector<128x256xbf16>, vector<128x256xf32> -> vector<128x256xf32>
    %46 = arith.truncf %12 : vector<128x64xf32> to vector<128x64xbf16>
    %c0_30 = arith.constant 0 : index
    %c0_31 = arith.constant 0 : index
    %47 = vector.load %arg10[%c0_30, %c0_31] : memref<64x1024xbf16, #tpu.memory_space<vmem>>, vector<64x1024xbf16>
    %cst_32 = arith.constant dense<0.000000e+00> : vector<128x1024xf32>
    %48 = tpu.matmul %46, %47, %cst_32 {dimension_numbers = #tpu.dot_dimension_numbers<[1], [0], [0], [1], [0, 0, 1, 1], [], []>} : vector<128x64xbf16>, vector<64x1024xbf16>, vector<128x1024xf32> -> vector<128x1024xf32>
    %49 = arith.truncf %23 : vector<128x64xf32> to vector<128x64xbf16>
    %c0_33 = arith.constant 0 : index
    %c0_34 = arith.constant 0 : index
    %50 = vector.load %arg11[%c0_33, %c0_34] : memref<64x1024xbf16, #tpu.memory_space<vmem>>, vector<64x1024xbf16>
    %cst_35 = arith.constant dense<0.000000e+00> : vector<128x1024xf32>
    %51 = tpu.matmul %49, %50, %cst_35 {dimension_numbers = #tpu.dot_dimension_numbers<[1], [0], [0], [1], [0, 0, 1, 1], [], []>} : vector<128x64xbf16>, vector<64x1024xbf16>, vector<128x1024xf32> -> vector<128x1024xf32>
    %52 = arith.addf %48, %51 : vector<128x1024xf32>
    %53 = arith.truncf %34 : vector<128x128xf32> to vector<128x128xbf16>
    %c0_36 = arith.constant 0 : index
    %c0_37 = arith.constant 0 : index
    %54 = vector.load %arg12[%c0_36, %c0_37] : memref<128x1024xbf16, #tpu.memory_space<vmem>>, vector<128x1024xbf16>
    %cst_38 = arith.constant dense<0.000000e+00> : vector<128x1024xf32>
    %55 = tpu.matmul %53, %54, %cst_38 {dimension_numbers = #tpu.dot_dimension_numbers<[1], [0], [0], [1], [0, 0, 1, 1], [], []>} : vector<128x128xbf16>, vector<128x1024xbf16>, vector<128x1024xf32> -> vector<128x1024xf32>
    %56 = arith.addf %52, %55 : vector<128x1024xf32>
    %57 = arith.truncf %45 : vector<128x256xf32> to vector<128x256xbf16>
    %c0_39 = arith.constant 0 : index
    %c0_40 = arith.constant 0 : index
    %58 = vector.load %arg13[%c0_39, %c0_40] : memref<256x1024xbf16, #tpu.memory_space<vmem>>, vector<256x1024xbf16>
    %cst_41 = arith.constant dense<0.000000e+00> : vector<128x1024xf32>
    %59 = tpu.matmul %57, %58, %cst_41 {dimension_numbers = #tpu.dot_dimension_numbers<[1], [0], [0], [1], [0, 0, 1, 1], [], []>} : vector<128x256xbf16>, vector<256x1024xbf16>, vector<128x1024xf32> -> vector<128x1024xf32>
    %60 = arith.addf %56, %59 : vector<128x1024xf32>
    %c0_42 = arith.constant 0 : index
    %c0_43 = arith.constant 0 : index
    %61 = vector.load %arg14[%c0_42, %c0_43] : memref<1x1024xf32, #tpu.memory_space<vmem>>, vector<1x1024xf32>
    %62 = vector.broadcast %61 : vector<1x1024xf32> to vector<128x1024xf32>
    %63 = arith.addf %60, %62 : vector<128x1024xf32>
    %cst_44 = arith.constant 2.000000e-01 : f32
    %64 = vector.broadcast %cst_44 : f32 to vector<128x1024xf32>
    %65 = arith.mulf %64, %63 : vector<128x1024xf32>
    %66 = arith.maximumf %63, %65 : vector<128x1024xf32>
    %cst_45 = arith.constant 1.000000e+00 : f32
    %67 = vector.broadcast %cst_45 : f32 to vector<1x128xf32>
    %cst_46 = arith.constant dense<0xFF800000> : vector<1024xf32>
    %68 = vector.multi_reduction <maximumf>, %66, %cst_46 [0] : vector<128x1024xf32> to vector<1024xf32>
    %69 = vector.shape_cast %68 : vector<1024xf32> to vector<1x1024xf32>
    %cst_47 = arith.constant dense<0.000000e+00> : vector<1x1024xf32>
    %70 = tpu.matmul %67, %66, %cst_47 {dimension_numbers = #tpu.dot_dimension_numbers<[1], [0], [0], [1], [0, 0, 1, 1], [], []>} : vector<1x128xf32>, vector<128x1024xf32>, vector<1x1024xf32> -> vector<1x1024xf32>
    %cst_48 = arith.constant 7.812500e-03 : f32
    %71 = vector.broadcast %cst_48 : f32 to vector<1x1024xf32>
    %72 = arith.mulf %70, %71 : vector<1x1024xf32>
    %73 = tpu.concatenate %69, %72 in 1 : vector<1x1024xf32>, vector<1x1024xf32> -> vector<1x2048xf32>
    %c0_49 = arith.constant 0 : index
    %c0_50 = arith.constant 0 : index
    %c0_51 = arith.constant 0 : index
    %74 = vector.load %arg15[%c0_49, %c0_50, %c0_51] : memref<1x1x2048xf32, #tpu.memory_space<vmem>>, vector<1x1x2048xf32>
    %75 = vector.shape_cast %74 : vector<1x1x2048xf32> to vector<1x2048xf32>
    %76 = vector.shape_cast %73 : vector<1x2048xf32> to vector<1x1x2048xf32>
    tpu.vector_store %arg15[%c0_49, %c0_50, %c0_51], %76 {strides = array<i32>} : memref<1x1x2048xf32, #tpu.memory_space<vmem>>, vector<1x1x2048xf32>,
    return
  }
  func.func @transform_0(%arg0: i32) -> (i32, i32, i32) {
    %c0_i32 = arith.constant 0 : i32
    %c0_i32_0 = arith.constant 0 : i32
    %c0_i32_1 = arith.constant 0 : i32
    return %arg0, %c0_i32, %c0_i32_0 : i32, i32, i32
  }
  func.func @transform_1(%arg0: i32) -> (i32, i32, i32) {
    %c0_i32 = arith.constant 0 : i32
    %c0_i32_0 = arith.constant 0 : i32
    %c0_i32_1 = arith.constant 0 : i32
    return %arg0, %c0_i32, %c0_i32_0 : i32, i32, i32
  }
  func.func @transform_2(%arg0: i32) -> (i32, i32) {
    %c0_i32 = arith.constant 0 : i32
    %c0_i32_0 = arith.constant 0 : i32
    %c0_i32_1 = arith.constant 0 : i32
    return %c0_i32, %c0_i32_0 : i32, i32
  }
  func.func @transform_3(%arg0: i32) -> (i32, i32) {
    %c0_i32 = arith.constant 0 : i32
    %c0_i32_0 = arith.constant 0 : i32
    %c0_i32_1 = arith.constant 0 : i32
    return %c0_i32, %c0_i32_0 : i32, i32
  }
  func.func @transform_4(%arg0: i32) -> (i32, i32) {
    %c0_i32 = arith.constant 0 : i32
    %c0_i32_0 = arith.constant 0 : i32
    %c0_i32_1 = arith.constant 0 : i32
    return %c0_i32, %c0_i32_0 : i32, i32
  }
  func.func @transform_5(%arg0: i32) -> (i32, i32) {
    %c0_i32 = arith.constant 0 : i32
    %c0_i32_0 = arith.constant 0 : i32
    %c0_i32_1 = arith.constant 0 : i32
    return %c0_i32, %c0_i32_0 : i32, i32
  }
  func.func @transform_6(%arg0: i32) -> (i32, i32) {
    %c0_i32 = arith.constant 0 : i32
    %c0_i32_0 = arith.constant 0 : i32
    %c0_i32_1 = arith.constant 0 : i32
    return %c0_i32, %c0_i32_0 : i32, i32
  }
  func.func @transform_7(%arg0: i32) -> (i32, i32) {
    %c0_i32 = arith.constant 0 : i32
    %c0_i32_0 = arith.constant 0 : i32
    %c0_i32_1 = arith.constant 0 : i32
    return %c0_i32, %c0_i32_0 : i32, i32
  }
  func.func @transform_8(%arg0: i32) -> (i32, i32) {
    %c0_i32 = arith.constant 0 : i32
    %c0_i32_0 = arith.constant 0 : i32
    %c0_i32_1 = arith.constant 0 : i32
    return %c0_i32, %c0_i32_0 : i32, i32
  }
  func.func @transform_9(%arg0: i32) -> (i32, i32) {
    %c0_i32 = arith.constant 0 : i32
    %c0_i32_0 = arith.constant 0 : i32
    %c0_i32_1 = arith.constant 0 : i32
    return %c0_i32, %c0_i32_0 : i32, i32
  }
  func.func @transform_10(%arg0: i32) -> (i32, i32) {
    %c0_i32 = arith.constant 0 : i32
    %c0_i32_0 = arith.constant 0 : i32
    %c0_i32_1 = arith.constant 0 : i32
    return %c0_i32, %c0_i32_0 : i32, i32
  }
  func.func @transform_11(%arg0: i32) -> (i32, i32) {
    %c0_i32 = arith.constant 0 : i32
    %c0_i32_0 = arith.constant 0 : i32
    %c0_i32_1 = arith.constant 0 : i32
    return %c0_i32, %c0_i32_0 : i32, i32
  }
  func.func @transform_12(%arg0: i32) -> (i32, i32) {
    %c0_i32 = arith.constant 0 : i32
    %c0_i32_0 = arith.constant 0 : i32
    %c0_i32_1 = arith.constant 0 : i32
    return %c0_i32, %c0_i32_0 : i32, i32
  }
  func.func @transform_13(%arg0: i32) -> (i32, i32) {
    %c0_i32 = arith.constant 0 : i32
    %c0_i32_0 = arith.constant 0 : i32
    %c0_i32_1 = arith.constant 0 : i32
    return %c0_i32, %c0_i32_0 : i32, i32
  }
  func.func @transform_14(%arg0: i32) -> (i32, i32, i32) {
    %c0_i32 = arith.constant 0 : i32
    %c0_i32_0 = arith.constant 0 : i32
    %c0_i32_1 = arith.constant 0 : i32
    return %arg0, %c0_i32, %c0_i32_0 : i32, i32, i32
  }
}

</mosaic_0001>

<bundles_post_ra>
// kernel: multilayer_gcn_forward.1
= control target key start
LH: loop header
LB: loop body
LE: loop exit
PB: predicated region body
PF: predicated region fallthrough
CT: control target
= control target key end

     0   :  { %s9927_s0 = inlined_call_operand.vmem [shape: bf16[2,128,128], index: 0, kind: input, shape index: {}]   ;;  %s9928_s1 = inlined_call_operand.vmem [shape: bf16[2,128,64], index: 1, kind: input, shape index: {}]   ;;  %s9929_s2 = inlined_call_operand.hbm [shape: f32[1,64], index: 2, kind: input, shape index: {}]   ;;  %s9930_s3 = inlined_call_operand.hbm [shape: bf16[64,64], index: 3, kind: input, shape index: {}]   ;;  %s9931_s4 = inlined_call_operand.hbm [shape: f32[1,64], index: 4, kind: input, shape index: {}]   ;;  %s9932_s5 = inlined_call_operand.hbm [shape: bf16[64,128], index: 5, kind: input, shape index: {}]   ;;  %s9933_s6 = inlined_call_operand.hbm [shape: f32[1,128], index: 6, kind: input, shape index: {}]   ;;  %s9934_s7 = inlined_call_operand.hbm [shape: bf16[128,256], index: 7, kind: input, shape index: {}]   ;;  %s9935_s8 = inlined_call_operand.hbm [shape: f32[1,256], index: 8, kind: input, shape index: {}]   ;;  %s9936_s9 = inlined_call_operand.hbm [shape: bf16[64,1024], index: 9, kind: input, shape index: {}]   ;;  %s9937_s10 = inlined_call_operand.hbm [shape: bf16[64,1024], index: 10, kind: input, shape index: {}]   ;;  %s9938_s11 = inlined_call_operand.hbm [shape: bf16[128,1024], index: 11, kind: input, shape index: {}]   ;;  %s9939_s12 = inlined_call_operand.hbm [shape: bf16[256,1024], index: 12, kind: input, shape index: {}]   ;;  %s9940_s13 = inlined_call_operand.hbm [shape: f32[1,1024], index: 13, kind: input, shape index: {}]   ;;  %s9941_s14 = inlined_call_operand.vmem [shape: f32[2,1,2048], index: 14, kind: output, shape index: {}]  }
   0x1   :  { %9945 = sst [smem:[#allocation29_spill]] %s9927_s0 }
   0x2   :  { %9946 = sst [smem:[#allocation30_spill]] %s9930_s3 }
   0x3   :  { %9947 = sst [smem:[#allocation31_spill]] %s9932_s5 }
   0x4   :  { %9948 = sst [smem:[#allocation32_spill]] %s9941_s14 }
   0x5   :  { %19 = vsyncpa [#allocation3], 0 }
   0x6   :  { %20 = vsyncpa [#allocation5], 0 }
   0x7   :  { %21 = vsyncpa [#allocation8], 0 }
   0x8   :  { %22 = vsyncpa [#allocation11], 0 }
   0x9   :  { %23 = vsyncpa [#allocation14], 0 }
   0xa   :  { %24 = vsyncpa [#allocation17], 0 }
   0xb   :  { %25 = vsyncpa [#allocation20], 0  ;;  %s8714_s29 = smov 0  }
   0xc LB: > { %9949 = sst [smem:[#allocation28_spill]] %s8615_s29  ;;  %s8617_s30 = smov [#allocation4]   ;;  %s8615_s29 = sphi %s8714_s29, %s31_s29  }
   0xd   : > { %s389_s15 = sshll.u32 %s8617_s30, 4  ;;  %s8720_s16 = sadd.s32 4294967295, %s8615_s29   ;;  %s8725_s15 = int_to_ptr.vmem [resolvable:$true] %s389_s15 }
   0xe   : > { %p6858_p0 = scmp.ge.s32.totalorder %s8615_s29, 1  ;;  %p366_p1 = scmp.lt.s32.totalorder %s8615_s29, 3 }
   0xf   : > { %p9943_p2 = scmp.eq.s32.totalorder %s8720_s16, 0  ;;  %s8618_s18 = smov [#allocation7]  }
  0x10   : > { %p8727_p3 = pnand %p6858_p0, %p366_p1  ;;  %s413_s19 = sshll.u32 %s8618_s18, 4  ;;  %s8733_s19 = int_to_ptr.vmem [resolvable:$true] %s413_s19 }
  0x11   : > { %s8619_s21 = smov [#allocation10]   ;;  %s9952_s3 = sld [smem:[#allocation30_spill]] }
  0x12   : > { %s9950_s17 = scalar_select %p8727_p3, 1, 0 }
  0x13   : > { %p8097_p4 = pneg %p8727_p3  ;;  %s437_s22 = sshll.u32 %s8619_s21, 4  ;;  %s8741_s22 = int_to_ptr.vmem [resolvable:$true] %s437_s22 }
  0x15   : > { %p8737_p5 = pnand %p9943_p2, %p8097_p4 }
  0x17   : > { %s8245_s25 = scalar_lea.hbm %s9952_s3, 512  ;;  %p8751_p7 = pneg %p8737_p5 }
  0x18   : > { %p8246_p6 = scmp.ne.s32.totalorder %s9952_s3, %s8245_s25  ;;  %p8252_p10 = scmp.lt.u32.totalorder %s8245_s25, %s9952_s3 }
  0x1a   : > { %p8248_p8 = pnand %p8751_p7, %p8246_p6 }
  0x1c   : > { %p8249_p9 = pneg %p8248_p8 }
  0x1e   : > { %p8254_p11 = pnand %p8252_p10, %p8249_p9 }
  0x20   : > { %8257 = shalt.err (!%p8254_p11)
}
  0x21   : > { %s8258_s21 = scalar_lea.vmem %s8725_s15, 512  ;;  %p8266_p1 = scmp.lt.s32.totalorder %s8725_s15, %s8725_s15 }
  0x22   : > { %p8259_p12 = scmp.ne.s32.totalorder %s8725_s15, %s8258_s21  ;;  %p8267_p4 = scmp.lt.s32.totalorder %s8258_s21, %s8258_s21 }
  0x24   : > { %p8261_p13 = pnand %p8259_p12, %p8751_p7  ;;  %p8268_p6 = por %p8267_p4, %p8266_p1 }
  0x26   : > { %p8262_p0 = pneg %p8261_p13 }
  0x28   : > { %p8269_p8 = pnand %p8268_p6, %p8262_p0 }
  0x2a   : > { %8272 = shalt.err (!%p8269_p8)
}
  0x2b   : > { %s8620_s23 = smov 64   ;;  %s8621_s24 = smov 4  }
  0x2c   : > { %8103 = dma.hbm_to_vmem [thread:$0]  (!%p8737_p5), %s9952_s3, 512, %s8725_s15, [#allocation5], %s8620_s23, %s8620_s23, %s8621_s24  }
  0x2d   : > { %s9954_s5 = sld [smem:[#allocation31_spill]] }
  0x33   : > { %s8273_s18 = scalar_lea.hbm %s9954_s5, 512 }
  0x34   : > { %p8274_p9 = scmp.ne.s32.totalorder %s9954_s5, %s8273_s18  ;;  %p8280_p12 = scmp.lt.u32.totalorder %s8273_s18, %s9954_s5 }
  0x36   : > { %p8276_p10 = pnand %p8274_p9, %p8751_p7 }
  0x38   : > { %p8277_p11 = pneg %p8276_p10 }
  0x3a   : > { %p8282_p13 = pnand %p8280_p12, %p8277_p11 }
  0x3c   : > { %8285 = shalt.err (!%p8282_p13)
}
  0x3d   : > { %s8286_s15 = scalar_lea.vmem %s8733_s19, 512  ;;  %p8294_p6 = scmp.lt.s32.totalorder %s8733_s19, %s8733_s19 }
  0x3e   : > { %p8287_p0 = scmp.ne.s32.totalorder %s8733_s19, %s8286_s15  ;;  %p8295_p8 = scmp.lt.s32.totalorder %s8286_s15, %s8286_s15 }
  0x40   : > { %p8289_p1 = pnand %p8287_p0, %p8751_p7  ;;  %p8296_p9 = por %p8295_p8, %p8294_p6 }
  0x42   : > { %p8290_p4 = pneg %p8289_p1 }
  0x44   : > { %p8297_p10 = pnand %p8296_p9, %p8290_p4 }
  0x46   : > { %8300 = shalt.err (!%p8297_p10)
}
  0x47   : > { %8109 = dma.hbm_to_vmem [thread:$0]  (!%p8737_p5), %s9954_s5, 512, %s8733_s19, [#allocation8], %s8620_s23, %s8620_s23, %s8621_s24  }
  0x48   : > { %s8301_s26 = scalar_lea.hbm %s9934_s7, 2048 }
  0x49   : > { %p8302_p11 = scmp.ne.s32.totalorder %s9934_s7, %s8301_s26  ;;  %p8308_p0 = scmp.lt.u32.totalorder %s8301_s26, %s9934_s7 }
  0x4b   : > { %p8304_p12 = pnand %p8302_p11, %p8751_p7 }
  0x4d   : > { %p8305_p13 = pneg %p8304_p12 }
  0x4f   : > { %p8310_p1 = pnand %p8308_p0, %p8305_p13 }
  0x51   : > { %8313 = shalt.err (!%p8310_p1)
}
  0x52   : > { %s8314_s19 = scalar_lea.vmem %s8741_s22, 2048  ;;  %p8322_p9 = scmp.lt.s32.totalorder %s8741_s22, %s8741_s22 }
  0x53   : > { %p8315_p4 = scmp.ne.s32.totalorder %s8741_s22, %s8314_s19  ;;  %p8323_p10 = scmp.lt.s32.totalorder %s8314_s19, %s8314_s19 }
  0x55   : > { %p8317_p6 = pnand %p8315_p4, %p8751_p7  ;;  %p8324_p11 = por %p8323_p10, %p8322_p9 }
  0x57   : > { %p8318_p8 = pneg %p8317_p6 }
  0x59   : > { %p8325_p12 = pnand %p8324_p11, %p8318_p8 }
  0x5b   : > { %8328 = shalt.err (!%p8325_p12)
}
  0x5c   : > { %s8622_s23 = smov 128   ;;  %s8623_s24 = smov 8  }
  0x5d   : > { %8115 = dma.hbm_to_vmem [thread:$0]  (!%p8737_p5), %s9934_s7, 2048, %s8741_s22, [#allocation11], %s8622_s23, %s8622_s23, %s8623_s24  }
  0x5e   : > { %s8624_s14 = smov [#allocation13]   ;;  %s8329_s27 = scalar_lea.hbm %s9936_s9, 4096 }
  0x5f   : > { %s461_s29 = sshll.u32 %s8624_s14, 4  ;;  %p8330_p13 = scmp.ne.s32.totalorder %s9936_s9, %s8329_s27  ;;  %s462_s29 = int_to_ptr.vmem [resolvable:$true] %s461_s29 }
  0x60   : > { %p8336_p4 = scmp.lt.u32.totalorder %s8329_s27, %s9936_s9 }
  0x61   : > { %p8332_p0 = pnand %p8330_p13, %p8751_p7 }
  0x63   : > { %p8333_p1 = pneg %p8332_p0 }
  0x65   : > { %p8338_p6 = pnand %p8336_p4, %p8333_p1 }
  0x67   : > { %8341 = shalt.err (!%p8338_p6)
}
  0x68   : > { %s8342_s22 = scalar_lea.vmem %s462_s29, 4096  ;;  %p8350_p11 = scmp.lt.s32.totalorder %s462_s29, %s462_s29 }
  0x69   : > { %p8343_p8 = scmp.ne.s32.totalorder %s462_s29, %s8342_s22  ;;  %p8351_p12 = scmp.lt.s32.totalorder %s8342_s22, %s8342_s22 }
  0x6b   : > { %p8345_p9 = pnand %p8343_p8, %p8751_p7  ;;  %p8352_p2 = por %p8351_p12, %p8350_p11 }
  0x6d   : > { %p8346_p10 = pneg %p8345_p9 }
  0x6f   : > { %p8353_p3 = pnand %p8352_p2, %p8346_p10 }
  0x71   : > { %8356 = shalt.err (!%p8353_p3)
}
  0x72   : > { %s8625_s23 = smov 512   ;;  %s8626_s24 = smov 32  }
  0x73   : > { %8121 = dma.hbm_to_vmem [thread:$0]  (!%p8737_p5), %s9936_s9, 4096, %s462_s29, [#allocation14], %s8625_s23, %s8625_s23, %s8626_s24  }
  0x74   : > { %s8627_s14 = smov [#allocation16]   ;;  %s8628_s26 = smov [#allocation2]  }
  0x75   : > { %s487_s25 = sshll.u32 %s8627_s14, 4  ;;  %s379_s27 = sshll.u32 %s8628_s26, 4  ;;  %s488_s25 = int_to_ptr.vmem [resolvable:$true] %s487_s25  ;;  %s380_s27 = int_to_ptr.vmem [resolvable:$true] %s379_s27 }
  0x76   : > { %s8357_s21 = scalar_lea.hbm %s9938_s11, 8192 }
  0x77   : > { %p8358_p2 = scmp.ne.s32.totalorder %s9938_s11, %s8357_s21  ;;  %p8364_p0 = scmp.lt.u32.totalorder %s8357_s21, %s9938_s11 }
  0x79   : > { %p8360_p3 = pnand %p8358_p2, %p8751_p7 }
  0x7b   : > { %p8361_p13 = pneg %p8360_p3 }
  0x7d   : > { %p8366_p1 = pnand %p8364_p0, %p8361_p13 }
  0x7f   : > { %8369 = shalt.err (!%p8366_p1)
}
  0x80   : > { %s8370_s29 = scalar_lea.vmem %s488_s25, 8192  ;;  %p8378_p9 = scmp.lt.s32.totalorder %s488_s25, %s488_s25 }
  0x81   : > { %p8371_p4 = scmp.ne.s32.totalorder %s488_s25, %s8370_s29  ;;  %p8379_p10 = scmp.lt.s32.totalorder %s8370_s29, %s8370_s29 }
  0x83   : > { %p8373_p6 = pnand %p8371_p4, %p8751_p7  ;;  %p8380_p11 = por %p8379_p10, %p8378_p9 }
  0x85   : > { %p8374_p8 = pneg %p8373_p6 }
  0x87   : > { %p8381_p12 = pnand %p8380_p11, %p8374_p8 }
  0x89   : > { %8384 = shalt.err (!%p8381_p12)
}
  0x8a   : > { %8127 = dma.hbm_to_vmem [thread:$0]  (!%p8737_p5), %s9938_s11, 8192, %s488_s25, [#allocation17], %s8625_s23, %s8625_s23, %s8626_s24  }
  0x8b   : > { %s8385_s14 = scalar_lea.hbm %s9929_s2, 16 }
  0x8c   : > { %p8386_p2 = scmp.ne.s32.totalorder %s9929_s2, %s8385_s14  ;;  %p8392_p0 = scmp.lt.u32.totalorder %s8385_s14, %s9929_s2 }
  0x8e   : > { %p8388_p3 = pnand %p8386_p2, %p8751_p7 }
  0x90   : > { %p8389_p13 = pneg %p8388_p3 }
  0x92   : > { %p8394_p1 = pnand %p8392_p0, %p8389_p13 }
  0x94   : > { %8397 = shalt.err (!%p8394_p1)
}
  0x95   : > { %s8398_s19 = scalar_lea.vmem %s380_s27, 16  ;;  %s8405_s25 = scalar_lea.vmem %s380_s27, 32 }
  0x96   : > { %p8399_p4 = scmp.ne.s32.totalorder %s380_s27, %s8398_s19  ;;  %p8406_p9 = scmp.lt.s32.totalorder %s380_s27, %s380_s27 }
  0x97   : > { %p8407_p10 = scmp.lt.s32.totalorder %s8405_s25, %s8398_s19 }
  0x98   : > { %p8401_p6 = pnand %p8399_p4, %p8751_p7 }
  0x99   : > { %p8408_p11 = por %p8407_p10, %p8406_p9 }
  0x9a   : > { %p8402_p8 = pneg %p8401_p6 }
  0x9c   : > { %p8409_p12 = pnand %p8408_p11, %p8402_p8 }
  0x9e   : > { %8412 = shalt.err (!%p8409_p12)
}
  0x9f   : > { %8100 = dma.hbm_to_vmem [thread:$0]  (!%p8737_p5), %s9929_s2, 16, %s380_s27, [#allocation3]  }
  0xa0   : > { %s8629_s3 = smov [#allocation6]   ;;  %s8630_s15 = smov [#allocation9]  }
  0xa1   : > { %s403_s5 = sshll.u32 %s8629_s3, 4  ;;  %s427_s0 = sshll.u32 %s8630_s15, 4  ;;  %s404_s5 = int_to_ptr.vmem [resolvable:$true] %s403_s5  ;;  %s428_s0 = int_to_ptr.vmem [resolvable:$true] %s427_s0 }
  0xa2   : > { %s8413_s30 = scalar_lea.hbm %s9931_s4, 16 }
  0xa3   : > { %p8414_p2 = scmp.ne.s32.totalorder %s9931_s4, %s8413_s30  ;;  %p8420_p0 = scmp.lt.u32.totalorder %s8413_s30, %s9931_s4 }
  0xa5   : > { %p8416_p3 = pnand %p8414_p2, %p8751_p7 }
  0xa7   : > { %p8417_p13 = pneg %p8416_p3 }
  0xa9   : > { %p8422_p1 = pnand %p8420_p0, %p8417_p13 }
  0xab   : > { %8425 = shalt.err (!%p8422_p1)
}
  0xac   : > { %s8426_s27 = scalar_lea.vmem %s404_s5, 16  ;;  %s8433_s22 = scalar_lea.vmem %s404_s5, 32 }
  0xad   : > { %p8427_p4 = scmp.ne.s32.totalorder %s404_s5, %s8426_s27  ;;  %p8434_p9 = scmp.lt.s32.totalorder %s404_s5, %s404_s5 }
  0xae   : > { %p8435_p10 = scmp.lt.s32.totalorder %s8433_s22, %s8426_s27 }
  0xaf   : > { %p8429_p6 = pnand %p8427_p4, %p8751_p7 }
  0xb0   : > { %p8436_p11 = por %p8435_p10, %p8434_p9 }
  0xb1   : > { %p8430_p8 = pneg %p8429_p6 }
  0xb3   : > { %p8437_p12 = pnand %p8436_p11, %p8430_p8 }
  0xb5   : > { %8440 = shalt.err (!%p8437_p12)
}
  0xb6   : > { %8106 = dma.hbm_to_vmem [thread:$0]  (!%p8737_p5), %s9931_s4, 16, %s404_s5, [#allocation5]  }
  0xb7   : > { %s8441_s26 = scalar_lea.hbm %s9933_s6, 16 }
  0xb8   : > { %p8442_p2 = scmp.ne.s32.totalorder %s9933_s6, %s8441_s26  ;;  %p8448_p0 = scmp.lt.u32.totalorder %s8441_s26, %s9933_s6 }
  0xba   : > { %p8444_p3 = pnand %p8442_p2, %p8751_p7 }
  0xbc   : > { %p8445_p13 = pneg %p8444_p3 }
  0xbe   : > { %p8450_p1 = pnand %p8448_p0, %p8445_p13 }
  0xc0   : > { %8453 = shalt.err (!%p8450_p1)
}
  0xc1   : > { %s8454_s25 = scalar_lea.vmem %s428_s0, 16  ;;  %s8461_s5 = scalar_lea.vmem %s428_s0, 32 }
  0xc2   : > { %p8455_p4 = scmp.ne.s32.totalorder %s428_s0, %s8454_s25  ;;  %p8462_p9 = scmp.lt.s32.totalorder %s428_s0, %s428_s0 }
  0xc3   : > { %p8463_p10 = scmp.lt.s32.totalorder %s8461_s5, %s8454_s25 }
  0xc4   : > { %p8457_p6 = pnand %p8455_p4, %p8751_p7 }
  0xc5   : > { %p8464_p11 = por %p8463_p10, %p8462_p9 }
  0xc6   : > { %p8458_p8 = pneg %p8457_p6 }
  0xc8   : > { %p8465_p12 = pnand %p8464_p11, %p8458_p8 }
  0xca   : > { %8468 = shalt.err (!%p8465_p12)
}
  0xcb   : > { %8112 = dma.hbm_to_vmem [thread:$0]  (!%p8737_p5), %s9933_s6, 16, %s428_s0, [#allocation8]  }
  0xcc   : > { %s8631_s29 = smov [#allocation12]   ;;  %s8632_s15 = smov [#allocation15]  }
  0xcd   : > { %s451_s3 = sshll.u32 %s8631_s29, 4  ;;  %s474_s14 = sshll.u32 %s8632_s15, 4  ;;  %s452_s3 = int_to_ptr.vmem [resolvable:$true] %s451_s3  ;;  %s475_s14 = int_to_ptr.vmem [resolvable:$true] %s474_s14 }
  0xce   : > { %s8469_s18 = scalar_lea.hbm %s9935_s8, 32 }
  0xcf   : > { %p8470_p2 = scmp.ne.s32.totalorder %s9935_s8, %s8469_s18  ;;  %p8476_p0 = scmp.lt.u32.totalorder %s8469_s18, %s9935_s8 }
  0xd1   : > { %p8472_p3 = pnand %p8470_p2, %p8751_p7 }
  0xd3   : > { %p8473_p13 = pneg %p8472_p3 }
  0xd5   : > { %p8478_p1 = pnand %p8476_p0, %p8473_p13 }
  0xd7   : > { %8481 = shalt.err (!%p8478_p1)
}
  0xd8   : > { %s8482_s0 = scalar_lea.vmem %s452_s3, 32  ;;  %p8490_p9 = scmp.lt.s32.totalorder %s452_s3, %s452_s3 }
  0xd9   : > { %p8483_p4 = scmp.ne.s32.totalorder %s452_s3, %s8482_s0  ;;  %p8491_p10 = scmp.lt.s32.totalorder %s8482_s0, %s8482_s0 }
  0xdb   : > { %p8485_p6 = pnand %p8483_p4, %p8751_p7  ;;  %p8492_p11 = por %p8491_p10, %p8490_p9 }
  0xdd   : > { %p8486_p8 = pneg %p8485_p6 }
  0xdf   : > { %p8493_p12 = pnand %p8492_p11, %p8486_p8 }
  0xe1   : > { %8496 = shalt.err (!%p8493_p12)
}
  0xe2   : > { %8118 = dma.hbm_to_vmem [thread:$0]  (!%p8737_p5), %s9935_s8, 32, %s452_s3, [#allocation11]  }
  0xe3   : > { %s8497_s26 = scalar_lea.hbm %s9937_s10, 4096 }
  0xe4   : > { %p8498_p2 = scmp.ne.s32.totalorder %s9937_s10, %s8497_s26  ;;  %p8504_p0 = scmp.lt.u32.totalorder %s8497_s26, %s9937_s10 }
  0xe6   : > { %p8500_p3 = pnand %p8498_p2, %p8751_p7 }
  0xe8   : > { %p8501_p13 = pneg %p8500_p3 }
  0xea   : > { %p8506_p1 = pnand %p8504_p0, %p8501_p13 }
  0xec   : > { %8509 = shalt.err (!%p8506_p1)
}
  0xed   : > { %s8510_s25 = scalar_lea.vmem %s475_s14, 4096  ;;  %p8518_p9 = scmp.lt.s32.totalorder %s475_s14, %s475_s14 }
  0xee   : > { %p8511_p4 = scmp.ne.s32.totalorder %s475_s14, %s8510_s25  ;;  %p8519_p10 = scmp.lt.s32.totalorder %s8510_s25, %s8510_s25 }
  0xf0   : > { %p8513_p6 = pnand %p8511_p4, %p8751_p7  ;;  %p8520_p11 = por %p8519_p10, %p8518_p9 }
  0xf2   : > { %p8514_p8 = pneg %p8513_p6 }
  0xf4   : > { %p8521_p12 = pnand %p8520_p11, %p8514_p8 }
  0xf6   : > { %8524 = shalt.err (!%p8521_p12)
}
  0xf7   : > { %8124 = dma.hbm_to_vmem [thread:$0]  (!%p8737_p5), %s9937_s10, 4096, %s475_s14, [#allocation14], %s8625_s23, %s8625_s23, %s8626_s24  }
  0xf8   : > { %s8633_s0 = smov [#allocation18]   ;;  %s8634_s22 = smov [#allocation19]  }
  0xf9   : > { %s500_s27 = sshll.u32 %s8633_s0, 4  ;;  %s514_s29 = sshll.u32 %s8634_s22, 4  ;;  %s501_s27 = int_to_ptr.vmem [resolvable:$true] %s500_s27  ;;  %s515_s29 = int_to_ptr.vmem [resolvable:$true] %s514_s29 }
  0xfa   : > { %s8525_s30 = scalar_lea.hbm %s9939_s12, 16384 }
  0xfb   : > { %p8526_p2 = scmp.ne.s32.totalorder %s9939_s12, %s8525_s30  ;;  %p8532_p0 = scmp.lt.u32.totalorder %s8525_s30, %s9939_s12 }
  0xfd   : > { %p8528_p3 = pnand %p8526_p2, %p8751_p7 }
  0xff   : > { %p8529_p13 = pneg %p8528_p3 }
 0x101   : > { %p8534_p1 = pnand %p8532_p0, %p8529_p13 }
 0x103   : > { %8537 = shalt.err (!%p8534_p1)
}
 0x104   : > { %s8538_s14 = scalar_lea.vmem %s501_s27, 16384  ;;  %p8546_p9 = scmp.lt.s32.totalorder %s501_s27, %s501_s27 }
 0x105   : > { %p8539_p4 = scmp.ne.s32.totalorder %s501_s27, %s8538_s14  ;;  %p8547_p10 = scmp.lt.s32.totalorder %s8538_s14, %s8538_s14 }
 0x107   : > { %p8541_p6 = pnand %p8539_p4, %p8751_p7  ;;  %p8548_p11 = por %p8547_p10, %p8546_p9 }
 0x109   : > { %p8542_p8 = pneg %p8541_p6 }
 0x10b   : > { %p8549_p12 = pnand %p8548_p11, %p8542_p8 }
 0x10d   : > { %8552 = shalt.err (!%p8549_p12)
}
 0x10e   : > { %8130 = dma.hbm_to_vmem [thread:$0]  (!%p8737_p5), %s9939_s12, 16384, %s501_s27, [#allocation17], %s8625_s23, %s8625_s23, %s8626_s24  }
 0x10f   : > { %s8553_s15 = scalar_lea.hbm %s9940_s13, 128 }
 0x110   : > { %p8554_p2 = scmp.ne.s32.totalorder %s9940_s13, %s8553_s15  ;;  %p8560_p0 = scmp.lt.u32.totalorder %s8553_s15, %s9940_s13 }
 0x112   : > { %p8556_p3 = pnand %p8554_p2, %p8751_p7 }
 0x114   : > { %p8557_p13 = pneg %p8556_p3 }
 0x116   : > { %p8562_p1 = pnand %p8560_p0, %p8557_p13 }
 0x118   : > { %8565 = shalt.err (!%p8562_p1)
}
 0x119   : > { %s8566_s19 = scalar_lea.vmem %s515_s29, 128  ;;  %p8574_p9 = scmp.lt.s32.totalorder %s515_s29, %s515_s29 }
 0x11a   : > { %p8567_p4 = scmp.ne.s32.totalorder %s515_s29, %s8566_s19  ;;  %p8575_p10 = scmp.lt.s32.totalorder %s8566_s19, %s8566_s19 }
 0x11c   : > { %p8569_p6 = pnand %p8567_p4, %p8751_p7  ;;  %p8576_p11 = por %p8575_p10, %p8574_p9 }
 0x11e   : > { %p8570_p8 = pneg %p8569_p6 }
 0x120   : > { %p8577_p12 = pnand %p8576_p11, %p8570_p8 }
 0x122   : > { %8580 = shalt.err (!%p8577_p12)
}
 0x123   : > { %8133 = dma.hbm_to_vmem [thread:$0]  (!%p8737_p5), %s9940_s13, 128, %s515_s29, [#allocation20]  }
 0x124   : > { %p9955_p2 = scmp.ne.s32.totalorder %s9950_s17, 0 }
 0x125   : > { %p9956_p3 = scmp.eq.s32.totalorder (!%p9955_p2), %s8720_s16, 0 }
 0x126   : > { %543 = sbr.rel (%p9955_p2) target bundleno = 3081 (0xc09), region = 76 }
 0x12d   : > { %8586 = dma.done.wait (%p9956_p3), [#allocation3], 16   ;;  %p9957_p7 = pmov %p9956_p3 }
 0x12e   : > { %p9958_p13 = pmov %p9956_p3 }
 0x12f   : > { %8588 = vsyncadd (%p9957_p7), [#allocation3], 4294967280 }
 0x130   : > { %8590 = dma.done.wait (%p9958_p13), [#allocation5], 528   ;;  %p9959_p0 = pmov %p9956_p3 }
 0x132   : > { %8592 = vsyncadd (%p9959_p0), [#allocation5], 4294966768  ;;  %p9960_p1 = pmov %p9959_p0 }
 0x133   : > { %p9961_p5 = pmov %p9959_p0 }
 0x134   : > { %8594 = dma.done.wait (%p9960_p1), [#allocation8], 528  }
 0x135   : > { %8596 = vsyncadd (%p9961_p5), [#allocation8], 4294966768  ;;  %p9962_p4 = pmov %p9959_p0 }
 0x136   : > { %p9963_p6 = pmov %p9959_p0 }
 0x137   : > { %8598 = dma.done.wait (%p9962_p4), [#allocation11], 2080  }
 0x138   : > { %8600 = vsyncadd (%p9963_p6), [#allocation11], 4294965216  ;;  %p9964_p8 = pmov %p9959_p0 }
 0x139   : > { %p9965_p9 = pmov %p9959_p0 }
 0x13a   : > { %8602 = dma.done.wait (%p9964_p8), [#allocation14], 8192  }
 0x13b   : > { %8604 = vsyncadd (%p9965_p9), [#allocation14], 4294959104  ;;  %p9966_p10 = pmov %p9959_p0 }
 0x13c   : > { %p9967_p11 = pmov %p9959_p0 }
 0x13d   : > { %8606 = dma.done.wait (%p9966_p10), [#allocation17], 24576  }
 0x13e   : > { %8608 = vsyncadd (%p9967_p11), [#allocation17], 4294942720  ;;  %p9968_p12 = pmov %p9959_p0 }
 0x13f   : > { %p9969_p2 = pmov %p9959_p0 }
 0x140   : > { %8610 = dma.done.wait (%p9968_p12), [#allocation20], 128  }
 0x141   : > { %8612 = vsyncadd (%p9969_p2), [#allocation20], 4294967168  ;;  %p637_p3 = scmp.lt.s32.totalorder %s8720_s16, 1  ;;  %s9970_s14 = sld [smem:[#allocation29_spill]]  ;;  %v8204_v16 = vld [vmem:[#allocation4] sm:$0xff]   ;;  %v8205_v17 = vld [vmem:[#allocation4 + $0x8] sm:$0xff]  }
 0x142   : > { %v8206_v18 = vld [vmem:[#allocation4 + $0x10] sm:$0xff]   ;;  %v8207_v19 = vld [vmem:[#allocation4 + $0x18] sm:$0xff]   ;;  %vm1068_vm0 = vcmask 523264   ;;  %s9971_s15 = sld [smem:[#allocation32_spill]] }
 0x143   : > { %s9974_s16 = smov (!%p637_p3, %s8720_s16), 1  ;;  %v9068_v20 = vld [vmem:[#allocation2] ss:$0 sm:$0xff] }
 0x144   : > { %s7271_s17 = sshll.u32 %s9974_s16, 6  ;;  %s6889_s5 = sshll.u32 %s9974_s16, 4 }
 0x145   : > { %s646_s27 = scalar_lea.vmem %s9928_s1, %s7271_s17 }
 0x146   : > { %v8188_v0 = vld [vmem:[%s646_s27] sm:$0xff]   ;;  %v8189_v1 = vld [vmem:[%s646_s27 + $0x8] sm:$0xff]   ;;  %v8190_v2 = vld [vmem:[%s646_s27 + $0x10] sm:$0xff]  }
 0x147   : > { %7361 = vmatprep.subr.bf16.mxu0 %v8188_v0  ;;  %s9033_s3 = scalar_lea.vmem %s9970_s14, %s7271_s17  ;;  %v8191_v3 = vld [vmem:[%s646_s27 + $0x18] sm:$0xff]   ;;  %v8192_v5 = vld [vmem:[%s646_s27 + $0x20] sm:$0xff]   ;;  %v8193_v6 = vld [vmem:[%s646_s27 + $0x28] sm:$0xff]  }
 0x148   : > { %7362 = vmatpush3.bf16.msra.mxu0 %v8188_v0  ;;  %v9036_v4 = vld [vmem:[%s9033_s3] sm:$0xff]   ;;  %v8194_v7 = vld [vmem:[%s646_s27 + $0x30] sm:$0xff]   ;;  %v8195_v8 = vld [vmem:[%s646_s27 + $0x38] sm:$0xff]   ;;  %s9913_s26 = scalar_lea.vmem %s9971_s15, %s6889_s5 }
 0x149   : > { %7363 = vmatprep.subr.bf16.mxu0 %v8189_v1  ;;  %7377 = vmatprep.mubr.bf16.mxu0 %v9036_v4  ;;  %v9041_v9 = vld [vmem:[%s9033_s3 + $0x8] sm:$0xff]   ;;  %v9044_v10 = vld [vmem:[%s9033_s3 + $0x10] sm:$0xff]   ;;  %v9049_v11 = vld [vmem:[%s9033_s3 + $0x18] sm:$0xff]  }
 0x14a   : > { %7409 = vmatprep.mubr.bf16.mxu1 %v9036_v4  ;;  %v9052_v12 = vld [vmem:[%s9033_s3 + $0x20] sm:$0xff]   ;;  %v9057_v13 = vld [vmem:[%s9033_s3 + $0x28] sm:$0xff]   ;;  %v9060_v14 = vld [vmem:[%s9033_s3 + $0x30] sm:$0xff]  }
 0x14b   : > { %v9065_v15 = vld [vmem:[%s9033_s3 + $0x38] sm:$0xff]  }
 0x14c   : > { %7364 = vmatpush3.bf16.msra.mxu0 %v8189_v1 }
 0x14d   : > { %7365 = vmatprep.subr.bf16.mxu0 %v8190_v2 }
 0x150   : > { %7366 = vmatpush3.bf16.msra.mxu0 %v8190_v2 }
 0x151   : > { %7367 = vmatprep.subr.bf16.mxu0 %v8191_v3 }
 0x154   : > { %7368 = vmatpush3.bf16.msra.mxu0 %v8191_v3 }
 0x155   : > { %7369 = vmatprep.subr.bf16.mxu0 %v8192_v5 }
 0x158   : > { %7370 = vmatpush3.bf16.msra.mxu0 %v8192_v5 }
 0x159   : > { %7371 = vmatprep.subr.bf16.mxu0 %v8193_v6 }
 0x15c   : > { %7372 = vmatpush3.bf16.msra.mxu0 %v8193_v6 }
 0x15d   : > { %7373 = vmatprep.subr.bf16.mxu0 %v8194_v7 }
 0x160   : > { %7374 = vmatpush3.bf16.msra.mxu0 %v8194_v7 }
 0x161   : > { %7375 = vmatprep.subr.bf16.mxu0 %v8195_v8 }
 0x164   : > { %7376 = vmatpush3.bf16.msra.mxu0 %v8195_v8 }
 0x165   : > { %7425 = vmatprep.subr.bf16.mxu0 %v8204_v16 }
 0x167   : > { %7378 = vmatmul.mubr.bf16.vlgmr.msra.gmra.mrb[0].mxu0 %v9041_v9 }
 0x168   : > { %7381 = vmatprep.mubr.bf16.mxu0 %v9044_v10  ;;  %7426 = vmatpush3.bf16.msra.mxu0 %v8204_v16 }
 0x169   : > { %7427 = vmatprep.subr.bf16.mxu0 %v8205_v17 }
 0x16c   : > { %7428 = vmatpush3.bf16.msra.mxu0 %v8205_v17 }
 0x16d   : > { %7429 = vmatprep.subr.bf16.mxu0 %v8206_v18 }
 0x16f   : > { %7382 = vmatmul.mubr.bf16.gmra.mrb[4].mxu0 %v9049_v11 }
 0x170   : > { %7385 = vmatprep.mubr.bf16.mxu0 %v9052_v12  ;;  %7430 = vmatpush3.bf16.msra.mxu0 %v8206_v18 }
 0x171   : > { %7431 = vmatprep.subr.bf16.mxu0 %v8207_v19 }
 0x174   : > { %7432 = vmatpush3.bf16.msra.mxu0 %v8207_v19 }
 0x177   : > { %7386 = vmatmul.mubr.bf16.gmra.mrb[8].mxu0 %v9057_v13 }
 0x178   : > { %7389 = vmatprep.mubr.bf16.mxu0 %v9060_v14 }
 0x17f   : > { %7390 = vmatmul.mubr.bf16.gmra.mrb[12].mxu0 %v9065_v15 }
 0x23a   : > { %v7379_v21 = vpop.f32.mrb[0].mxu0 }
 0x23b   : > { %v830_v22 = vadd.f32 %v7379_v21, %v9068_v20  ;;  %v821_v23 = vpop.f32.mrb[1].mxu0 }
 0x23c   : > { %v822_v24 = vadd.f32 %v9068_v20, %v821_v23  ;;  %v7380_v25 = vpop.f32.mrb[2].mxu0 }
 0x23d   : > { %v886_v26 = vmul.f32 0.2, %v830_v22  ;;  %v833_v27 = vadd.f32 %v7380_v25, %v9068_v20  ;;  %v824_v28 = vpop.f32.mrb[3].mxu0 }
 0x23e   : > { %v884_v29 = vmul.f32 0.2, %v822_v24  ;;  %v825_v30 = vadd.f32 %v9068_v20, %v824_v28 }
 0x23f   : > { %v887_v31 = vmul.f32 0.2, %v833_v27  ;;  %v902_v33 = vmax.f32 %v830_v22, %v886_v26 }
 0x240   : > { %v885_v32 = vmul.f32 0.2, %v825_v30  ;;  %v900_v35 = vmax.f32 %v822_v24, %v884_v29 }
 0x241   : > { %v903_v34 = vmax.f32 %v833_v27, %v887_v31 }
 0x242   : > { %v901_v36 = vmax.f32 %v825_v30, %v885_v32  ;;  %v7383_v37 = vpop.f32.mrb[4].mxu0 }
 0x243   : > { %v846_v38 = vadd.f32 %v7383_v37, %v9068_v20  ;;  %v837_v39 = vpop.f32.mrb[5].mxu0  ;;  %v917_v40 = vpack.c.bf16 %v903_v34, %v902_v33 }
 0x244   : > { %v838_v41 = vadd.f32 %v9068_v20, %v837_v39  ;;  %v7384_v42 = vpop.f32.mrb[6].mxu0  ;;  %v916_v43 = vpack.c.bf16 %v901_v36, %v900_v35 }
 0x245   : > { %v890_v44 = vmul.f32 0.2, %v846_v38  ;;  %v849_v45 = vadd.f32 %v7384_v42, %v9068_v20  ;;  %v840_v46 = vpop.f32.mrb[7].mxu0 }
 0x246   : > { %v888_v47 = vmul.f32 0.2, %v838_v41  ;;  %v841_v48 = vadd.f32 %v9068_v20, %v840_v46  ;;  %7393 = vmatprep.subr.bf16.mxu1 %v916_v43 }
 0x247   : > { %v891_v49 = vmul.f32 0.2, %v849_v45  ;;  %7394 = vmatpush3.bf16.msra.mxu1 %v916_v43  ;;  %v906_v51 = vmax.f32 %v846_v38, %v890_v44 }
 0x248   : > { %v889_v50 = vmul.f32 0.2, %v841_v48  ;;  %7395 = vmatprep.subr.bf16.mxu1 %v917_v40  ;;  %v904_v53 = vmax.f32 %v838_v41, %v888_v47 }
 0x249   : > { %v907_v52 = vmax.f32 %v849_v45, %v891_v49 }
 0x24a   : > { %v905_v54 = vmax.f32 %v841_v48, %v889_v50  ;;  %v7387_v55 = vpop.f32.mrb[8].mxu0 }
 0x24b   : > { %v862_v56 = vadd.f32 %v7387_v55, %v9068_v20  ;;  %v853_v57 = vpop.f32.mrb[9].mxu0  ;;  %7396 = vmatpush3.bf16.msra.mxu1 %v917_v40  ;;  %v919_v58 = vpack.c.bf16 %v907_v52, %v906_v51 }
 0x24c   : > { %v854_v59 = vadd.f32 %v9068_v20, %v853_v57  ;;  %v7388_v60 = vpop.f32.mrb[10].mxu0  ;;  %v918_v61 = vpack.c.bf16 %v905_v54, %v904_v53 }
 0x24d   : > { %v894_v62 = vmul.f32 0.2, %v862_v56  ;;  %v865_v63 = vadd.f32 %v7388_v60, %v9068_v20  ;;  %v856_v0 = vpop.f32.mrb[11].mxu0 }
 0x24e   : > { %v892_v1 = vmul.f32 0.2, %v854_v59  ;;  %v857_v2 = vadd.f32 %v9068_v20, %v856_v0  ;;  %7397 = vmatprep.subr.bf16.mxu1 %v918_v61  ;;  %v8211_v0 = vld [vmem:[#allocation7 + $0x18] sm:$0xff]  }
 0x24f   : > { %v895_v3 = vmul.f32 0.2, %v865_v63  ;;  %7398 = vmatpush3.bf16.msra.mxu1 %v918_v61  ;;  %v910_v6 = vmax.f32 %v862_v56, %v894_v62  ;;  %v8208_v61 = vld [vmem:[#allocation7] sm:$0xff]   ;;  %v8209_v62 = vld [vmem:[#allocation7 + $0x8] sm:$0xff]  }
 0x250   : > { %v893_v5 = vmul.f32 0.2, %v857_v2  ;;  %7399 = vmatprep.subr.bf16.mxu1 %v919_v58  ;;  %v908_v8 = vmax.f32 %v854_v59, %v892_v1  ;;  %7481 = vmatprep.subr.bf16.mxu0 %v8208_v61  ;;  %v9126_v1 = vld [vmem:[#allocation6] ss:$0 sm:$0xff] }
 0x251   : > { %v911_v7 = vmax.f32 %v865_v63, %v895_v3  ;;  %v8210_v63 = vld [vmem:[#allocation7 + $0x10] sm:$0xff]  }
 0x252   : > { %v909_v16 = vmax.f32 %v857_v2, %v893_v5  ;;  %v7391_v17 = vpop.f32.mrb[12].mxu0 }
 0x253   : > { %v878_v18 = vadd.f32 %v7391_v17, %v9068_v20  ;;  %v869_v19 = vpop.f32.mrb[13].mxu0  ;;  %7400 = vmatpush3.bf16.msra.mxu1 %v919_v58  ;;  %v921_v21 = vpack.c.bf16 %v911_v7, %v910_v6 }
 0x254   : > { %v870_v22 = vadd.f32 %v9068_v20, %v869_v19  ;;  %v7392_v23 = vpop.f32.mrb[14].mxu0  ;;  %v920_v24 = vpack.c.bf16 %v909_v16, %v908_v8 }
 0x255   : > { %v898_v25 = vmul.f32 0.2, %v878_v18  ;;  %v881_v26 = vadd.f32 %v7392_v23, %v9068_v20  ;;  %v872_v27 = vpop.f32.mrb[15].mxu0 }
 0x256   : > { %v896_v28 = vmul.f32 0.2, %v870_v22  ;;  %v873_v29 = vadd.f32 %v9068_v20, %v872_v27  ;;  %7401 = vmatprep.subr.bf16.mxu1 %v920_v24 }
 0x257   : > { %v899_v30 = vmul.f32 0.2, %v881_v26  ;;  %7402 = vmatpush3.bf16.msra.mxu1 %v920_v24  ;;  %v914_v32 = vmax.f32 %v878_v18, %v898_v25 }
 0x258   : > { %v897_v31 = vmul.f32 0.2, %v873_v29  ;;  %7403 = vmatprep.subr.bf16.mxu1 %v921_v21  ;;  %v912_v34 = vmax.f32 %v870_v22, %v896_v28 }
 0x259   : > { %v915_v33 = vmax.f32 %v881_v26, %v899_v30 }
 0x25a   : > { %v913_v35 = vmax.f32 %v873_v29, %v897_v31 }
 0x25b   : > { %7404 = vmatpush3.bf16.msra.mxu1 %v921_v21  ;;  %v923_v36 = vpack.c.bf16 %v915_v33, %v914_v32 }
 0x25c   : > { %v922_v37 = vpack.c.bf16 %v913_v35, %v912_v34 }
 0x25e   : > { %7405 = vmatprep.subr.bf16.mxu1 %v922_v37 }
 0x25f   : > { %7406 = vmatpush3.bf16.msra.mxu1 %v922_v37 }
 0x260   : > { %7407 = vmatprep.subr.bf16.mxu1 %v923_v36 }
 0x263   : > { %7408 = vmatpush3.bf16.msra.mxu1 %v923_v36 }
 0x266   : > { %7410 = vmatmul.mubr.bf16.vlgmr.msra.gmra.mrb[0].mxu1 %v9041_v9 }
 0x267   : > { %7413 = vmatprep.mubr.bf16.mxu1 %v9044_v10 }
 0x26e   : > { %7414 = vmatmul.mubr.bf16.gmra.mrb[4].mxu1 %v9049_v11 }
 0x26f   : > { %7417 = vmatprep.mubr.bf16.mxu1 %v9052_v12 }
 0x276   : > { %7418 = vmatmul.mubr.bf16.gmra.mrb[8].mxu1 %v9057_v13 }
 0x277   : > { %7421 = vmatprep.mubr.bf16.mxu1 %v9060_v14 }
 0x27e   : > { %7422 = vmatmul.mubr.bf16.gmra.mrb[12].mxu1 %v9065_v15 }
 0x27f   : > { %7465 = vmatprep.mubr.bf16.mxu1 %v9036_v4 }
 0x339   : > { %v7411_v20 = vpop.f32.mrb[0].mxu1 }
 0x33a   : > { %v958_v38 = vpop.f32.mrb[1].mxu1 }
 0x33b   : > { %v7412_v39 = vpop.f32.mrb[2].mxu1 }
 0x33c   : > { %v9094_v40 = vpack.c.bf16 %v7412_v39, %v7411_v20  ;;  %v961_v41 = vpop.f32.mrb[3].mxu1 }
 0x33d   : > { %v9096_v42 = vpack.c.bf16 %v961_v41, %v958_v38 }
 0x33f   : > { %7433 = vmatprep.mubr.msk.bf16.mxu0 %vm1068_vm0, %v9096_v42 }
 0x340   : > { %7434 = vmatmul.mubr.msk.bf16.vlgmr.msra.gmra.mrb[16].mxu0 %vm1068_vm0, %v9094_v40 }
 0x341   : > { %v7415_v43 = vpop.f32.mrb[4].mxu1  ;;  %7482 = vmatpush3.bf16.msra.mxu0 %v8208_v61 }
 0x342   : > { %v974_v44 = vpop.f32.mrb[5].mxu1  ;;  %7483 = vmatprep.subr.bf16.mxu0 %v8209_v62 }
 0x343   : > { %v7416_v45 = vpop.f32.mrb[6].mxu1 }
 0x344   : > { %v9102_v46 = vpack.c.bf16 %v7416_v45, %v7415_v43  ;;  %v977_v47 = vpop.f32.mrb[7].mxu1 }
 0x345   : > { %v9104_v48 = vpack.c.bf16 %v977_v47, %v974_v44  ;;  %7484 = vmatpush3.bf16.msra.mxu0 %v8209_v62 }
 0x346   : > { %7485 = vmatprep.subr.bf16.mxu0 %v8210_v63 }
 0x347   : > { %7437 = vmatprep.mubr.msk.bf16.mxu0 %vm1068_vm0, %v9104_v48 }
 0x348   : > { %7438 = vmatmul.mubr.msk.bf16.gmra.mrb[20].mxu0 %vm1068_vm0, %v9102_v46 }
 0x349   : > { %v7419_v49 = vpop.f32.mrb[8].mxu1  ;;  %7486 = vmatpush3.bf16.msra.mxu0 %v8210_v63 }
 0x34a   : > { %v990_v50 = vpop.f32.mrb[9].mxu1  ;;  %7487 = vmatprep.subr.bf16.mxu0 %v8211_v0 }
 0x34b   : > { %v7420_v51 = vpop.f32.mrb[10].mxu1 }
 0x34c   : > { %v9110_v52 = vpack.c.bf16 %v7420_v51, %v7419_v49  ;;  %v993_v53 = vpop.f32.mrb[11].mxu1 }
 0x34d   : > { %v9112_v54 = vpack.c.bf16 %v993_v53, %v990_v50  ;;  %7488 = vmatpush3.bf16.msra.mxu0 %v8211_v0 }
 0x34f   : > { %7441 = vmatprep.mubr.msk.bf16.mxu0 %vm1068_vm0, %v9112_v54 }
 0x350   : > { %7442 = vmatmul.mubr.msk.bf16.gmra.mrb[24].mxu0 %vm1068_vm0, %v9110_v52 }
 0x351   : > { %v7423_v55 = vpop.f32.mrb[12].mxu1 }
 0x352   : > { %v1006_v56 = vpop.f32.mrb[13].mxu1 }
 0x353   : > { %v7424_v57 = vpop.f32.mrb[14].mxu1 }
 0x354   : > { %v9118_v58 = vpack.c.bf16 %v7424_v57, %v7423_v55  ;;  %v1009_v59 = vpop.f32.mrb[15].mxu1 }
 0x355   : > { %v9120_v60 = vpack.c.bf16 %v1009_v59, %v1006_v56 }
 0x357   : > { %7445 = vmatprep.mubr.msk.bf16.mxu0 %vm1068_vm0, %v9120_v60 }
 0x358   : > { %7446 = vmatmul.mubr.msk.bf16.gmra.mrb[28].mxu0 %vm1068_vm0, %v9118_v58 }
 0x413   : > { %v7435_v2 = vpop.f32.mrb[16].mxu0 }
 0x414   : > { %v1136_v3 = vadd.f32 %v7435_v2, %v9126_v1  ;;  %v1127_v5 = vpop.f32.mrb[17].mxu0 }
 0x415   : > { %v1128_v6 = vadd.f32 %v9126_v1, %v1127_v5  ;;  %v7436_v7 = vpop.f32.mrb[18].mxu0 }
 0x416   : > { %v1192_v8 = vmul.f32 0.2, %v1136_v3  ;;  %v1139_v16 = vadd.f32 %v7436_v7, %v9126_v1  ;;  %v1130_v17 = vpop.f32.mrb[19].mxu0 }
 0x417   : > { %v1190_v18 = vmul.f32 0.2, %v1128_v6  ;;  %v1131_v19 = vadd.f32 %v9126_v1, %v1130_v17 }
 0x418   : > { %v1193_v21 = vmul.f32 0.2, %v1139_v16  ;;  %v1208_v23 = vmax.f32 %v1136_v3, %v1192_v8 }
 0x419   : > { %v1191_v22 = vmul.f32 0.2, %v1131_v19  ;;  %v1206_v25 = vmax.f32 %v1128_v6, %v1190_v18 }
 0x41a   : > { %v1209_v24 = vmax.f32 %v1139_v16, %v1193_v21 }
 0x41b   : > { %v1207_v26 = vmax.f32 %v1131_v19, %v1191_v22  ;;  %v7439_v27 = vpop.f32.mrb[20].mxu0 }
 0x41c   : > { %v1152_v28 = vadd.f32 %v7439_v27, %v9126_v1  ;;  %v1143_v29 = vpop.f32.mrb[21].mxu0  ;;  %v1223_v30 = vpack.c.bf16 %v1209_v24, %v1208_v23 }
 0x41d   : > { %v1144_v31 = vadd.f32 %v9126_v1, %v1143_v29  ;;  %v7440_v32 = vpop.f32.mrb[22].mxu0  ;;  %v1222_v33 = vpack.c.bf16 %v1207_v26, %v1206_v25 }
 0x41e   : > { %v1196_v34 = vmul.f32 0.2, %v1152_v28  ;;  %v1155_v35 = vadd.f32 %v7440_v32, %v9126_v1  ;;  %v1146_v36 = vpop.f32.mrb[23].mxu0 }
 0x41f   : > { %v1194_v37 = vmul.f32 0.2, %v1144_v31  ;;  %v1147_v20 = vadd.f32 %v9126_v1, %v1146_v36  ;;  %7449 = vmatprep.subr.bf16.mxu1 %v1222_v33 }
 0x420   : > { %v1197_v38 = vmul.f32 0.2, %v1155_v35  ;;  %7450 = vmatpush3.bf16.msra.mxu1 %v1222_v33  ;;  %v1212_v41 = vmax.f32 %v1152_v28, %v1196_v34 }
 0x421   : > { %v1195_v39 = vmul.f32 0.2, %v1147_v20  ;;  %7451 = vmatprep.subr.bf16.mxu1 %v1223_v30  ;;  %v1210_v44 = vmax.f32 %v1144_v31, %v1194_v37 }
 0x422   : > { %v1213_v43 = vmax.f32 %v1155_v35, %v1197_v38 }
 0x423   : > { %v1211_v45 = vmax.f32 %v1147_v20, %v1195_v39  ;;  %v7443_v47 = vpop.f32.mrb[24].mxu0 }
 0x424   : > { %v1168_v49 = vadd.f32 %v7443_v47, %v9126_v1  ;;  %v1159_v50 = vpop.f32.mrb[25].mxu0  ;;  %7452 = vmatpush3.bf16.msra.mxu1 %v1223_v30  ;;  %v1225_v51 = vpack.c.bf16 %v1213_v43, %v1212_v41 }
 0x425   : > { %v1160_v53 = vadd.f32 %v9126_v1, %v1159_v50  ;;  %v7444_v55 = vpop.f32.mrb[26].mxu0  ;;  %v1224_v56 = vpack.c.bf16 %v1211_v45, %v1210_v44 }
 0x426   : > { %v1200_v57 = vmul.f32 0.2, %v1168_v49  ;;  %v1171_v59 = vadd.f32 %v7444_v55, %v9126_v1  ;;  %v1162_v61 = vpop.f32.mrb[27].mxu0 }
 0x427   : > { %v1198_v62 = vmul.f32 0.2, %v1160_v53  ;;  %v1163_v63 = vadd.f32 %v9126_v1, %v1162_v61  ;;  %7453 = vmatprep.subr.bf16.mxu1 %v1224_v56 }
 0x428   : > { %v1201_v0 = vmul.f32 0.2, %v1171_v59  ;;  %7454 = vmatpush3.bf16.msra.mxu1 %v1224_v56  ;;  %v1216_v3 = vmax.f32 %v1168_v49, %v1200_v57 }
 0x429   : > { %v1199_v2 = vmul.f32 0.2, %v1163_v63  ;;  %7455 = vmatprep.subr.bf16.mxu1 %v1225_v51  ;;  %v1214_v6 = vmax.f32 %v1160_v53, %v1198_v62 }
 0x42a   : > { %v1217_v5 = vmax.f32 %v1171_v59, %v1201_v0 }
 0x42b   : > { %v1215_v7 = vmax.f32 %v1163_v63, %v1199_v2  ;;  %v7447_v8 = vpop.f32.mrb[28].mxu0  ;;  %v8212_v2 = vld [vmem:[#allocation10] ss:$8 sps:$4 sm:$0xff]  }
 0x42c   : > { %v1184_v16 = vadd.f32 %v7447_v8, %v9126_v1  ;;  %v1175_v17 = vpop.f32.mrb[29].mxu0  ;;  %7456 = vmatpush3.bf16.msra.mxu1 %v1225_v51  ;;  %v1227_v18 = vpack.c.bf16 %v1217_v5, %v1216_v3  ;;  %v8214_v3 = vld [vmem:[#allocation10 + $0x4] ss:$8 sps:$4 sm:$0xff]   ;;  %v8217_v5 = vld [vmem:[#allocation10 + $0x14] ss:$8 sps:$4 sm:$0xff]  }
 0x42d   : > { %v1176_v19 = vadd.f32 %v9126_v1, %v1175_v17  ;;  %v7448_v21 = vpop.f32.mrb[30].mxu0  ;;  %v1226_v22 = vpack.c.bf16 %v1215_v7, %v1214_v6  ;;  %1748 = vmatprep.subr.bf16.mxu0 %v8214_v3  ;;  %v8215_v6 = vld [vmem:[#allocation10 + $0x10] ss:$8 sps:$4 sm:$0xff]   ;;  %v8220_v7 = vld [vmem:[#allocation10 + $0x24] ss:$8 sps:$4 sm:$0xff]  }
 0x42e   : > { %v1204_v23 = vmul.f32 0.2, %v1184_v16  ;;  %v1187_v24 = vadd.f32 %v7448_v21, %v9126_v1  ;;  %v1178_v25 = vpop.f32.mrb[31].mxu0  ;;  %v8218_v8 = vld [vmem:[#allocation10 + $0x20] ss:$8 sps:$4 sm:$0xff]  }
 0x42f   : > { %v1202_v26 = vmul.f32 0.2, %v1176_v19  ;;  %v1179_v27 = vadd.f32 %v9126_v1, %v1178_v25  ;;  %7457 = vmatprep.subr.bf16.mxu1 %v1226_v22  ;;  %v8221_v17 = vld [vmem:[#allocation10 + $0x30] ss:$8 sps:$4 sm:$0xff]   ;;  %v8229_v21 = vld [vmem:[#allocation10 + $0x54] ss:$8 sps:$4 sm:$0xff]  }
 0x430   : > { %v1205_v28 = vmul.f32 0.2, %v1187_v24  ;;  %7458 = vmatpush3.bf16.msra.mxu1 %v1226_v22  ;;  %v1220_v30 = vmax.f32 %v1184_v16, %v1204_v23  ;;  %v8223_v16 = vld [vmem:[#allocation10 + $0x34] ss:$8 sps:$4 sm:$0xff]   ;;  %v8227_v22 = vld [vmem:[#allocation10 + $0x50] ss:$8 sps:$4 sm:$0xff]  }
 0x431   : > { %v1203_v29 = vmul.f32 0.2, %v1179_v27  ;;  %7459 = vmatprep.subr.bf16.mxu1 %v1227_v18  ;;  %v1218_v32 = vmax.f32 %v1176_v19, %v1202_v26  ;;  %v8224_v19 = vld [vmem:[#allocation10 + $0x40] ss:$8 sps:$4 sm:$0xff]   ;;  %v8232_v23 = vld [vmem:[#allocation10 + $0x64] ss:$8 sps:$4 sm:$0xff]  }
 0x432   : > { %v1221_v31 = vmax.f32 %v1187_v24, %v1205_v28  ;;  %v8230_v24 = vld [vmem:[#allocation10 + $0x60] ss:$8 sps:$4 sm:$0xff]   ;;  %v9184_v25 = vld [vmem:[#allocation9] ss:$0 sm:$0xff] }
 0x433   : > { %v1219_v33 = vmax.f32 %v1179_v27, %v1203_v29 }
 0x434   : > { %7460 = vmatpush3.bf16.msra.mxu1 %v1227_v18  ;;  %v1229_v34 = vpack.c.bf16 %v1221_v31, %v1220_v30  ;;  %v8226_v18 = vld [vmem:[#allocation10 + $0x44] ss:$8 sps:$4 sm:$0xff]  }
 0x435   : > { %v1228_v35 = vpack.c.bf16 %v1219_v33, %v1218_v32 }
 0x437   : > { %7461 = vmatprep.subr.bf16.mxu1 %v1228_v35 }
 0x438   : > { %7462 = vmatpush3.bf16.msra.mxu1 %v1228_v35 }
 0x439   : > { %7463 = vmatprep.subr.bf16.mxu1 %v1229_v34 }
 0x43c   : > { %7464 = vmatpush3.bf16.msra.mxu1 %v1229_v34 }
 0x43f   : > { %7466 = vmatmul.mubr.bf16.vlgmr.msra.gmra.mrb[16].mxu1 %v9041_v9 }
 0x440   : > { %7469 = vmatprep.mubr.bf16.mxu1 %v9044_v10 }
 0x447   : > { %7470 = vmatmul.mubr.bf16.gmra.mrb[20].mxu1 %v9049_v11 }
 0x448   : > { %7473 = vmatprep.mubr.bf16.mxu1 %v9052_v12 }
 0x44f   : > { %7474 = vmatmul.mubr.bf16.gmra.mrb[24].mxu1 %v9057_v13 }
 0x450   : > { %7477 = vmatprep.mubr.bf16.mxu1 %v9060_v14 }
 0x457   : > { %7478 = vmatmul.mubr.bf16.gmra.mrb[28].mxu1 %v9065_v15 }
 0x458   : > { %7521 = vmatprep.mubr.bf16.mxu1 %v9036_v4 }
 0x512   : > { %v7467_v1 = vpop.f32.mrb[16].mxu1 }
 0x513   : > { %v1264_v36 = vpop.f32.mrb[17].mxu1 }
 0x514   : > { %v7468_v37 = vpop.f32.mrb[18].mxu1 }
 0x515   : > { %v9152_v20 = vpack.c.bf16 %v7468_v37, %v7467_v1  ;;  %v1267_v38 = vpop.f32.mrb[19].mxu1 }
 0x516   : > { %v9154_v39 = vpack.c.bf16 %v1267_v38, %v1264_v36 }
 0x518   : > { %7489 = vmatprep.mubr.msk.bf16.mxu0 %vm1068_vm0, %v9154_v39 }
 0x519   : > { %7490 = vmatmul.mubr.msk.bf16.vlgmr.msra.gmra.mrb[32].mxu0 %vm1068_vm0, %v9152_v20 }
 0x51a   : > { %v7471_v41 = vpop.f32.mrb[20].mxu1  ;;  %1749 = vmatpush1.bf16.msra.mxu0 %v8212_v2 }
 0x51b   : > { %v1280_v43 = vpop.f32.mrb[21].mxu1  ;;  %1750 = vmatprep.subr.bf16.mxu0 %v8217_v5 }
 0x51c   : > { %v7472_v44 = vpop.f32.mrb[22].mxu1 }
 0x51d   : > { %v9160_v45 = vpack.c.bf16 %v7472_v44, %v7471_v41  ;;  %v1283_v4 = vpop.f32.mrb[23].mxu1 }
 0x51e   : > { %v9162_v47 = vpack.c.bf16 %v1283_v4, %v1280_v43  ;;  %1751 = vmatpush1.bf16.msra.mxu0 %v8215_v6 }
 0x51f   : > { %1752 = vmatprep.subr.bf16.mxu0 %v8220_v7 }
 0x520   : > { %7493 = vmatprep.mubr.msk.bf16.mxu0 %vm1068_vm0, %v9162_v47 }
 0x521   : > { %7494 = vmatmul.mubr.msk.bf16.gmra.mrb[36].mxu0 %vm1068_vm0, %v9160_v45 }
 0x522   : > { %v7475_v49 = vpop.f32.mrb[24].mxu1  ;;  %1753 = vmatpush1.bf16.msra.mxu0 %v8218_v8 }
 0x523   : > { %v1296_v50 = vpop.f32.mrb[25].mxu1  ;;  %1754 = vmatprep.subr.bf16.mxu0 %v8223_v16 }
 0x524   : > { %v7476_v51 = vpop.f32.mrb[26].mxu1 }
 0x525   : > { %v9168_v53 = vpack.c.bf16 %v7476_v51, %v7475_v49  ;;  %v1299_v55 = vpop.f32.mrb[27].mxu1 }
 0x526   : > { %v9170_v56 = vpack.c.bf16 %v1299_v55, %v1296_v50  ;;  %1755 = vmatpush1.bf16.msra.mxu0 %v8221_v17 }
 0x527   : > { %1756 = vmatprep.subr.bf16.mxu0 %v8226_v18 }
 0x528   : > { %7497 = vmatprep.mubr.msk.bf16.mxu0 %vm1068_vm0, %v9170_v56 }
 0x529   : > { %7498 = vmatmul.mubr.msk.bf16.gmra.mrb[40].mxu0 %vm1068_vm0, %v9168_v53 }
 0x52a   : > { %v7479_v57 = vpop.f32.mrb[28].mxu1  ;;  %1757 = vmatpush1.bf16.msra.mxu0 %v8224_v19 }
 0x52b   : > { %v1312_v59 = vpop.f32.mrb[29].mxu1  ;;  %1758 = vmatprep.subr.bf16.mxu0 %v8229_v21 }
 0x52c   : > { %v7480_v61 = vpop.f32.mrb[30].mxu1 }
 0x52d   : > { %v9176_v62 = vpack.c.bf16 %v7480_v61, %v7479_v57  ;;  %v1315_v63 = vpop.f32.mrb[31].mxu1 }
 0x52e   : > { %v9178_v0 = vpack.c.bf16 %v1315_v63, %v1312_v59  ;;  %1759 = vmatpush1.bf16.msra.mxu0 %v8227_v22 }
 0x52f   : > { %1760 = vmatprep.subr.bf16.mxu0 %v8232_v23 }
 0x530   : > { %7501 = vmatprep.mubr.msk.bf16.mxu0 %vm1068_vm0, %v9178_v0 }
 0x531   : > { %7502 = vmatmul.mubr.msk.bf16.gmra.mrb[44].mxu0 %vm1068_vm0, %v9176_v62 }
 0x532   : > { %1761 = vmatpush1.bf16.msra.mxu0 %v8230_v24 }
 0x5ec   : > { %v7491_v26 = vpop.f32.mrb[32].mxu0 }
 0x5ed   : > { %v1441_v27 = vadd.f32 %v7491_v26, %v9184_v25  ;;  %v1432_v28 = vpop.f32.mrb[33].mxu0 }
 0x5ee   : > { %v1433_v29 = vadd.f32 %v9184_v25, %v1432_v28  ;;  %v7492_v30 = vpop.f32.mrb[34].mxu0 }
 0x5ef   : > { %v1497_v31 = vmul.f32 0.2, %v1441_v27  ;;  %v1444_v32 = vadd.f32 %v7492_v30, %v9184_v25  ;;  %v1435_v33 = vpop.f32.mrb[35].mxu0 }
 0x5f0   : > { %v1495_v34 = vmul.f32 0.2, %v1433_v29  ;;  %v1436_v35 = vadd.f32 %v9184_v25, %v1435_v33 }
 0x5f1   : > { %v1498_v1 = vmul.f32 0.2, %v1444_v32  ;;  %v1513_v37 = vmax.f32 %v1441_v27, %v1497_v31 }
 0x5f2   : > { %v1496_v36 = vmul.f32 0.2, %v1436_v35  ;;  %v1511_v41 = vmax.f32 %v1433_v29, %v1495_v34 }
 0x5f3   : > { %v1514_v38 = vmax.f32 %v1444_v32, %v1498_v1 }
 0x5f4   : > { %v1512_v43 = vmax.f32 %v1436_v35, %v1496_v36  ;;  %v7495_v44 = vpop.f32.mrb[36].mxu0 }
 0x5f5   : > { %v1457_v4 = vadd.f32 %v7495_v44, %v9184_v25  ;;  %v1448_v49 = vpop.f32.mrb[37].mxu0  ;;  %v1528_v50 = vpack.c.bf16 %v1514_v38, %v1513_v37 }
 0x5f6   : > { %v1449_v51 = vadd.f32 %v9184_v25, %v1448_v49  ;;  %v7496_v55 = vpop.f32.mrb[38].mxu0  ;;  %v1527_v57 = vpack.c.bf16 %v1512_v43, %v1511_v41 }
 0x5f7   : > { %v1501_v59 = vmul.f32 0.2, %v1457_v4  ;;  %v1460_v61 = vadd.f32 %v7496_v55, %v9184_v25  ;;  %v1451_v63 = vpop.f32.mrb[39].mxu0 }
 0x5f8   : > { %v1499_v2 = vmul.f32 0.2, %v1449_v51  ;;  %v1452_v3 = vadd.f32 %v9184_v25, %v1451_v63  ;;  %7505 = vmatprep.subr.bf16.mxu1 %v1527_v57 }
 0x5f9   : > { %v1502_v5 = vmul.f32 0.2, %v1460_v61  ;;  %7506 = vmatpush3.bf16.msra.mxu1 %v1527_v57  ;;  %v1517_v7 = vmax.f32 %v1457_v4, %v1501_v59 }
 0x5fa   : > { %v1500_v6 = vmul.f32 0.2, %v1452_v3  ;;  %7507 = vmatprep.subr.bf16.mxu1 %v1528_v50  ;;  %v1515_v16 = vmax.f32 %v1449_v51, %v1499_v2 }
 0x5fb   : > { %v1518_v8 = vmax.f32 %v1460_v61, %v1502_v5 }
 0x5fc   : > { %v1516_v17 = vmax.f32 %v1452_v3, %v1500_v6  ;;  %v7499_v18 = vpop.f32.mrb[40].mxu0 }
 0x5fd   : > { %v1473_v19 = vadd.f32 %v7499_v18, %v9184_v25  ;;  %v1464_v21 = vpop.f32.mrb[41].mxu0  ;;  %7508 = vmatpush3.bf16.msra.mxu1 %v1528_v50  ;;  %v1530_v22 = vpack.c.bf16 %v1518_v8, %v1517_v7 }
 0x5fe   : > { %v1465_v23 = vadd.f32 %v9184_v25, %v1464_v21  ;;  %v7500_v24 = vpop.f32.mrb[42].mxu0  ;;  %v1529_v26 = vpack.c.bf16 %v1516_v17, %v1515_v16  ;;  %v8233_v16 = vld [vmem:[#allocation10 + $0x70] ss:$8 sps:$4 sm:$0xff]   ;;  %v8635_v17 = vmov 0  }
 0x5ff   : > { %v1505_v27 = vmul.f32 0.2, %v1473_v19  ;;  %v1476_v28 = vadd.f32 %v7500_v24, %v9184_v25  ;;  %v1467_v29 = vpop.f32.mrb[43].mxu0  ;;  %1780 = vmatprep.mubr.bf16.mxu0 %v8635_v17 }
 0x600   : > { %v1503_v30 = vmul.f32 0.2, %v1465_v23  ;;  %v1468_v31 = vadd.f32 %v9184_v25, %v1467_v29  ;;  %7509 = vmatprep.subr.bf16.mxu1 %v1529_v26 }
 0x601   : > { %v1506_v32 = vmul.f32 0.2, %v1476_v28  ;;  %7510 = vmatpush3.bf16.msra.mxu1 %v1529_v26  ;;  %v1521_v34 = vmax.f32 %v1473_v19, %v1505_v27  ;;  %v2094_v19 = vld [vmem:[#allocation15 + $0x40] sm:$0xff] }
 0x602   : > { %v1504_v33 = vmul.f32 0.2, %v1468_v31  ;;  %7511 = vmatprep.subr.bf16.mxu1 %v1530_v22  ;;  %v1519_v1 = vmax.f32 %v1465_v23, %v1503_v30  ;;  %v2102_v26 = vld [vmem:[#allocation15 + $0x80] sm:$0xff] }
 0x603   : > { %v1522_v35 = vmax.f32 %v1476_v28, %v1506_v32  ;;  %v2106_v27 = vld [vmem:[#allocation15 + $0xa0] sm:$0xff] }
 0x604   : > { %v1520_v36 = vmax.f32 %v1468_v31, %v1504_v33  ;;  %v7503_v37 = vpop.f32.mrb[44].mxu0  ;;  %v6966_v30 = vcombine.high %v2102_v26, %v2106_v27  ;;  %v2110_v32 = vld [vmem:[#allocation15 + $0xc0] sm:$0xff] }
 0x605   : > { %v1489_v38 = vadd.f32 %v7503_v37, %v9184_v25  ;;  %v1480_v41 = vpop.f32.mrb[45].mxu0  ;;  %7512 = vmatpush3.bf16.msra.mxu1 %v1530_v22  ;;  %v1532_v43 = vpack.c.bf16 %v1522_v35, %v1521_v34  ;;  %v2114_v33 = vld [vmem:[#allocation15 + $0xe0] sm:$0xff] }
 0x606   : > { %v1481_v44 = vadd.f32 %v9184_v25, %v1480_v41  ;;  %v7504_v4 = vpop.f32.mrb[46].mxu0  ;;  %v1531_v49 = vpack.c.bf16 %v1520_v36, %v1519_v1  ;;  %v6965_v36 = vcombine.low %v2102_v26, %v2106_v27  ;;  %v2088_v41 = vld [vmem:[#allocation15 + $0x10] sm:$0xff]  ;;  %v2062_v27 = vld [vmem:[#allocation13 + $0x40] sm:$0xff] }
 0x607   : > { %v1509_v50 = vmul.f32 0.2, %v1489_v38  ;;  %v1492_v51 = vadd.f32 %v7504_v4, %v9184_v25  ;;  %v1483_v55 = vpop.f32.mrb[47].mxu0 }
 0x608   : > { %v1507_v57 = vmul.f32 0.2, %v1481_v44  ;;  %v1484_v59 = vadd.f32 %v9184_v25, %v1483_v55  ;;  %7513 = vmatprep.subr.bf16.mxu1 %v1531_v49  ;;  %v8235_v25 = vld [vmem:[#allocation10 + $0x74] ss:$8 sps:$4 sm:$0xff]  }
 0x609   : > { %v1510_v61 = vmul.f32 0.2, %v1492_v51  ;;  %7514 = vmatpush3.bf16.msra.mxu1 %v1531_v49  ;;  %v1525_v2 = vmax.f32 %v1489_v38, %v1509_v50  ;;  %1762 = vmatprep.subr.bf16.mxu0 %v8235_v25  ;;  %v6974_v38 = vcombine.high %v2110_v32, %v2114_v33 }
 0x60a   : > { %v1508_v63 = vmul.f32 0.2, %v1484_v59  ;;  %7515 = vmatprep.subr.bf16.mxu1 %v1532_v43  ;;  %v1523_v5 = vmax.f32 %v1481_v44, %v1507_v57  ;;  %1763 = vmatpush1.bf16.msra.mxu0 %v8233_v16  ;;  %v6973_v44 = vcombine.low %v2110_v32, %v2114_v33  ;;  %v2074_v32 = vld [vmem:[#allocation13 + $0xa0] sm:$0xff] }
 0x60b   : > { %v1526_v3 = vmax.f32 %v1492_v51, %v1510_v61 }
 0x60c   : > { %v1524_v6 = vmax.f32 %v1484_v59, %v1508_v63 }
 0x60d   : > { %7516 = vmatpush3.bf16.msra.mxu1 %v1532_v43  ;;  %v1534_v7 = vpack.c.bf16 %v1526_v3, %v1525_v2  ;;  %v2092_v43 = vld [vmem:[#allocation15 + $0x30] sm:$0xff] }
 0x60e   : > { %v1533_v8 = vpack.c.bf16 %v1524_v6, %v1523_v5  ;;  %v6954_v49 = vcombine.high %v2088_v41, %v2092_v43  ;;  %v6953_v25 = vcombine.low %v2088_v41, %v2092_v43  ;;  %v2056_v43 = vld [vmem:[#allocation13 + $0x10] sm:$0xff] }
 0x610   : > { %7517 = vmatprep.subr.bf16.mxu1 %v1533_v8 }
 0x611   : > { %7518 = vmatpush3.bf16.msra.mxu1 %v1533_v8  ;;  %v2100_v8 = vld [vmem:[#allocation15 + $0x70] sm:$0xff] }
 0x612   : > { %7519 = vmatprep.subr.bf16.mxu1 %v1534_v7 }
 0x615   : > { %7520 = vmatpush3.bf16.msra.mxu1 %v1534_v7  ;;  %v2096_v7 = vld [vmem:[#allocation15 + $0x50] sm:$0xff] }
 0x616   : > { %v6962_v16 = vcombine.high %v2096_v7, %v2100_v8 }
 0x618   : > { %7522 = vmatmul.mubr.bf16.vlgmr.msra.gmra.mrb[32].mxu1 %v9041_v9  ;;  %v2086_v9 = vld [vmem:[#allocation15] sm:$0xff] }
 0x619   : > { %7525 = vmatprep.mubr.bf16.mxu1 %v9044_v10  ;;  %v2090_v10 = vld [vmem:[#allocation15 + $0x20] sm:$0xff] }
 0x61a   : > { %v6949_v18 = vcombine.low %v2086_v9, %v2090_v10 }
 0x620   : > { %7526 = vmatmul.mubr.bf16.gmra.mrb[36].mxu1 %v9049_v11  ;;  %v6950_v11 = vcombine.high %v2086_v9, %v2090_v10  ;;  %v2104_v9 = vld [vmem:[#allocation15 + $0x90] sm:$0xff] }
 0x621   : > { %7529 = vmatprep.mubr.bf16.mxu1 %v9052_v12  ;;  %v2108_v10 = vld [vmem:[#allocation15 + $0xb0] sm:$0xff] }
 0x622   : > { %2278 = vmatprep.subr.bf16.mxu0 %v6950_v11  ;;  %v6961_v11 = vcombine.low %v2096_v7, %v2100_v8  ;;  %v2080_v8 = vld [vmem:[#allocation13 + $0xd0] sm:$0xff] }
 0x628   : > { %7530 = vmatmul.mubr.bf16.gmra.mrb[40].mxu1 %v9057_v13 }
 0x629   : > { %7533 = vmatprep.mubr.bf16.mxu1 %v9060_v14  ;;  %v2098_v14 = vld [vmem:[#allocation15 + $0x60] sm:$0xff] }
 0x62a   : > { %v6958_v24 = vcombine.high %v2094_v19, %v2098_v14  ;;  %v6957_v28 = vcombine.low %v2094_v19, %v2098_v14  ;;  %v6969_v19 = vcombine.low %v2104_v9, %v2108_v10 }
 0x630   : > { %7534 = vmatmul.mubr.bf16.gmra.mrb[44].mxu1 %v9065_v15 }
 0x631   : > { %1973 = vmatprep.mubr.bf16.mxu1 %v8635_v17 }
 0x6eb   : > { %v7523_v12 = vpop.f32.mrb[32].mxu1 }
 0x6ec   : > { %v1569_v13 = vpop.f32.mrb[33].mxu1 }
 0x6ed   : > { %v7524_v21 = vpop.f32.mrb[34].mxu1 }
 0x6ee   : > { %v9211_v15 = vpack.c.bf16 %v7524_v21, %v7523_v12  ;;  %v1572_v22 = vpop.f32.mrb[35].mxu1  ;;  %v2112_v12 = vld [vmem:[#allocation15 + $0xd0] sm:$0xff]  ;;  %v2054_v21 = vld [vmem:[#allocation13] sm:$0xff] }
 0x6ef   : > { %v9213_v23 = vpack.c.bf16 %v1572_v22, %v1569_v13  ;;  %v2116_v13 = vld [vmem:[#allocation15 + $0xf0] sm:$0xff]  ;;  %v2058_v22 = vld [vmem:[#allocation13 + $0x20] sm:$0xff] }
 0x6f0   : > { %v6978_v14 = vcombine.high %v2112_v12, %v2116_v13  ;;  %v7014_v26 = vcombine.high %v2054_v21, %v2058_v22 }
 0x6f1   : > { %1781 = vmatmul.mubr.bf16.vlgmr.msra.gmra.mrb[48].mxu0 %v9213_v23 }
 0x6f2   : > { %1790 = vmatprep.mubr.bf16.mxu0 %v8635_v17  ;;  %2279 = vmatpush1.bf16.msra.mxu0 %v6949_v18  ;;  %v6970_v18 = vcombine.high %v2104_v9, %v2108_v10 }
 0x6f3   : > { %v7527_v29 = vpop.f32.mrb[36].mxu1  ;;  %2280 = vmatprep.subr.bf16.mxu0 %v6958_v24  ;;  %v6977_v24 = vcombine.low %v2112_v12, %v2116_v13 }
 0x6f4   : > { %v1585_v31 = vpop.f32.mrb[37].mxu1 }
 0x6f5   : > { %v7528_v34 = vpop.f32.mrb[38].mxu1 }
 0x6f6   : > { %v9217_v35 = vpack.c.bf16 %v7528_v34, %v7527_v29  ;;  %v1588_v1 = vpop.f32.mrb[39].mxu1  ;;  %2281 = vmatpush1.bf16.msra.mxu0 %v6957_v28  ;;  %v2066_v28 = vld [vmem:[#allocation13 + $0x60] sm:$0xff]  ;;  %v7013_v29 = vcombine.low %v2054_v21, %v2058_v22  ;;  %v1656_v21 = vld [vmem:[#allocation12] sm:$0x3] }
 0x6f7   : > { %v9219_v37 = vpack.c.bf16 %v1588_v1, %v1585_v31  ;;  %2282 = vmatprep.subr.bf16.mxu0 %v6966_v30  ;;  %v7022_v30 = vcombine.high %v2062_v27, %v2066_v28  ;;  %v2070_v31 = vld [vmem:[#allocation13 + $0x80] sm:$0xff]  ;;  %v7021_v33 = vcombine.low %v2062_v27, %v2066_v28 }
 0x6f8   : > { %v7030_v34 = vcombine.high %v2070_v31, %v2074_v32  ;;  %v2078_v1 = vld [vmem:[#allocation13 + $0xc0] sm:$0xff] }
 0x6f9   : > { %1791 = vmatmul.mubr.bf16.gmra.mrb[52].mxu0 %v9211_v15 }
 0x6fa   : > { %1800 = vmatprep.mubr.bf16.mxu0 %v8635_v17  ;;  %2283 = vmatpush1.bf16.msra.mxu0 %v6965_v36  ;;  %v2082_v36 = vld [vmem:[#allocation13 + $0xe0] sm:$0xff] }
 0x6fb   : > { %v7531_v4 = vpop.f32.mrb[40].mxu1  ;;  %2284 = vmatprep.subr.bf16.mxu0 %v6974_v38  ;;  %v7029_v38 = vcombine.low %v2070_v31, %v2074_v32  ;;  %v7038_v41 = vcombine.high %v2078_v1, %v2082_v36 }
 0x6fc   : > { %v1601_v50 = vpop.f32.mrb[41].mxu1 }
 0x6fd   : > { %v7532_v51 = vpop.f32.mrb[42].mxu1 }
 0x6fe   : > { %v9223_v55 = vpack.c.bf16 %v7532_v51, %v7531_v4  ;;  %v1604_v57 = vpop.f32.mrb[43].mxu1  ;;  %2285 = vmatpush1.bf16.msra.mxu0 %v6973_v44  ;;  %v2060_v44 = vld [vmem:[#allocation13 + $0x30] sm:$0xff]  ;;  %v7037_v4 = vcombine.low %v2078_v1, %v2082_v36 }
 0x6ff   : > { %v9225_v59 = vpack.c.bf16 %v1604_v57, %v1601_v50  ;;  %2504 = vmatprep.subr.bf16.mxu0 %v6954_v49  ;;  %v7018_v49 = vcombine.high %v2056_v43, %v2060_v44  ;;  %v2064_v50 = vld [vmem:[#allocation13 + $0x50] sm:$0xff]  ;;  %v7017_v57 = vcombine.low %v2056_v43, %v2060_v44 }
 0x700   : > { %v2068_v51 = vld [vmem:[#allocation13 + $0x70] sm:$0xff] }
 0x701   : > { %1801 = vmatmul.mubr.bf16.gmra.mrb[56].mxu0 %v9219_v37 }
 0x702   : > { %1810 = vmatprep.mubr.bf16.mxu0 %v8635_v17 }
 0x703   : > { %v7535_v61 = vpop.f32.mrb[44].mxu1 }
 0x704   : > { %v1617_v63 = vpop.f32.mrb[45].mxu1 }
 0x705   : > { %v7536_v2 = vpop.f32.mrb[46].mxu1 }
 0x706   : > { %v9229_v3 = vpack.c.bf16 %v7536_v2, %v7535_v61  ;;  %v1620_v5 = vpop.f32.mrb[47].mxu1  ;;  %v7026_v61 = vcombine.high %v2064_v50, %v2068_v51  ;;  %v2076_v2 = vld [vmem:[#allocation13 + $0xb0] sm:$0xff] }
 0x707   : > { %v9231_v6 = vpack.c.bf16 %v1620_v5, %v1617_v63  ;;  %v2072_v63 = vld [vmem:[#allocation13 + $0x90] sm:$0xff]  ;;  %v7025_v5 = vcombine.low %v2064_v50, %v2068_v51 }
 0x708   : > { %v7034_v7 = vcombine.high %v2072_v63, %v2076_v2  ;;  %v7033_v9 = vcombine.low %v2072_v63, %v2076_v2 }
 0x709   : > { %1811 = vmatmul.mubr.bf16.gmra.mrb[60].mxu0 %v9217_v35 }
 0x70a   : > { %1820 = vmatprep.mubr.bf16.mxu0 %v8635_v17 }
 0x711   : > { %1821 = vmatmul.mubr.bf16.gmra.mrb[64].mxu0 %v9225_v59 }
 0x712   : > { %1830 = vmatprep.mubr.bf16.mxu0 %v8635_v17 }
 0x719   : > { %1831 = vmatmul.mubr.bf16.gmra.mrb[68].mxu0 %v9223_v55 }
 0x71a   : > { %1840 = vmatprep.mubr.bf16.mxu0 %v8635_v17 }
 0x721   : > { %1841 = vmatmul.mubr.bf16.gmra.mrb[72].mxu0 %v9231_v6 }
 0x722   : > { %1850 = vmatprep.mubr.bf16.mxu0 %v8635_v17 }
 0x729   : > { %1851 = vmatmul.mubr.bf16.gmra.mrb[76].mxu0 %v9229_v3 }
 0x72a   : > { %2310 = vmatprep.mubr.bf16.mxu0 %v8635_v17 }
 0x731   : > { %6981 = vmatmul.mubr.msk.bf16.vlgmr.msra.gmra.mrb[80].mxu0 %vm1068_vm0, %v9154_v39 }
 0x732   : > { %2320 = vmatprep.mubr.bf16.mxu0 %v8635_v17  ;;  %2505 = vmatpush1.bf16.msra.mxu0 %v6953_v25  ;;  %v2084_v25 = vld [vmem:[#allocation13 + $0xf0] sm:$0xff] }
 0x733   : > { %2506 = vmatprep.subr.bf16.mxu0 %v6962_v16  ;;  %v1658_v16 = vlaneseq  ;;  %v7042_v10 = vcombine.high %v2080_v8, %v2084_v25  ;;  %v7041_v13 = vcombine.low %v2080_v8, %v2084_v25 }
 0x735   : > { %v9300_v12 = vshrl.u32 %v1658_v16, 7 }
 0x736   : > { %2507 = vmatpush1.bf16.msra.mxu0 %v6961_v11  ;;  %v9294_v11 = vld [vmem:[#allocation16] sm:$0xff] }
 0x737   : > { %2508 = vmatprep.subr.bf16.mxu0 %v6970_v18  ;;  %v9296_v18 = vld [vmem:[#allocation16 + $0x20] sm:$0xff]  ;;  %v1664_v22 = vsub.s32 1, %v9300_v12 }
 0x739   : > { %6982 = vmatmul.mubr.msk.bf16.gmra.mrb[84].mxu0 %vm1068_vm0, %v9152_v20 }
 0x73a   : > { %2330 = vmatprep.mubr.bf16.mxu0 %v8635_v17  ;;  %2509 = vmatpush1.bf16.msra.mxu0 %v6969_v19  ;;  %v7078_v19 = vcombine.high %v9294_v11, %v9296_v18 }
 0x73b   : > { %2510 = vmatprep.subr.bf16.mxu0 %v6978_v14  ;;  %v1660_v14 = vsub.s32 0, %v9300_v12 }
 0x73e   : > { %2511 = vmatpush1.bf16.msra.mxu0 %v6977_v24  ;;  %v9311_v24 = vrot.slane %v1656_v21, %v1660_v14 }
 0x73f   : > { %2890 = vmatprep.subr.bf16.mxu0 %v7014_v26  ;;  %v9315_v26 = vrot.slane %v1656_v21, %v1664_v22 }
 0x741   : > { %6983 = vmatmul.mubr.msk.bf16.gmra.mrb[88].mxu0 %vm1068_vm0, %v9162_v47 }
 0x742   : > { %2340 = vmatprep.mubr.bf16.mxu0 %v8635_v17 }
 0x749   : > { %6984 = vmatmul.mubr.msk.bf16.gmra.mrb[92].mxu0 %vm1068_vm0, %v9160_v45 }
 0x74a   : > { %2350 = vmatprep.mubr.bf16.mxu0 %v8635_v17 }
 0x751   : > { %6985 = vmatmul.mubr.msk.bf16.gmra.mrb[96].mxu0 %vm1068_vm0, %v9170_v56 }
 0x752   : > { %2360 = vmatprep.mubr.bf16.mxu0 %v8635_v17 }
 0x759   : > { %6986 = vmatmul.mubr.msk.bf16.gmra.mrb[100].mxu0 %vm1068_vm0, %v9168_v53 }
 0x75a   : > { %2370 = vmatprep.mubr.bf16.mxu0 %v8635_v17 }
 0x761   : > { %6987 = vmatmul.mubr.msk.bf16.gmra.mrb[104].mxu0 %vm1068_vm0, %v9178_v0 }
 0x762   : > { %2380 = vmatprep.mubr.bf16.mxu0 %v8635_v17 }
 0x769   : > { %6988 = vmatmul.mubr.msk.bf16.gmra.mrb[108].mxu0 %vm1068_vm0, %v9176_v62 }
 0x76a   : > { %2536 = vmatprep.mubr.bf16.mxu0 %v8635_v17 }
 0x771   : > { %6997 = vmatmul.mubr.msk.bf16.vlgmr.msra.gmra.mrb[112].mxu0 %vm1068_vm0, %v9154_v39 }
 0x772   : > { %2546 = vmatprep.mubr.bf16.mxu0 %v8635_v17  ;;  %2891 = vmatpush1.bf16.msra.mxu0 %v7013_v29 }
 0x773   : > { %2892 = vmatprep.subr.bf16.mxu0 %v7022_v30 }
 0x776   : > { %2893 = vmatpush1.bf16.msra.mxu0 %v7021_v33 }
 0x777   : > { %2894 = vmatprep.subr.bf16.mxu0 %v7030_v34 }
 0x779   : > { %6998 = vmatmul.mubr.msk.bf16.gmra.mrb[116].mxu0 %vm1068_vm0, %v9152_v20 }
 0x77a   : > { %2556 = vmatprep.mubr.bf16.mxu0 %v8635_v17  ;;  %2895 = vmatpush1.bf16.msra.mxu0 %v7029_v38 }
 0x77b   : > { %2896 = vmatprep.subr.bf16.mxu0 %v7038_v41 }
 0x77e   : > { %2897 = vmatpush1.bf16.msra.mxu0 %v7037_v4 }
 0x77f   : > { %3116 = vmatprep.subr.bf16.mxu0 %v7018_v49 }
 0x781   : > { %6999 = vmatmul.mubr.msk.bf16.gmra.mrb[120].mxu0 %vm1068_vm0, %v9162_v47 }
 0x782   : > { %2566 = vmatprep.mubr.bf16.mxu0 %v8635_v17 }
 0x789   : > { %7000 = vmatmul.mubr.msk.bf16.gmra.mrb[124].mxu0 %vm1068_vm0, %v9160_v45 }
 0x78a   : > { %2576 = vmatprep.mubr.bf16.mxu0 %v8635_v17 }
 0x791   : > { %7001 = vmatmul.mubr.msk.bf16.gmra.mrb[128].mxu0 %vm1068_vm0, %v9170_v56 }
 0x792   : > { %2586 = vmatprep.mubr.bf16.mxu0 %v8635_v17 }
 0x799   : > { %7002 = vmatmul.mubr.msk.bf16.gmra.mrb[132].mxu0 %vm1068_vm0, %v9168_v53 }
 0x79a   : > { %2596 = vmatprep.mubr.bf16.mxu0 %v8635_v17 }
 0x7a1   : > { %7003 = vmatmul.mubr.msk.bf16.gmra.mrb[136].mxu0 %vm1068_vm0, %v9178_v0 }
 0x7a2   : > { %2606 = vmatprep.mubr.bf16.mxu0 %v8635_v17 }
 0x7a9   : > { %7004 = vmatmul.mubr.msk.bf16.gmra.mrb[140].mxu0 %vm1068_vm0, %v9176_v62 }
 0x7aa   : > { %2922 = vmatprep.mubr.bf16.mxu0 %v8635_v17 }
 0x7b1   : > { %7045 = vmatmul.mubr.msk.bf16.vlgmr.msra.gmra.mrb[80].mxu0 %vm1068_vm0, %v9096_v42 }
 0x7b2   : > { %2932 = vmatprep.mubr.bf16.mxu0 %v8635_v17  ;;  %3117 = vmatpush1.bf16.msra.mxu0 %v7017_v57 }
 0x7b3   : > { %3118 = vmatprep.subr.bf16.mxu0 %v7026_v61 }
 0x7b6   : > { %3119 = vmatpush1.bf16.msra.mxu0 %v7025_v5 }
 0x7b7   : > { %3120 = vmatprep.subr.bf16.mxu0 %v7034_v7 }
 0x7b9   : > { %7046 = vmatmul.mubr.msk.bf16.gmra.mrb[84].mxu0 %vm1068_vm0, %v9094_v40 }
 0x7ba   : > { %2942 = vmatprep.mubr.bf16.mxu0 %v8635_v17  ;;  %3121 = vmatpush1.bf16.msra.mxu0 %v7033_v9 }
 0x7bb   : > { %3122 = vmatprep.subr.bf16.mxu0 %v7042_v10 }
 0x7be   : > { %3123 = vmatpush1.bf16.msra.mxu0 %v7041_v13 }
 0x7bf   : > { %3726 = vmatprep.subr.bf16.mxu0 %v7078_v19 }
 0x7c1   : > { %7047 = vmatmul.mubr.msk.bf16.gmra.mrb[88].mxu0 %vm1068_vm0, %v9104_v48 }
 0x7c2   : > { %2952 = vmatprep.mubr.bf16.mxu0 %v8635_v17 }
 0x7c4   : > { %v1782_v27 = vpop.f32.mrb[48].mxu0 }
 0x7c5   : > { %v1783_v28 = vadd.f32 %v1782_v27, %v9311_v24  ;;  %v1784_v29 = vpop.f32.mrb[49].mxu0 }
 0x7c6   : > { %v1785_v30 = vadd.f32 %v1784_v29, %v9315_v26  ;;  %v1786_v31 = vpop.f32.mrb[50].mxu0 }
 0x7c7   : > { %v1861_v32 = vmul.f32 0.2, %v1783_v28  ;;  %v1787_v33 = vadd.f32 %v1786_v31, %v9311_v24  ;;  %v1788_v34 = vpop.f32.mrb[51].mxu0 }
 0x7c8   : > { %v1862_v1 = vmul.f32 0.2, %v1785_v30  ;;  %v1789_v36 = vadd.f32 %v1788_v34, %v9315_v26 }
 0x7c9   : > { %v1863_v38 = vmul.f32 0.2, %v1787_v33  ;;  %7048 = vmatmul.mubr.msk.bf16.gmra.mrb[92].mxu0 %vm1068_vm0, %v9102_v46  ;;  %v1893_v43 = vmax.f32 %v1783_v28, %v1861_v32 }
 0x7ca   : > { %v1864_v41 = vmul.f32 0.2, %v1789_v36  ;;  %2962 = vmatprep.mubr.bf16.mxu0 %v8635_v17  ;;  %v1894_v4 = vmax.f32 %v1785_v30, %v1862_v1 }
 0x7cb   : > { %v1895_v44 = vmax.f32 %v1787_v33, %v1863_v38 }
 0x7cc   : > { %v1896_v49 = vmax.f32 %v1789_v36, %v1864_v41  ;;  %v1792_v50 = vpop.f32.mrb[52].mxu0 }
 0x7cd   : > { %v1925_v51 = vpack.c.bf16 %v1895_v44, %v1893_v43  ;;  %v1793_v57 = vadd.f32 %v1792_v50, %v9311_v24  ;;  %v1794_v61 = vpop.f32.mrb[53].mxu0 }
 0x7ce   : > { %v1795_v63 = vadd.f32 %v1794_v61, %v9315_v26  ;;  %v1796_v2 = vpop.f32.mrb[54].mxu0  ;;  %v1926_v5 = vpack.c.bf16 %v1896_v49, %v1894_v4 }
 0x7cf   : > { %v1865_v7 = vmul.f32 0.2, %v1793_v57  ;;  %v1797_v8 = vadd.f32 %v1796_v2, %v9311_v24  ;;  %v1798_v25 = vpop.f32.mrb[55].mxu0 }
 0x7d0   : > { %v1866_v16 = vmul.f32 0.2, %v1795_v63  ;;  %v1799_v9 = vadd.f32 %v1798_v25, %v9315_v26  ;;  %1941 = vmatprep.subr.bf16.mxu1 %v1926_v5 }
 0x7d1   : > { %v1867_v10 = vmul.f32 0.2, %v1797_v8  ;;  %1942 = vmatpush1.bf16.msra.mxu1 %v1925_v51  ;;  %7049 = vmatmul.mubr.msk.bf16.gmra.mrb[96].mxu0 %vm1068_vm0, %v9112_v54  ;;  %v1897_v19 = vmax.f32 %v1793_v57, %v1865_v7 }
 0x7d2   : > { %v1868_v13 = vmul.f32 0.2, %v1799_v9  ;;  %2972 = vmatprep.mubr.bf16.mxu0 %v8635_v17  ;;  %v1898_v27 = vmax.f32 %v1795_v63, %v1866_v16 }
 0x7d3   : > { %v1899_v21 = vmax.f32 %v1797_v8, %v1867_v10 }
 0x7d4   : > { %v1900_v28 = vmax.f32 %v1799_v9, %v1868_v13  ;;  %v1802_v29 = vpop.f32.mrb[56].mxu0 }
 0x7d5   : > { %v1927_v30 = vpack.c.bf16 %v1899_v21, %v1897_v19  ;;  %v1803_v31 = vadd.f32 %v1802_v29, %v9311_v24  ;;  %v1804_v32 = vpop.f32.mrb[57].mxu0 }
 0x7d6   : > { %v1805_v33 = vadd.f32 %v1804_v32, %v9315_v26  ;;  %v1806_v34 = vpop.f32.mrb[58].mxu0  ;;  %v1928_v1 = vpack.c.bf16 %v1900_v28, %v1898_v27 }
 0x7d7   : > { %v1869_v36 = vmul.f32 0.2, %v1803_v31  ;;  %v1807_v38 = vadd.f32 %v1806_v34, %v9311_v24  ;;  %v1808_v41 = vpop.f32.mrb[59].mxu0 }
 0x7d8   : > { %v1870_v43 = vmul.f32 0.2, %v1805_v33  ;;  %v1809_v44 = vadd.f32 %v1808_v41, %v9315_v26  ;;  %1943 = vmatprep.subr.bf16.mxu1 %v1928_v1 }
 0x7d9   : > { %v1871_v4 = vmul.f32 0.2, %v1807_v38  ;;  %1944 = vmatpush1.bf16.msra.mxu1 %v1927_v30  ;;  %7050 = vmatmul.mubr.msk.bf16.gmra.mrb[100].mxu0 %vm1068_vm0, %v9110_v52  ;;  %v1901_v50 = vmax.f32 %v1803_v31, %v1869_v36 }
 0x7da   : > { %v1872_v49 = vmul.f32 0.2, %v1809_v44  ;;  %2982 = vmatprep.mubr.bf16.mxu0 %v8635_v17  ;;  %v1902_v57 = vmax.f32 %v1805_v33, %v1870_v43 }
 0x7db   : > { %v1903_v51 = vmax.f32 %v1807_v38, %v1871_v4 }
 0x7dc   : > { %v1904_v61 = vmax.f32 %v1809_v44, %v1872_v49  ;;  %v1812_v63 = vpop.f32.mrb[60].mxu0 }
 0x7dd   : > { %v1929_v2 = vpack.c.bf16 %v1903_v51, %v1901_v50  ;;  %v1813_v5 = vadd.f32 %v1812_v63, %v9311_v24  ;;  %v1814_v7 = vpop.f32.mrb[61].mxu0 }
 0x7de   : > { %v1815_v8 = vadd.f32 %v1814_v7, %v9315_v26  ;;  %v1816_v25 = vpop.f32.mrb[62].mxu0  ;;  %v1930_v16 = vpack.c.bf16 %v1904_v61, %v1902_v57 }
 0x7df   : > { %v1873_v9 = vmul.f32 0.2, %v1813_v5  ;;  %v1817_v10 = vadd.f32 %v1816_v25, %v9311_v24  ;;  %v1818_v13 = vpop.f32.mrb[63].mxu0  ;;  %v3350_v25 = vld [vmem:[#allocation16 + $0x40] sm:$0xff] }
 0x7e0   : > { %v1874_v19 = vmul.f32 0.2, %v1815_v8  ;;  %v1819_v21 = vadd.f32 %v1818_v13, %v9315_v26  ;;  %1945 = vmatprep.subr.bf16.mxu1 %v1930_v16  ;;  %v3354_v16 = vld [vmem:[#allocation16 + $0x60] sm:$0xff] }
 0x7e1   : > { %v1875_v27 = vmul.f32 0.2, %v1817_v10  ;;  %1946 = vmatpush1.bf16.msra.mxu1 %v1929_v2  ;;  %7051 = vmatmul.mubr.msk.bf16.gmra.mrb[104].mxu0 %vm1068_vm0, %v9120_v60  ;;  %v1905_v29 = vmax.f32 %v1813_v5, %v1873_v9 }
 0x7e2   : > { %v1876_v28 = vmul.f32 0.2, %v1819_v21  ;;  %2992 = vmatprep.mubr.bf16.mxu0 %v8635_v17  ;;  %v1906_v31 = vmax.f32 %v1815_v8, %v1874_v19 }
 0x7e3   : > { %v1907_v30 = vmax.f32 %v1817_v10, %v1875_v27 }
 0x7e4   : > { %v1908_v32 = vmax.f32 %v1819_v21, %v1876_v28  ;;  %v1822_v33 = vpop.f32.mrb[64].mxu0  ;;  %v7077_v28 = vcombine.low %v9294_v11, %v9296_v18  ;;  %v7085_v11 = vcombine.low %v3350_v25, %v3354_v16 }
 0x7e5   : > { %v1931_v34 = vpack.c.bf16 %v1907_v30, %v1905_v29  ;;  %v1823_v1 = vadd.f32 %v1822_v33, %v9311_v24  ;;  %v1824_v36 = vpop.f32.mrb[65].mxu0 }
 0x7e6   : > { %v1825_v38 = vadd.f32 %v1824_v36, %v9315_v26  ;;  %v1826_v41 = vpop.f32.mrb[66].mxu0  ;;  %v1932_v43 = vpack.c.bf16 %v1908_v32, %v1906_v31  ;;  %v7086_v32 = vcombine.high %v3350_v25, %v3354_v16  ;;  %v3362_v36 = vld [vmem:[#allocation16 + $0xa0] sm:$0xff] }
 0x7e7   : > { %v1877_v44 = vmul.f32 0.2, %v1823_v1  ;;  %v1827_v4 = vadd.f32 %v1826_v41, %v9311_v24  ;;  %v1828_v49 = vpop.f32.mrb[67].mxu0 }
 0x7e8   : > { %v1878_v50 = vmul.f32 0.2, %v1825_v38  ;;  %v1829_v51 = vadd.f32 %v1828_v49, %v9315_v26  ;;  %1947 = vmatprep.subr.bf16.mxu1 %v1932_v43 }
 0x7e9   : > { %v1879_v57 = vmul.f32 0.2, %v1827_v4  ;;  %1948 = vmatpush1.bf16.msra.mxu1 %v1931_v34  ;;  %7052 = vmatmul.mubr.msk.bf16.gmra.mrb[108].mxu0 %vm1068_vm0, %v9118_v58  ;;  %v1909_v63 = vmax.f32 %v1823_v1, %v1877_v44  ;;  %v3358_v1 = vld [vmem:[#allocation16 + $0x80] sm:$0xff] }
 0x7ea   : > { %v1880_v61 = vmul.f32 0.2, %v1829_v51  ;;  %3148 = vmatprep.mubr.bf16.mxu0 %v8635_v17  ;;  %v1910_v5 = vmax.f32 %v1825_v38, %v1878_v50  ;;  %v7094_v44 = vcombine.high %v3358_v1, %v3362_v36 }
 0x7eb   : > { %v1911_v2 = vmax.f32 %v1827_v4, %v1879_v57  ;;  %v3370_v57 = vld [vmem:[#allocation16 + $0xe0] sm:$0xff] }
 0x7ec   : > { %v1912_v7 = vmax.f32 %v1829_v51, %v1880_v61  ;;  %v1832_v8 = vpop.f32.mrb[68].mxu0  ;;  %v3366_v51 = vld [vmem:[#allocation16 + $0xc0] sm:$0xff] }
 0x7ed   : > { %v1933_v9 = vpack.c.bf16 %v1911_v2, %v1909_v63  ;;  %v1833_v10 = vadd.f32 %v1832_v8, %v9311_v24  ;;  %v1834_v13 = vpop.f32.mrb[69].mxu0 }
 0x7ee   : > { %v1835_v19 = vadd.f32 %v1834_v13, %v9315_v26  ;;  %v1836_v21 = vpop.f32.mrb[70].mxu0  ;;  %v1934_v27 = vpack.c.bf16 %v1912_v7, %v1910_v5  ;;  %v7102_v13 = vcombine.high %v3366_v51, %v3370_v57 }
 0x7ef   : > { %v1881_v29 = vmul.f32 0.2, %v1833_v10  ;;  %v1837_v30 = vadd.f32 %v1836_v21, %v9311_v24  ;;  %v1838_v31 = vpop.f32.mrb[71].mxu0 }
 0x7f0   : > { %v1882_v33 = vmul.f32 0.2, %v1835_v19  ;;  %v1839_v34 = vadd.f32 %v1838_v31, %v9315_v26  ;;  %1949 = vmatprep.subr.bf16.mxu1 %v1934_v27  ;;  %v3374_v27 = vld [vmem:[#allocation16 + $0x100] sm:$0xff]  ;;  %v7101_v31 = vcombine.low %v3366_v51, %v3370_v57 }
 0x7f1   : > { %v1883_v38 = vmul.f32 0.2, %v1837_v30  ;;  %1950 = vmatpush1.bf16.msra.mxu1 %v1933_v9  ;;  %7061 = vmatmul.mubr.msk.bf16.vlgmr.msra.gmra.mrb[112].mxu0 %vm1068_vm0, %v9096_v42  ;;  %v1913_v18 = vmax.f32 %v1833_v10, %v1881_v29  ;;  %v7093_v9 = vcombine.low %v3358_v1, %v3362_v36 }
 0x7f2   : > { %v1884_v41 = vmul.f32 0.2, %v1839_v34  ;;  %3158 = vmatprep.mubr.bf16.mxu0 %v8635_v17  ;;  %3727 = vmatpush1.bf16.msra.mxu0 %v7077_v28  ;;  %v1914_v4 = vmax.f32 %v1835_v19, %v1882_v33  ;;  %v3378_v28 = vld [vmem:[#allocation16 + $0x120] sm:$0xff] }
 0x7f3   : > { %v1915_v43 = vmax.f32 %v1837_v30, %v1883_v38  ;;  %3728 = vmatprep.subr.bf16.mxu0 %v7086_v32 }
 0x7f4   : > { %v1916_v49 = vmax.f32 %v1839_v34, %v1884_v41  ;;  %v1842_v50 = vpop.f32.mrb[72].mxu0  ;;  %v7110_v34 = vcombine.high %v3374_v27, %v3378_v28  ;;  %v3382_v41 = vld [vmem:[#allocation16 + $0x140] sm:$0xff] }
 0x7f5   : > { %v1935_v61 = vpack.c.bf16 %v1915_v43, %v1913_v18  ;;  %v1843_v63 = vadd.f32 %v1842_v50, %v9311_v24  ;;  %v1844_v2 = vpop.f32.mrb[73].mxu0 }
 0x7f6   : > { %v1845_v5 = vadd.f32 %v1844_v2, %v9315_v26  ;;  %v1846_v7 = vpop.f32.mrb[74].mxu0  ;;  %v1936_v8 = vpack.c.bf16 %v1916_v49, %v1914_v4  ;;  %3729 = vmatpush1.bf16.msra.mxu0 %v7085_v11  ;;  %v3386_v11 = vld [vmem:[#allocation16 + $0x160] sm:$0xff] }
 0x7f7   : > { %v1885_v25 = vmul.f32 0.2, %v1843_v63  ;;  %v1847_v16 = vadd.f32 %v1846_v7, %v9311_v24  ;;  %v1848_v10 = vpop.f32.mrb[75].mxu0  ;;  %3730 = vmatprep.subr.bf16.mxu0 %v7094_v44  ;;  %v7118_v2 = vcombine.high %v3382_v41, %v3386_v11 }
 0x7f8   : > { %v1886_v19 = vmul.f32 0.2, %v1845_v5  ;;  %v1849_v21 = vadd.f32 %v1848_v10, %v9315_v26  ;;  %1951 = vmatprep.subr.bf16.mxu1 %v1936_v8  ;;  %v3390_v8 = vld [vmem:[#allocation16 + $0x180] sm:$0xff]  ;;  %v7117_v10 = vcombine.low %v3382_v41, %v3386_v11  ;;  %v3344_v11 = vld [vmem:[#allocation16 + $0x10] sm:$0xff] }
 0x7f9   : > { %v1887_v29 = vmul.f32 0.2, %v1847_v16  ;;  %1952 = vmatpush1.bf16.msra.mxu1 %v1935_v61  ;;  %7062 = vmatmul.mubr.msk.bf16.gmra.mrb[116].mxu0 %vm1068_vm0, %v9094_v40  ;;  %v1917_v32 = vmax.f32 %v1843_v63, %v1885_v25  ;;  %v7109_v61 = vcombine.low %v3374_v27, %v3378_v28 }
 0x7fa   : > { %v1888_v30 = vmul.f32 0.2, %v1849_v21  ;;  %3168 = vmatprep.mubr.bf16.mxu0 %v8635_v17  ;;  %3731 = vmatpush1.bf16.msra.mxu0 %v7093_v9  ;;  %v1918_v1 = vmax.f32 %v1845_v5, %v1886_v19  ;;  %v3394_v9 = vld [vmem:[#allocation16 + $0x1a0] sm:$0xff]  ;;  %v2087_v19 = vld [vmem:[#allocation15 + $0x8] sm:$0xff] }
 0x7fb   : > { %v1919_v33 = vmax.f32 %v1847_v16, %v1887_v29  ;;  %3732 = vmatprep.subr.bf16.mxu0 %v7102_v13  ;;  %v7126_v27 = vcombine.high %v3390_v8, %v3394_v9 }
 0x7fc   : > { %v1920_v36 = vmax.f32 %v1849_v21, %v1888_v30  ;;  %v1852_v38 = vpop.f32.mrb[76].mxu0  ;;  %v2091_v21 = vld [vmem:[#allocation15 + $0x28] sm:$0xff]  ;;  %v3398_v30 = vld [vmem:[#allocation16 + $0x1c0] sm:$0xff] }
 0x7fd   : > { %v1937_v18 = vpack.c.bf16 %v1919_v33, %v1917_v32  ;;  %v1853_v43 = vadd.f32 %v1852_v38, %v9311_v24  ;;  %v1854_v44 = vpop.f32.mrb[77].mxu0  ;;  %v6952_v33 = vcombine.high %v2087_v19, %v2091_v21  ;;  %v6951_v41 = vcombine.low %v2087_v19, %v2091_v21  ;;  %v8240_v19 = vld [vmem:[%s9033_s3 + $0x20] sm:$0xff]   ;;  %v3352_v21 = vld [vmem:[#allocation16 + $0x50] sm:$0xff] }
 0x7fe   : > { %v1855_v4 = vadd.f32 %v1854_v44, %v9315_v26  ;;  %v1856_v49 = vpop.f32.mrb[78].mxu0  ;;  %v1938_v50 = vpack.c.bf16 %v1920_v36, %v1918_v1  ;;  %3733 = vmatpush1.bf16.msra.mxu0 %v7101_v31  ;;  %v3402_v31 = vld [vmem:[#allocation16 + $0x1e0] sm:$0xff]  ;;  %v2099_v1 = vld [vmem:[#allocation15 + $0x68] sm:$0xff]  ;;  %v7125_v36 = vcombine.low %v3390_v8, %v3394_v9  ;;  %v9384_v8 = vld [vmem:[#allocation15 + $0x18] sm:$0xff] }
 0x7ff   : > { %v1889_v51 = vmul.f32 0.2, %v1853_v43  ;;  %v1857_v57 = vadd.f32 %v1856_v49, %v9311_v24  ;;  %v1858_v63 = vpop.f32.mrb[79].mxu0  ;;  %3734 = vmatprep.subr.bf16.mxu0 %v7110_v34  ;;  %v2095_v34 = vld [vmem:[#allocation15 + $0x48] sm:$0xff]  ;;  %v7134_v38 = vcombine.high %v3398_v30, %v3402_v31  ;;  %v7133_v49 = vcombine.low %v3398_v30, %v3402_v31  ;;  %v9386_v9 = vld [vmem:[#allocation15 + $0x38] sm:$0xff]  ;;  %v3364_v30 = vld [vmem:[#allocation16 + $0xb0] sm:$0xff] }
 0x800   : > { %v1890_v5 = vmul.f32 0.2, %v1855_v4  ;;  %v1859_v7 = vadd.f32 %v1858_v63, %v9315_v26  ;;  %1953 = vmatprep.subr.bf16.mxu1 %v1938_v50  ;;  %v2103_v44 = vld [vmem:[#allocation15 + $0x88] sm:$0xff]  ;;  %v8236_v50 = vld [vmem:[%s9033_s3] sm:$0xff]  }
 0x801   : > { %v1891_v25 = vmul.f32 0.2, %v1857_v57  ;;  %1954 = vmatpush1.bf16.msra.mxu1 %v1937_v18  ;;  %7063 = vmatmul.mubr.msk.bf16.gmra.mrb[120].mxu0 %vm1068_vm0, %v9104_v48  ;;  %v1921_v24 = vmax.f32 %v1853_v43, %v1889_v51  ;;  %v3348_v18 = vld [vmem:[#allocation16 + $0x30] sm:$0xff]  ;;  %v6960_v43 = vcombine.high %v2095_v34, %v2099_v1  ;;  %v6959_v51 = vcombine.low %v2095_v34, %v2099_v1  ;;  %v2111_v63 = vld [vmem:[#allocation15 + $0xc8] sm:$0xff] }
 0x802   : > { %v1892_v16 = vmul.f32 0.2, %v1859_v7  ;;  %3178 = vmatprep.mubr.bf16.mxu0 %v8635_v17  ;;  %3735 = vmatpush1.bf16.msra.mxu0 %v7109_v61  ;;  %v1922_v26 = vmax.f32 %v1855_v4, %v1890_v5  ;;  %v2107_v4 = vld [vmem:[#allocation15 + $0xa8] sm:$0xff]  ;;  %v7082_v61 = vcombine.high %v3344_v11, %v3348_v18  ;;  %v3368_v34 = vld [vmem:[#allocation16 + $0xd0] sm:$0xff] }
 0x803   : > { %v1923_v13 = vmax.f32 %v1857_v57, %v1891_v25  ;;  %3736 = vmatprep.subr.bf16.mxu0 %v7118_v2  ;;  %v6968_v57 = vcombine.high %v2103_v44, %v2107_v4  ;;  %v2115_v2 = vld [vmem:[#allocation15 + $0xe8] sm:$0xff]  ;;  %v6967_v5 = vcombine.low %v2103_v44, %v2107_v4  ;;  %v8237_v25 = vld [vmem:[%s9033_s3 + $0x8] sm:$0xff]   ;;  %v3372_v1 = vld [vmem:[#allocation16 + $0xf0] sm:$0xff] }
 0x804   : > { %v1924_v28 = vmax.f32 %v1859_v7, %v1892_v16  ;;  %v6976_v7 = vcombine.high %v2111_v63, %v2115_v2  ;;  %v6975_v16 = vcombine.low %v2111_v63, %v2115_v2  ;;  %v8242_v44 = vld [vmem:[%s9033_s3 + $0x30] sm:$0xff]   ;;  %v3384_v4 = vld [vmem:[#allocation16 + $0x150] sm:$0xff] }
 0x805   : > { %v1939_v29 = vpack.c.bf16 %v1923_v13, %v1921_v24  ;;  %v8238_v24 = vld [vmem:[%s9033_s3 + $0x10] sm:$0xff]   ;;  %v8239_v13 = vld [vmem:[%s9033_s3 + $0x18] sm:$0xff]  }
 0x806   : > { %v1940_v32 = vpack.c.bf16 %v1924_v28, %v1922_v26  ;;  %3737 = vmatpush1.bf16.msra.mxu0 %v7117_v10  ;;  %v6956_v10 = vcombine.high %v9384_v8, %v9386_v9  ;;  %v7081_v26 = vcombine.low %v3344_v11, %v3348_v18  ;;  %v3380_v11 = vld [vmem:[#allocation16 + $0x130] sm:$0xff]  ;;  %v7105_v18 = vcombine.low %v3368_v34, %v3372_v1 }
 0x807   : > { %3738 = vmatprep.subr.bf16.mxu0 %v7126_v27  ;;  %v3356_v27 = vld [vmem:[#allocation16 + $0x70] sm:$0xff] }
 0x808   : > { %1955 = vmatprep.subr.bf16.mxu1 %v1940_v32  ;;  %v7090_v28 = vcombine.high %v3352_v21, %v3356_v27  ;;  %v7089_v31 = vcombine.low %v3352_v21, %v3356_v27  ;;  %v4326_v21 = vld [vmem:[#allocation18 + $0x20] sm:$0xff]  ;;  %v6955_v27 = vcombine.low %v9384_v8, %v9386_v9  ;;  %v2113_v8 = vld [vmem:[#allocation15 + $0xd8] sm:$0xff] }
 0x809   : > { %1956 = vmatpush1.bf16.msra.mxu1 %v1939_v29  ;;  %7064 = vmatmul.mubr.msk.bf16.gmra.mrb[124].mxu0 %vm1068_vm0, %v9102_v46  ;;  %v3360_v29 = vld [vmem:[#allocation16 + $0x90] sm:$0xff]  ;;  %v2117_v9 = vld [vmem:[#allocation15 + $0xf8] sm:$0xff] }
 0x80a   : > { %2391 = vmatprep.subr.bf16.mxu1 %v6952_v33  ;;  %3188 = vmatprep.mubr.bf16.mxu0 %v8635_v17  ;;  %v7098_v32 = vcombine.high %v3360_v29, %v3364_v30  ;;  %v8241_v33 = vld [vmem:[%s9033_s3 + $0x28] sm:$0xff]  }
 0x80b   : > { %3739 = vmatpush1.bf16.msra.mxu0 %v7125_v36  ;;  %v7097_v36 = vcombine.low %v3360_v29, %v3364_v30  ;;  %v2105_v29 = vld [vmem:[#allocation15 + $0x98] sm:$0xff] }
 0x80c   : > { %1974 = vmatmul.mubr.bf16.vlgmr.msra.gmra.mrb[48].mxu1 %v8236_v50  ;;  %3740 = vmatprep.subr.bf16.mxu0 %v7134_v38  ;;  %v7106_v38 = vcombine.high %v3368_v34, %v3372_v1  ;;  %v2109_v30 = vld [vmem:[#allocation15 + $0xb8] sm:$0xff]  ;;  %v6980_v1 = vcombine.high %v2113_v8, %v2117_v9 }
 0x80d   : > { %2392 = vmatpush1.bf16.msra.mxu1 %v6951_v41  ;;  %1983 = vmatprep.mubr.bf16.mxu1 %v8635_v17  ;;  %v3376_v41 = vld [vmem:[#allocation16 + $0x110] sm:$0xff]  ;;  %v6971_v34 = vcombine.low %v2105_v29, %v2109_v30 }
 0x80e   : > { %2393 = vmatprep.subr.bf16.mxu1 %v6960_v43  ;;  %v7114_v43 = vcombine.high %v3376_v41, %v3380_v11  ;;  %v7113_v50 = vcombine.low %v3376_v41, %v3380_v11  ;;  %v6979_v41 = vcombine.low %v2113_v8, %v2117_v9  ;;  %v2067_v8 = vld [vmem:[#allocation13 + $0x68] sm:$0xff] }
 0x80f   : > { %3741 = vmatpush1.bf16.msra.mxu0 %v7133_v49  ;;  %v3388_v49 = vld [vmem:[#allocation16 + $0x170] sm:$0xff] }
 0x810   : > { %3952 = vmatprep.subr.bf16.mxu0 %v7082_v61  ;;  %v7122_v61 = vcombine.high %v3384_v4, %v3388_v49  ;;  %v7121_v63 = vcombine.low %v3384_v4, %v3388_v49  ;;  %v4338_v49 = vld [vmem:[#allocation18 + $0x80] sm:$0xff] }
 0x811   : > { %7065 = vmatmul.mubr.msk.bf16.gmra.mrb[128].mxu0 %vm1068_vm0, %v9112_v54  ;;  %2394 = vmatpush1.bf16.msra.mxu1 %v6959_v51  ;;  %v3392_v51 = vld [vmem:[#allocation16 + $0x190] sm:$0xff] }
 0x812   : > { %3198 = vmatprep.mubr.bf16.mxu0 %v8635_v17  ;;  %2395 = vmatprep.subr.bf16.mxu1 %v6968_v57  ;;  %v3396_v57 = vld [vmem:[#allocation16 + $0x1b0] sm:$0xff] }
 0x813   : > { %v7130_v2 = vcombine.high %v3392_v51, %v3396_v57 }
 0x814   : > { %1984 = vmatmul.mubr.bf16.gmra.mrb[52].mxu1 %v8237_v25  ;;  %v3404_v25 = vld [vmem:[#allocation16 + $0x1f0] sm:$0xff] }
 0x815   : > { %1993 = vmatprep.mubr.bf16.mxu1 %v8635_v17  ;;  %2396 = vmatpush1.bf16.msra.mxu1 %v6967_v5  ;;  %v8243_v5 = vld [vmem:[%s9033_s3 + $0x38] sm:$0xff]  }
 0x816   : > { %2397 = vmatprep.subr.bf16.mxu1 %v6976_v7  ;;  %v3400_v7 = vld [vmem:[#allocation16 + $0x1d0] sm:$0xff] }
 0x819   : > { %7066 = vmatmul.mubr.msk.bf16.gmra.mrb[132].mxu0 %vm1068_vm0, %v9110_v52  ;;  %2398 = vmatpush1.bf16.msra.mxu1 %v6975_v16  ;;  %v7129_v16 = vcombine.low %v3392_v51, %v3396_v57  ;;  %v4346_v57 = vld [vmem:[#allocation18 + $0xc0] sm:$0xff] }
 0x81a   : > { %3208 = vmatprep.mubr.bf16.mxu0 %v8635_v17  ;;  %2617 = vmatprep.subr.bf16.mxu1 %v6956_v10  ;;  %v2097_v10 = vld [vmem:[#allocation15 + $0x58] sm:$0xff] }
 0x81c   : > { %1994 = vmatmul.mubr.bf16.gmra.mrb[56].mxu1 %v8238_v24  ;;  %v2101_v24 = vld [vmem:[#allocation15 + $0x78] sm:$0xff] }
 0x81d   : > { %2003 = vmatprep.mubr.bf16.mxu1 %v8635_v17 }
 0x821   : > { %7067 = vmatmul.mubr.msk.bf16.gmra.mrb[136].mxu0 %vm1068_vm0, %v9120_v60 }
 0x822   : > { %3218 = vmatprep.mubr.bf16.mxu0 %v8635_v17 }
 0x824   : > { %2004 = vmatmul.mubr.bf16.gmra.mrb[60].mxu1 %v8239_v13  ;;  %v7138_v13 = vcombine.high %v3400_v7, %v3404_v25 }
 0x825   : > { %2013 = vmatprep.mubr.bf16.mxu1 %v8635_v17 }
 0x829   : > { %7068 = vmatmul.mubr.msk.bf16.gmra.mrb[140].mxu0 %vm1068_vm0, %v9118_v58 }
 0x82a   : > { %3758 = vmatprep.mubr.bf16.mxu0 %v8635_v17 }
 0x82c   : > { %2014 = vmatmul.mubr.bf16.gmra.mrb[64].mxu1 %v8240_v19  ;;  %v4322_v19 = vld [vmem:[#allocation18] sm:$0xff] }
 0x82d   : > { %2023 = vmatprep.mubr.bf16.mxu1 %v8635_v17 }
 0x831   : > { %3759 = vmatmul.mubr.bf16.vlgmr.msra.gmra.mrb[80].mxu0 %v9213_v23 }
 0x832   : > { %3768 = vmatprep.mubr.bf16.mxu0 %v8635_v17  ;;  %3953 = vmatpush1.bf16.msra.mxu0 %v7081_v26  ;;  %v6964_v26 = vcombine.high %v2097_v10, %v2101_v24 }
 0x833   : > { %3954 = vmatprep.subr.bf16.mxu0 %v7090_v28  ;;  %v7137_v28 = vcombine.low %v3400_v7, %v3404_v25  ;;  %v4354_v7 = vld [vmem:[#allocation18 + $0x100] sm:$0xff] }
 0x834   : > { %2024 = vmatmul.mubr.bf16.gmra.mrb[68].mxu1 %v8241_v33  ;;  %v6972_v33 = vcombine.high %v2105_v29, %v2109_v30  ;;  %v4358_v25 = vld [vmem:[#allocation18 + $0x120] sm:$0xff] }
 0x835   : > { %2033 = vmatprep.mubr.bf16.mxu1 %v8635_v17  ;;  %v4378_v30 = vld [vmem:[#allocation18 + $0x1c0] sm:$0xff] }
 0x836   : > { %3955 = vmatpush1.bf16.msra.mxu0 %v7089_v31  ;;  %v7142_v31 = vcombine.high %v4322_v19, %v4326_v21 }
 0x837   : > { %3956 = vmatprep.subr.bf16.mxu0 %v7098_v32  ;;  %v6963_v32 = vcombine.low %v2097_v10, %v2101_v24  ;;  %v7174_v10 = vcombine.high %v4354_v7, %v4358_v25  ;;  %v4362_v24 = vld [vmem:[#allocation18 + $0x140] sm:$0xff] }
 0x839   : > { %3769 = vmatmul.mubr.bf16.gmra.mrb[84].mxu0 %v9211_v15 }
 0x83a   : > { %3778 = vmatprep.mubr.bf16.mxu0 %v8635_v17  ;;  %3957 = vmatpush1.bf16.msra.mxu0 %v7097_v36  ;;  %v9428_v36 = vld [vmem:[#allocation13 + $0x8] sm:$0xff] }
 0x83b   : > { %3958 = vmatprep.subr.bf16.mxu0 %v7106_v38  ;;  %v9430_v38 = vld [vmem:[#allocation13 + $0x28] sm:$0xff] }
 0x83c   : > { %2034 = vmatmul.mubr.bf16.gmra.mrb[72].mxu1 %v8242_v44  ;;  %v7016_v11 = vcombine.high %v9428_v36, %v9430_v38  ;;  %v7141_v44 = vcombine.low %v4322_v19, %v4326_v21  ;;  %v7173_v19 = vcombine.low %v4354_v7, %v4358_v25 }
 0x83d   : > { %2043 = vmatprep.mubr.bf16.mxu1 %v8635_v17 }
 0x83e   : > { %3959 = vmatpush1.bf16.msra.mxu0 %v7105_v18  ;;  %v4330_v18 = vld [vmem:[#allocation18 + $0x40] sm:$0xff] }
 0x83f   : > { %3960 = vmatprep.subr.bf16.mxu0 %v7114_v43  ;;  %v4334_v43 = vld [vmem:[#allocation18 + $0x60] sm:$0xff] }
 0x840   : > { %v7150_v4 = vcombine.high %v4330_v18, %v4334_v43 }
 0x841   : > { %3779 = vmatmul.mubr.bf16.gmra.mrb[88].mxu0 %v9219_v37 }
 0x842   : > { %3788 = vmatprep.mubr.bf16.mxu0 %v8635_v17  ;;  %3961 = vmatpush1.bf16.msra.mxu0 %v7113_v50  ;;  %v4342_v50 = vld [vmem:[#allocation18 + $0xa0] sm:$0xff] }
 0x843   : > { %3962 = vmatprep.subr.bf16.mxu0 %v7122_v61  ;;  %v7149_v61 = vcombine.low %v4330_v18, %v4334_v43  ;;  %v7158_v51 = vcombine.high %v4338_v49, %v4342_v50  ;;  %v2071_v43 = vld [vmem:[#allocation13 + $0x88] sm:$0xff] }
 0x844   : > { %2044 = vmatmul.mubr.bf16.gmra.mrb[76].mxu1 %v8243_v5 }
 0x845   : > { %2423 = vmatprep.mubr.bf16.mxu1 %v8635_v17 }
 0x846   : > { %3963 = vmatpush1.bf16.msra.mxu0 %v7121_v63  ;;  %v4350_v63 = vld [vmem:[#allocation18 + $0xe0] sm:$0xff] }
 0x847   : > { %3964 = vmatprep.subr.bf16.mxu0 %v7130_v2  ;;  %v7157_v2 = vcombine.low %v4338_v49, %v4342_v50  ;;  %v7166_v5 = vcombine.high %v4346_v57, %v4350_v63  ;;  %v4394_v50 = vld [vmem:[#allocation18 + $0x240] sm:$0xff] }
 0x849   : > { %3789 = vmatmul.mubr.bf16.gmra.mrb[92].mxu0 %v9217_v35 }
 0x84a   : > { %3798 = vmatprep.mubr.bf16.mxu0 %v8635_v17  ;;  %3965 = vmatpush1.bf16.msra.mxu0 %v7129_v16  ;;  %v7165_v16 = vcombine.low %v4346_v57, %v4350_v63 }
 0x84b   : > { %3966 = vmatprep.subr.bf16.mxu0 %v7138_v13  ;;  %v4366_v13 = vld [vmem:[#allocation18 + $0x160] sm:$0xff] }
 0x84c   : > { %6989 = vmatmul.mubr.msk.bf16.vlgmr.msra.gmra.mrb[80].mxu1 %vm1068_vm0, %v9154_v39  ;;  %v7182_v21 = vcombine.high %v4362_v24, %v4366_v13 }
 0x84d   : > { %2618 = vmatpush1.bf16.msra.mxu1 %v6955_v27  ;;  %2433 = vmatprep.mubr.bf16.mxu1 %v8635_v17  ;;  %v4370_v27 = vld [vmem:[#allocation18 + $0x180] sm:$0xff] }
 0x84e   : > { %2619 = vmatprep.subr.bf16.mxu1 %v6964_v26  ;;  %3967 = vmatpush1.bf16.msra.mxu0 %v7137_v28  ;;  %v4374_v26 = vld [vmem:[#allocation18 + $0x1a0] sm:$0xff]  ;;  %v7181_v28 = vcombine.low %v4362_v24, %v4366_v13 }
 0x84f   : > { %5090 = vmatprep.subr.bf16.mxu0 %v7142_v31  ;;  %v7190_v29 = vcombine.high %v4370_v27, %v4374_v26  ;;  %v4382_v31 = vld [vmem:[#allocation18 + $0x1e0] sm:$0xff] }
 0x850   : > { %v7198_v9 = vcombine.high %v4378_v30, %v4382_v31  ;;  %v7197_v18 = vcombine.low %v4378_v30, %v4382_v31 }
 0x851   : > { %3799 = vmatmul.mubr.bf16.gmra.mrb[96].mxu0 %v9225_v59  ;;  %2620 = vmatpush1.bf16.msra.mxu1 %v6963_v32  ;;  %v7189_v32 = vcombine.low %v4370_v27, %v4374_v26 }
 0x852   : > { %3808 = vmatprep.mubr.bf16.mxu0 %v8635_v17  ;;  %2621 = vmatprep.subr.bf16.mxu1 %v6972_v33  ;;  %v2063_v33 = vld [vmem:[#allocation13 + $0x48] sm:$0xff] }
 0x853   : > { %v7023_v49 = vcombine.low %v2063_v33, %v2067_v8 }
 0x854   : > { %6990 = vmatmul.mubr.msk.bf16.gmra.mrb[84].mxu1 %vm1068_vm0, %v9152_v20 }
 0x855   : > { %2443 = vmatprep.mubr.bf16.mxu1 %v8635_v17  ;;  %2622 = vmatpush1.bf16.msra.mxu1 %v6971_v34  ;;  %v4386_v34 = vld [vmem:[#allocation18 + $0x200] sm:$0xff] }
 0x856   : > { %2623 = vmatprep.subr.bf16.mxu1 %v6980_v1  ;;  %v4390_v1 = vld [vmem:[#allocation18 + $0x220] sm:$0xff] }
 0x857   : > { %v7205_v57 = vcombine.low %v4386_v34, %v4390_v1 }
 0x859   : > { %3809 = vmatmul.mubr.bf16.gmra.mrb[100].mxu0 %v9223_v55  ;;  %2624 = vmatpush1.bf16.msra.mxu1 %v6979_v41  ;;  %v7015_v41 = vcombine.low %v9428_v36, %v9430_v38  ;;  %v2079_v38 = vld [vmem:[#allocation13 + $0xc8] sm:$0xff] }
 0x85a   : > { %3818 = vmatprep.mubr.bf16.mxu0 %v8635_v17  ;;  %3003 = vmatprep.subr.bf16.mxu1 %v7016_v11  ;;  %v7024_v11 = vcombine.high %v2063_v33, %v2067_v8  ;;  %v4430_v33 = vld [vmem:[#allocation18 + $0x360] sm:$0xff] }
 0x85c   : > { %6991 = vmatmul.mubr.msk.bf16.gmra.mrb[88].mxu1 %vm1068_vm0, %v9162_v47 }
 0x85d   : > { %2453 = vmatprep.mubr.bf16.mxu1 %v8635_v17 }
 0x861   : > { %3819 = vmatmul.mubr.bf16.gmra.mrb[104].mxu0 %v9231_v6 }
 0x862   : > { %3828 = vmatprep.mubr.bf16.mxu0 %v8635_v17 }
 0x864   : > { %6992 = vmatmul.mubr.msk.bf16.gmra.mrb[92].mxu1 %vm1068_vm0, %v9160_v45 }
 0x865   : > { %2463 = vmatprep.mubr.bf16.mxu1 %v8635_v17 }
 0x869   : > { %3829 = vmatmul.mubr.bf16.gmra.mrb[108].mxu0 %v9229_v3 }
 0x86a   : > { %3984 = vmatprep.mubr.bf16.mxu0 %v8635_v17 }
 0x86c   : > { %6993 = vmatmul.mubr.msk.bf16.gmra.mrb[96].mxu1 %vm1068_vm0, %v9170_v56 }
 0x86d   : > { %2473 = vmatprep.mubr.bf16.mxu1 %v8635_v17 }
 0x871   : > { %3985 = vmatmul.mubr.bf16.vlgmr.msra.gmra.mrb[112].mxu0 %v9213_v23 }
 0x872   : > { %3994 = vmatprep.mubr.bf16.mxu0 %v8635_v17  ;;  %5091 = vmatpush1.bf16.msra.mxu0 %v7141_v44  ;;  %v2075_v44 = vld [vmem:[#allocation13 + $0xa8] sm:$0xff] }
 0x873   : > { %5092 = vmatprep.subr.bf16.mxu0 %v7150_v4  ;;  %v7206_v4 = vcombine.high %v4386_v34, %v4390_v1  ;;  %v7032_v36 = vcombine.high %v2071_v43, %v2075_v44  ;;  %v4434_v34 = vld [vmem:[#allocation18 + $0x380] sm:$0xff] }
 0x874   : > { %6994 = vmatmul.mubr.msk.bf16.gmra.mrb[100].mxu1 %vm1068_vm0, %v9168_v53  ;;  %v4438_v1 = vld [vmem:[#allocation18 + $0x3a0] sm:$0xff] }
 0x875   : > { %2483 = vmatprep.mubr.bf16.mxu1 %v8635_v17 }
 0x876   : > { %5093 = vmatpush1.bf16.msra.mxu0 %v7149_v61  ;;  %v4398_v61 = vld [vmem:[#allocation18 + $0x260] sm:$0xff] }
 0x877   : > { %5094 = vmatprep.subr.bf16.mxu0 %v7158_v51  ;;  %v2083_v51 = vld [vmem:[#allocation13 + $0xe8] sm:$0xff]  ;;  %v7214_v63 = vcombine.high %v4394_v50, %v4398_v61  ;;  %v7213_v25 = vcombine.low %v4394_v50, %v4398_v61  ;;  %v2069_v61 = vld [vmem:[#allocation13 + $0x78] sm:$0xff] }
 0x878   : > { %v7040_v7 = vcombine.high %v2079_v38, %v2083_v51  ;;  %v7039_v13 = vcombine.low %v2079_v38, %v2083_v51  ;;  %v2073_v51 = vld [vmem:[#allocation13 + $0x98] sm:$0xff] }
 0x879   : > { %3995 = vmatmul.mubr.bf16.gmra.mrb[116].mxu0 %v9211_v15 }
 0x87a   : > { %4004 = vmatprep.mubr.bf16.mxu0 %v8635_v17  ;;  %5095 = vmatpush1.bf16.msra.mxu0 %v7157_v2  ;;  %v7031_v2 = vcombine.low %v2071_v43, %v2075_v44  ;;  %v7253_v43 = vcombine.low %v4434_v34, %v4438_v1 }
 0x87b   : > { %5096 = vmatprep.subr.bf16.mxu0 %v7166_v5  ;;  %v4402_v5 = vld [vmem:[#allocation18 + $0x280] sm:$0xff] }
 0x87c   : > { %6995 = vmatmul.mubr.msk.bf16.gmra.mrb[104].mxu1 %vm1068_vm0, %v9178_v0 }
 0x87d   : > { %2493 = vmatprep.mubr.bf16.mxu1 %v8635_v17 }
 0x87e   : > { %5097 = vmatpush1.bf16.msra.mxu0 %v7165_v16  ;;  %v9476_v16 = vld [vmem:[#allocation13 + $0x18] sm:$0xff] }
 0x87f   : > { %5098 = vmatprep.subr.bf16.mxu0 %v7174_v10  ;;  %v9478_v10 = vld [vmem:[#allocation13 + $0x38] sm:$0xff] }
 0x880   : > { %v7020_v27 = vcombine.high %v9476_v16, %v9478_v10 }
 0x881   : > { %4005 = vmatmul.mubr.bf16.gmra.mrb[120].mxu0 %v9219_v37 }
 0x882   : > { %4014 = vmatprep.mubr.bf16.mxu0 %v8635_v17  ;;  %5099 = vmatpush1.bf16.msra.mxu0 %v7173_v19  ;;  %v4410_v19 = vld [vmem:[#allocation18 + $0x2c0] sm:$0xff] }
 0x883   : > { %5100 = vmatprep.subr.bf16.mxu0 %v7182_v21  ;;  %v4414_v21 = vld [vmem:[#allocation18 + $0x2e0] sm:$0xff] }
 0x884   : > { %6996 = vmatmul.mubr.msk.bf16.gmra.mrb[108].mxu1 %vm1068_vm0, %v9176_v62  ;;  %v7229_v30 = vcombine.low %v4410_v19, %v4414_v21 }
 0x885   : > { %2649 = vmatprep.mubr.bf16.mxu1 %v8635_v17 }
 0x886   : > { %5101 = vmatpush1.bf16.msra.mxu0 %v7181_v28  ;;  %v7230_v28 = vcombine.high %v4410_v19, %v4414_v21  ;;  %v4332_v19 = vld [vmem:[#allocation18 + $0x50] sm:$0xff] }
 0x887   : > { %5102 = vmatprep.subr.bf16.mxu0 %v7190_v29  ;;  %v4422_v29 = vld [vmem:[#allocation18 + $0x320] sm:$0xff]  ;;  %v4336_v21 = vld [vmem:[#allocation18 + $0x70] sm:$0xff] }
 0x889   : > { %4015 = vmatmul.mubr.bf16.gmra.mrb[124].mxu0 %v9217_v35 }
 0x88a   : > { %4024 = vmatprep.mubr.bf16.mxu0 %v8635_v17  ;;  %5103 = vmatpush1.bf16.msra.mxu0 %v7189_v32  ;;  %v4426_v32 = vld [vmem:[#allocation18 + $0x340] sm:$0xff] }
 0x88b   : > { %5104 = vmatprep.subr.bf16.mxu0 %v7198_v9  ;;  %v7246_v9 = vcombine.high %v4426_v32, %v4430_v33 }
 0x88c   : > { %7005 = vmatmul.mubr.msk.bf16.vlgmr.msra.gmra.mrb[112].mxu1 %vm1068_vm0, %v9154_v39  ;;  %v4406_v39 = vld [vmem:[#allocation18 + $0x2a0] sm:$0xff] }
 0x88d   : > { %3004 = vmatpush1.bf16.msra.mxu1 %v7015_v41  ;;  %2659 = vmatprep.mubr.bf16.mxu1 %v8635_v17  ;;  %v7222_v24 = vcombine.high %v4402_v5, %v4406_v39  ;;  %v7221_v26 = vcombine.low %v4402_v5, %v4406_v39  ;;  %v7245_v41 = vcombine.low %v4426_v32, %v4430_v33  ;;  %v9516_v39 = vld [vmem:[#allocation16 + $0x8] sm:$0xff] }
 0x88e   : > { %3005 = vmatprep.subr.bf16.mxu1 %v7024_v11  ;;  %5105 = vmatpush1.bf16.msra.mxu0 %v7197_v18  ;;  %v4442_v11 = vld [vmem:[#allocation18 + $0x3c0] sm:$0xff]  ;;  %v7153_v33 = vcombine.low %v4332_v19, %v4336_v21 }
 0x88f   : > { %5106 = vmatprep.subr.bf16.mxu0 %v7206_v4  ;;  %v4446_v18 = vld [vmem:[#allocation18 + $0x3e0] sm:$0xff]  ;;  %v9496_v4 = vld [vmem:[#allocation18 + $0x10] sm:$0xff] }
 0x890   : > { %v7262_v44 = vcombine.high %v4442_v11, %v4446_v18  ;;  %v7261_v50 = vcombine.low %v4442_v11, %v4446_v18 }
 0x891   : > { %4025 = vmatmul.mubr.bf16.gmra.mrb[128].mxu0 %v9225_v59  ;;  %3006 = vmatpush1.bf16.msra.mxu1 %v7023_v49  ;;  %v4328_v49 = vld [vmem:[#allocation18 + $0x30] sm:$0xff] }
 0x892   : > { %4034 = vmatprep.mubr.bf16.mxu0 %v8635_v17  ;;  %3007 = vmatprep.subr.bf16.mxu1 %v7032_v36  ;;  %v7019_v36 = vcombine.low %v9476_v16, %v9478_v10 }
 0x893   : > { %5107 = vmatpush1.bf16.msra.mxu0 %v7205_v57 }
 0x894   : > { %7006 = vmatmul.mubr.msk.bf16.gmra.mrb[116].mxu1 %vm1068_vm0, %v9152_v20  ;;  %5108 = vmatprep.subr.bf16.mxu0 %v7214_v63  ;;  %v4418_v20 = vld [vmem:[#allocation18 + $0x300] sm:$0xff]  ;;  %v2085_v63 = vld [vmem:[#allocation13 + $0xf8] sm:$0xff] }
 0x895   : > { %2669 = vmatprep.mubr.bf16.mxu1 %v8635_v17  ;;  %3008 = vmatpush1.bf16.msra.mxu1 %v7031_v2  ;;  %v7238_v31 = vcombine.high %v4418_v20, %v4422_v29  ;;  %v7237_v8 = vcombine.low %v4418_v20, %v4422_v29  ;;  %v7145_v20 = vcombine.low %v9496_v4, %v4328_v49 }
 0x896   : > { %3009 = vmatprep.subr.bf16.mxu1 %v7040_v7  ;;  %v9518_v7 = vld [vmem:[#allocation16 + $0x28] sm:$0xff]  ;;  %v7154_v29 = vcombine.high %v4332_v19, %v4336_v21  ;;  %v4380_v19 = vld [vmem:[#allocation18 + $0x1d0] sm:$0xff] }
 0x897   : > { %5109 = vmatpush1.bf16.msra.mxu0 %v7213_v25  ;;  %v7080_v16 = vcombine.high %v9516_v39, %v9518_v7  ;;  %v4384_v21 = vld [vmem:[#allocation18 + $0x1f0] sm:$0xff] }
 0x898   : > { %5110 = vmatprep.subr.bf16.mxu0 %v7222_v24 }
 0x899   : > { %4035 = vmatmul.mubr.bf16.gmra.mrb[132].mxu0 %v9223_v55  ;;  %3010 = vmatpush1.bf16.msra.mxu1 %v7039_v13 }
 0x89a   : > { %4044 = vmatprep.mubr.bf16.mxu0 %v8635_v17  ;;  %3229 = vmatprep.subr.bf16.mxu1 %v7020_v27 }
 0x89b   : > { %5111 = vmatpush1.bf16.msra.mxu0 %v7221_v26 }
 0x89c   : > { %7007 = vmatmul.mubr.msk.bf16.gmra.mrb[120].mxu1 %vm1068_vm0, %v9162_v47  ;;  %5112 = vmatprep.subr.bf16.mxu0 %v7230_v28  ;;  %v7254_v47 = vcombine.high %v4434_v34, %v4438_v1  ;;  %v4348_v1 = vld [vmem:[#allocation18 + $0xd0] sm:$0xff] }
 0x89d   : > { %2679 = vmatprep.mubr.bf16.mxu1 %v8635_v17 }
 0x89f   : > { %5113 = vmatpush1.bf16.msra.mxu0 %v7229_v30  ;;  %v4340_v30 = vld [vmem:[#allocation18 + $0x90] sm:$0xff] }
 0x8a0   : > { %5114 = vmatprep.subr.bf16.mxu0 %v7238_v31  ;;  %v4344_v31 = vld [vmem:[#allocation18 + $0xb0] sm:$0xff] }
 0x8a1   : > { %4045 = vmatmul.mubr.bf16.gmra.mrb[136].mxu0 %v9231_v6 }
 0x8a2   : > { %4054 = vmatprep.mubr.bf16.mxu0 %v8635_v17 }
 0x8a3   : > { %5115 = vmatpush1.bf16.msra.mxu0 %v7237_v8 }
 0x8a4   : > { %7008 = vmatmul.mubr.msk.bf16.gmra.mrb[124].mxu1 %vm1068_vm0, %v9160_v45  ;;  %5116 = vmatprep.subr.bf16.mxu0 %v7246_v9  ;;  %v7146_v45 = vcombine.high %v9496_v4, %v4328_v49  ;;  %v7162_v9 = vcombine.high %v4340_v30, %v4344_v31  ;;  %v4356_v4 = vld [vmem:[#allocation18 + $0x110] sm:$0xff] }
 0x8a5   : > { %2689 = vmatprep.mubr.bf16.mxu1 %v8635_v17  ;;  %v4360_v49 = vld [vmem:[#allocation18 + $0x130] sm:$0xff] }
 0x8a7   : > { %5117 = vmatpush1.bf16.msra.mxu0 %v7245_v41  ;;  %v4352_v41 = vld [vmem:[#allocation18 + $0xf0] sm:$0xff] }
 0x8a8   : > { %5118 = vmatprep.subr.bf16.mxu0 %v7254_v47 }
 0x8a9   : > { %4055 = vmatmul.mubr.bf16.gmra.mrb[140].mxu0 %v9229_v3 }
 0x8ab   : > { %5119 = vmatpush1.bf16.msra.mxu0 %v7253_v43  ;;  %v7161_v43 = vcombine.low %v4340_v30, %v4344_v31  ;;  %v7202_v31 = vcombine.high %v4380_v19, %v4384_v21 }
 0x8ac   : > { %7009 = vmatmul.mubr.msk.bf16.gmra.mrb[128].mxu1 %vm1068_vm0, %v9170_v56  ;;  %5120 = vmatprep.subr.bf16.mxu0 %v7262_v44  ;;  %v2065_v56 = vld [vmem:[#allocation13 + $0x58] sm:$0xff]  ;;  %v7170_v44 = vcombine.high %v4348_v1, %v4352_v41 }
 0x8ad   : > { %2699 = vmatprep.mubr.bf16.mxu1 %v8635_v17  ;;  %v7028_v38 = vcombine.high %v2065_v56, %v2069_v61 }
 0x8af   : > { %5121 = vmatpush1.bf16.msra.mxu0 %v7261_v50 }
 0x8b0   : > { %5316 = vmatprep.subr.bf16.mxu0 %v7146_v45  ;;  %v7169_v45 = vcombine.low %v4348_v1, %v4352_v41 }
 0x8b4   : > { %7010 = vmatmul.mubr.msk.bf16.gmra.mrb[132].mxu1 %vm1068_vm0, %v9168_v53  ;;  %v2077_v53 = vld [vmem:[#allocation13 + $0xb8] sm:$0xff] }
 0x8b5   : > { %2709 = vmatprep.mubr.bf16.mxu1 %v8635_v17  ;;  %v7036_v57 = vcombine.high %v2073_v51, %v2077_v53  ;;  %v7035_v2 = vcombine.low %v2073_v51, %v2077_v53  ;;  %v4368_v51 = vld [vmem:[#allocation18 + $0x170] sm:$0xff] }
 0x8bc   : > { %7011 = vmatmul.mubr.msk.bf16.gmra.mrb[136].mxu1 %vm1068_vm0, %v9178_v0  ;;  %v7027_v0 = vcombine.low %v2065_v56, %v2069_v61  ;;  %v7178_v61 = vcombine.high %v4356_v4, %v4360_v49 }
 0x8bd   : > { %2719 = vmatprep.mubr.bf16.mxu1 %v8635_v17 }
 0x8c4   : > { %7012 = vmatmul.mubr.msk.bf16.gmra.mrb[140].mxu1 %vm1068_vm0, %v9176_v62  ;;  %v2081_v62 = vld [vmem:[#allocation13 + $0xd8] sm:$0xff] }
 0x8c5   : > { %3035 = vmatprep.mubr.bf16.mxu1 %v8635_v17  ;;  %v7044_v5 = vcombine.high %v2081_v62, %v2085_v63  ;;  %v7043_v25 = vcombine.low %v2081_v62, %v2085_v63  ;;  %v7177_v62 = vcombine.low %v4356_v4, %v4360_v49 }
 0x8cc   : > { %7053 = vmatmul.mubr.msk.bf16.vlgmr.msra.gmra.mrb[80].mxu1 %vm1068_vm0, %v9096_v42 }
 0x8cd   : > { %3230 = vmatpush1.bf16.msra.mxu1 %v7019_v36  ;;  %3045 = vmatprep.mubr.bf16.mxu1 %v8635_v17 }
 0x8ce   : > { %3231 = vmatprep.subr.bf16.mxu1 %v7028_v38  ;;  %v4364_v38 = vld [vmem:[#allocation18 + $0x150] sm:$0xff] }
 0x8cf   : > { %v7186_v63 = vcombine.high %v4364_v38, %v4368_v51 }
 0x8d1   : > { %3232 = vmatpush1.bf16.msra.mxu1 %v7027_v0 }
 0x8d2   : > { %3233 = vmatprep.subr.bf16.mxu1 %v7036_v57 }
 0x8d4   : > { %7054 = vmatmul.mubr.msk.bf16.gmra.mrb[84].mxu1 %vm1068_vm0, %v9094_v40 }
 0x8d5   : > { %3055 = vmatprep.mubr.bf16.mxu1 %v8635_v17  ;;  %3234 = vmatpush1.bf16.msra.mxu1 %v7035_v2  ;;  %v4372_v2 = vld [vmem:[#allocation18 + $0x190] sm:$0xff] }
 0x8d6   : > { %3235 = vmatprep.subr.bf16.mxu1 %v7044_v5  ;;  %v4376_v5 = vld [vmem:[#allocation18 + $0x1b0] sm:$0xff] }
 0x8d7   : > { %v7193_v30 = vcombine.low %v4372_v2, %v4376_v5 }
 0x8d9   : > { %3236 = vmatpush1.bf16.msra.mxu1 %v7043_v25 }
 0x8da   : > { %3839 = vmatprep.subr.bf16.mxu1 %v7080_v16  ;;  %v7185_v16 = vcombine.low %v4364_v38, %v4368_v51 }
 0x8dc   : > { %7055 = vmatmul.mubr.msk.bf16.gmra.mrb[88].mxu1 %vm1068_vm0, %v9104_v48 }
 0x8dd   : > { %3065 = vmatprep.mubr.bf16.mxu1 %v8635_v17 }
 0x8df   : > { %v1975_v10 = vpop.f32.mrb[48].mxu1 }
 0x8e0   : > { %v1977_v24 = vpop.f32.mrb[49].mxu1 }
 0x8e1   : > { %v1979_v13 = vpop.f32.mrb[50].mxu1 }
 0x8e2   : > { %v9528_v27 = vpack.c.bf16 %v1979_v13, %v1975_v10  ;;  %v1981_v26 = vpop.f32.mrb[51].mxu1 }
 0x8e3   : > { %v9530_v28 = vpack.c.bf16 %v1981_v26, %v1977_v24  ;;  %v7194_v24 = vcombine.high %v4372_v2, %v4376_v5  ;;  %v7079_v5 = vcombine.low %v9516_v39, %v9518_v7  ;;  %v4420_v7 = vld [vmem:[#allocation18 + $0x310] sm:$0xff] }
 0x8e4   : > { %7056 = vmatmul.mubr.msk.bf16.gmra.mrb[92].mxu1 %vm1068_vm0, %v9102_v46 }
 0x8e5   : > { %5122 = vmatprep.mubr.bf16.mxu0 %v9530_v28  ;;  %3075 = vmatprep.mubr.bf16.mxu1 %v8635_v17 }
 0x8e6   : > { %5123 = vmatmul.mubr.bf16.vlgmr.msra.gmra.mrb[80].mxu0 %v9528_v27 }
 0x8e7   : > { %v1985_v32 = vpop.f32.mrb[52].mxu1  ;;  %5317 = vmatpush1.bf16.msra.mxu0 %v7145_v20 }
 0x8e8   : > { %v1987_v8 = vpop.f32.mrb[53].mxu1  ;;  %5318 = vmatprep.subr.bf16.mxu0 %v7154_v29 }
 0x8e9   : > { %v1989_v34 = vpop.f32.mrb[54].mxu1 }
 0x8ea   : > { %v9538_v47 = vpack.c.bf16 %v1989_v34, %v1985_v32  ;;  %v1991_v11 = vpop.f32.mrb[55].mxu1  ;;  %v4388_v32 = vld [vmem:[#allocation18 + $0x210] sm:$0xff] }
 0x8eb   : > { %v9540_v18 = vpack.c.bf16 %v1991_v11, %v1987_v8  ;;  %5319 = vmatpush1.bf16.msra.mxu0 %v7153_v33  ;;  %v4392_v33 = vld [vmem:[#allocation18 + $0x230] sm:$0xff] }
 0x8ec   : > { %7057 = vmatmul.mubr.msk.bf16.gmra.mrb[96].mxu1 %vm1068_vm0, %v9112_v54  ;;  %5320 = vmatprep.subr.bf16.mxu0 %v7162_v9  ;;  %v7201_v9 = vcombine.low %v4380_v19, %v4384_v21  ;;  %v7210_v1 = vcombine.high %v4388_v32, %v4392_v33  ;;  %v4396_v11 = vld [vmem:[#allocation18 + $0x250] sm:$0xff] }
 0x8ed   : > { %5132 = vmatprep.mubr.bf16.mxu0 %v9540_v18  ;;  %3085 = vmatprep.mubr.bf16.mxu1 %v8635_v17 }
 0x8ee   : > { %5133 = vmatmul.mubr.bf16.gmra.mrb[84].mxu0 %v9538_v47 }
 0x8ef   : > { %v1995_v50 = vpop.f32.mrb[56].mxu1  ;;  %5321 = vmatpush1.bf16.msra.mxu0 %v7161_v43  ;;  %v4400_v43 = vld [vmem:[#allocation18 + $0x270] sm:$0xff] }
 0x8f0   : > { %v1997_v56 = vpop.f32.mrb[57].mxu1  ;;  %5322 = vmatprep.subr.bf16.mxu0 %v7170_v44  ;;  %v7217_v38 = vcombine.low %v4396_v11, %v4400_v43 }
 0x8f1   : > { %v1999_v36 = vpop.f32.mrb[58].mxu1 }
 0x8f2   : > { %v9547_v53 = vpack.c.bf16 %v1999_v36, %v1995_v50  ;;  %v2001_v0 = vpop.f32.mrb[59].mxu1  ;;  %v7209_v50 = vcombine.low %v4388_v32, %v4392_v33  ;;  %v4424_v32 = vld [vmem:[#allocation18 + $0x330] sm:$0xff] }
 0x8f3   : > { %v9549_v57 = vpack.c.bf16 %v2001_v0, %v1997_v56  ;;  %5323 = vmatpush1.bf16.msra.mxu0 %v7169_v45  ;;  %v7218_v45 = vcombine.high %v4396_v11, %v4400_v43  ;;  %v4404_v56 = vld [vmem:[#allocation18 + $0x290] sm:$0xff] }
 0x8f4   : > { %7058 = vmatmul.mubr.msk.bf16.gmra.mrb[100].mxu1 %vm1068_vm0, %v9110_v52  ;;  %5324 = vmatprep.subr.bf16.mxu0 %v7178_v61  ;;  %v4408_v61 = vld [vmem:[#allocation18 + $0x2b0] sm:$0xff] }
 0x8f5   : > { %5142 = vmatprep.mubr.bf16.mxu0 %v9549_v57  ;;  %3095 = vmatprep.mubr.bf16.mxu1 %v8635_v17  ;;  %v7226_v0 = vcombine.high %v4404_v56, %v4408_v61  ;;  %v7225_v19 = vcombine.low %v4404_v56, %v4408_v61  ;;  %v4428_v43 = vld [vmem:[#allocation18 + $0x350] sm:$0xff] }
 0x8f6   : > { %5143 = vmatmul.mubr.bf16.gmra.mrb[88].mxu0 %v9547_v53 }
 0x8f7   : > { %v2005_v25 = vpop.f32.mrb[60].mxu1  ;;  %5325 = vmatpush1.bf16.msra.mxu0 %v7177_v62  ;;  %v3351_v62 = vld [vmem:[#allocation16 + $0x48] sm:$0xff] }
 0x8f8   : > { %v2007_v10 = vpop.f32.mrb[61].mxu1  ;;  %5326 = vmatprep.subr.bf16.mxu0 %v7186_v63  ;;  %v3355_v63 = vld [vmem:[#allocation16 + $0x68] sm:$0xff] }
 0x8f9   : > { %v2009_v13 = vpop.f32.mrb[62].mxu1  ;;  %v7088_v21 = vcombine.high %v3351_v62, %v3355_v63  ;;  %v7087_v39 = vcombine.low %v3351_v62, %v3355_v63  ;;  %v3379_v62 = vld [vmem:[#allocation16 + $0x128] sm:$0xff]  ;;  %v4436_v63 = vld [vmem:[#allocation18 + $0x390] sm:$0xff] }
 0x8fa   : > { %v9556_v26 = vpack.c.bf16 %v2009_v13, %v2005_v25  ;;  %v2011_v20 = vpop.f32.mrb[63].mxu1  ;;  %v4412_v25 = vld [vmem:[#allocation18 + $0x2d0] sm:$0xff] }
 0x8fb   : > { %v9558_v29 = vpack.c.bf16 %v2011_v20, %v2007_v10  ;;  %5327 = vmatpush1.bf16.msra.mxu0 %v7185_v16  ;;  %v4416_v16 = vld [vmem:[#allocation18 + $0x2f0] sm:$0xff]  ;;  %v3359_v20 = vld [vmem:[#allocation16 + $0x88] sm:$0xff] }
 0x8fc   : > { %7059 = vmatmul.mubr.msk.bf16.gmra.mrb[104].mxu1 %vm1068_vm0, %v9120_v60  ;;  %5328 = vmatprep.subr.bf16.mxu0 %v7194_v24 }
 0x8fd   : > { %5152 = vmatprep.mubr.bf16.mxu0 %v9558_v29  ;;  %3105 = vmatprep.mubr.bf16.mxu1 %v8635_v17 }
 0x8fe   : > { %5153 = vmatmul.mubr.bf16.gmra.mrb[92].mxu0 %v9556_v26 }
 0x8ff   : > { %v2015_v8 = vpop.f32.mrb[64].mxu1  ;;  %5329 = vmatpush1.bf16.msra.mxu0 %v7193_v30  ;;  %v3363_v30 = vld [vmem:[#allocation16 + $0xa8] sm:$0xff] }
 0x900   : > { %v2017_v34 = vpop.f32.mrb[65].mxu1  ;;  %5330 = vmatprep.subr.bf16.mxu0 %v7202_v31  ;;  %v7234_v31 = vcombine.high %v4412_v25, %v4416_v16  ;;  %v7096_v33 = vcombine.high %v3359_v20, %v3363_v30  ;;  %v7095_v56 = vcombine.low %v3359_v20, %v3363_v30  ;;  %v4448_v30 = vld [vmem:[#allocation18 + $0x3f0] sm:$0xff] }
 0x901   : > { %v2019_v41 = vpop.f32.mrb[66].mxu1 }
 0x902   : > { %v9565_v44 = vpack.c.bf16 %v2019_v41, %v2015_v8  ;;  %v2021_v4 = vpop.f32.mrb[67].mxu1  ;;  %v3371_v41 = vld [vmem:[#allocation16 + $0xe8] sm:$0xff] }
 0x903   : > { %v9567_v49 = vpack.c.bf16 %v2021_v4, %v2017_v34  ;;  %5331 = vmatpush1.bf16.msra.mxu0 %v7201_v9  ;;  %v7233_v9 = vcombine.low %v4412_v25, %v4416_v16  ;;  %v4432_v4 = vld [vmem:[#allocation18 + $0x370] sm:$0xff] }
 0x904   : > { %7060 = vmatmul.mubr.msk.bf16.gmra.mrb[108].mxu1 %vm1068_vm0, %v9118_v58  ;;  %5332 = vmatprep.subr.bf16.mxu0 %v7210_v1  ;;  %v3367_v1 = vld [vmem:[#allocation16 + $0xc8] sm:$0xff]  ;;  %v7249_v16 = vcombine.low %v4428_v43, %v4432_v4 }
 0x905   : > { %5162 = vmatprep.mubr.bf16.mxu0 %v9567_v49  ;;  %3261 = vmatprep.mubr.bf16.mxu1 %v8635_v17 }
 0x906   : > { %5163 = vmatmul.mubr.bf16.gmra.mrb[96].mxu0 %v9565_v44 }
 0x907   : > { %v2025_v36 = vpop.f32.mrb[68].mxu1  ;;  %5333 = vmatpush1.bf16.msra.mxu0 %v7209_v50 }
 0x908   : > { %v2027_v51 = vpop.f32.mrb[69].mxu1  ;;  %5334 = vmatprep.subr.bf16.mxu0 %v7218_v45 }
 0x909   : > { %v2029_v2 = vpop.f32.mrb[70].mxu1 }
 0x90a   : > { %v9576_v10 = vpack.c.bf16 %v2029_v2, %v2025_v36  ;;  %v2031_v24 = vpop.f32.mrb[71].mxu1  ;;  %v7241_v36 = vcombine.low %v4420_v7, %v4424_v32  ;;  %v4440_v2 = vld [vmem:[#allocation18 + $0x3b0] sm:$0xff] }
 0x90b   : > { %v9578_v13 = vpack.c.bf16 %v2031_v24, %v2027_v51  ;;  %5335 = vmatpush1.bf16.msra.mxu0 %v7217_v38  ;;  %v7104_v38 = vcombine.high %v3367_v1, %v3371_v41  ;;  %v7250_v51 = vcombine.high %v4428_v43, %v4432_v4 }
 0x90c   : > { %7069 = vmatmul.mubr.msk.bf16.vlgmr.msra.gmra.mrb[112].mxu1 %vm1068_vm0, %v9096_v42  ;;  %5336 = vmatprep.subr.bf16.mxu0 %v7226_v0  ;;  %v7242_v42 = vcombine.high %v4420_v7, %v4424_v32  ;;  %v3375_v0 = vld [vmem:[#allocation16 + $0x108] sm:$0xff] }
 0x90d   : > { %3840 = vmatpush1.bf16.msra.mxu1 %v7079_v5  ;;  %5172 = vmatprep.mubr.bf16.mxu0 %v9578_v13  ;;  %v7103_v5 = vcombine.low %v3367_v1, %v3371_v41  ;;  %v7112_v24 = vcombine.high %v3375_v0, %v3379_v62  ;;  %v3391_v1 = vld [vmem:[#allocation16 + $0x188] sm:$0xff] }
 0x90e   : > { %5173 = vmatmul.mubr.bf16.gmra.mrb[100].mxu0 %v9576_v10  ;;  %3271 = vmatprep.mubr.bf16.mxu1 %v8635_v17  ;;  %v3395_v41 = vld [vmem:[#allocation16 + $0x1a8] sm:$0xff] }
 0x90f   : > { %v2035_v8 = vpop.f32.mrb[72].mxu1  ;;  %5337 = vmatpush1.bf16.msra.mxu0 %v7225_v19  ;;  %3841 = vmatprep.subr.bf16.mxu1 %v7088_v21  ;;  %v7258_v19 = vcombine.high %v4436_v63, %v4440_v2  ;;  %v4444_v21 = vld [vmem:[#allocation18 + $0x3d0] sm:$0xff]  ;;  %v7128_v4 = vcombine.high %v3391_v1, %v3395_v41 }
 0x910   : > { %v2037_v34 = vpop.f32.mrb[73].mxu1  ;;  %5338 = vmatprep.subr.bf16.mxu0 %v7234_v31  ;;  %v3383_v31 = vld [vmem:[#allocation16 + $0x148] sm:$0xff]  ;;  %v7265_v43 = vcombine.low %v4444_v21, %v4448_v30 }
 0x911   : > { %v2039_v11 = vpop.f32.mrb[74].mxu1  ;;  %3842 = vmatpush1.bf16.msra.mxu1 %v7087_v39  ;;  %v3387_v39 = vld [vmem:[#allocation16 + $0x168] sm:$0xff] }
 0x912   : > { %v9585_v50 = vpack.c.bf16 %v2039_v11, %v2035_v8  ;;  %v2041_v45 = vpop.f32.mrb[75].mxu1  ;;  %3843 = vmatprep.subr.bf16.mxu1 %v7096_v33  ;;  %v7111_v33 = vcombine.low %v3375_v0, %v3379_v62  ;;  %v7119_v11 = vcombine.low %v3383_v31, %v3387_v39 }
 0x913   : > { %v9587_v61 = vpack.c.bf16 %v2041_v45, %v2037_v34  ;;  %5339 = vmatpush1.bf16.msra.mxu0 %v7233_v9  ;;  %v7257_v9 = vcombine.low %v4436_v63, %v4440_v2  ;;  %v7266_v34 = vcombine.high %v4444_v21, %v4448_v30  ;;  %v3403_v45 = vld [vmem:[#allocation16 + $0x1e8] sm:$0xff]  ;;  %v3365_v2 = vld [vmem:[#allocation16 + $0xb8] sm:$0xff] }
 0x914   : > { %7070 = vmatmul.mubr.msk.bf16.gmra.mrb[116].mxu1 %vm1068_vm0, %v9094_v40  ;;  %5340 = vmatprep.subr.bf16.mxu0 %v7242_v42  ;;  %v7120_v42 = vcombine.high %v3383_v31, %v3387_v39  ;;  %v3381_v21 = vld [vmem:[#allocation16 + $0x138] sm:$0xff] }
 0x915   : > { %5182 = vmatprep.mubr.bf16.mxu0 %v9587_v61  ;;  %3281 = vmatprep.mubr.bf16.mxu1 %v8635_v17  ;;  %v3385_v31 = vld [vmem:[#allocation16 + $0x158] sm:$0xff] }
 0x916   : > { %5183 = vmatmul.mubr.bf16.gmra.mrb[104].mxu0 %v9585_v50  ;;  %3844 = vmatpush1.bf16.msra.mxu1 %v7095_v56  ;;  %v7127_v56 = vcombine.low %v3391_v1, %v3395_v41  ;;  %v3389_v39 = vld [vmem:[#allocation16 + $0x178] sm:$0xff] }
 0x917   : > { %v2045_v25 = vpop.f32.mrb[76].mxu1  ;;  %5341 = vmatpush1.bf16.msra.mxu0 %v7241_v36  ;;  %3845 = vmatprep.subr.bf16.mxu1 %v7104_v38  ;;  %v3345_v38 = vld [vmem:[#allocation16 + $0x18] sm:$0xff] }
 0x918   : > { %v2047_v40 = vpop.f32.mrb[77].mxu1  ;;  %5342 = vmatprep.subr.bf16.mxu0 %v7250_v51  ;;  %v3349_v51 = vld [vmem:[#allocation16 + $0x38] sm:$0xff] }
 0x919   : > { %v2049_v20 = vpop.f32.mrb[78].mxu1  ;;  %v7084_v62 = vcombine.high %v3345_v38, %v3349_v51  ;;  %v3401_v41 = vld [vmem:[#allocation16 + $0x1d8] sm:$0xff] }
 0x91a   : > { %v9594_v7 = vpack.c.bf16 %v2049_v20, %v2045_v25  ;;  %v2051_v32 = vpop.f32.mrb[79].mxu1  ;;  %3846 = vmatpush1.bf16.msra.mxu1 %v7103_v5  ;;  %v3369_v25 = vld [vmem:[#allocation16 + $0xd8] sm:$0xff] }
 0x91b   : > { %v9596_v8 = vpack.c.bf16 %v2051_v32, %v2047_v40  ;;  %5343 = vmatpush1.bf16.msra.mxu0 %v7249_v16  ;;  %3847 = vmatprep.subr.bf16.mxu1 %v7112_v24  ;;  %v3373_v16 = vld [vmem:[#allocation16 + $0xf8] sm:$0xff] }
 0x91c   : > { %7071 = vmatmul.mubr.msk.bf16.gmra.mrb[120].mxu1 %vm1068_vm0, %v9104_v48  ;;  %5344 = vmatprep.subr.bf16.mxu0 %v7258_v19  ;;  %v3399_v48 = vld [vmem:[#allocation16 + $0x1c8] sm:$0xff]  ;;  %v7108_v40 = vcombine.high %v3369_v25, %v3373_v16  ;;  %v3377_v19 = vld [vmem:[#allocation16 + $0x118] sm:$0xff]  ;;  %v7107_v20 = vcombine.low %v3369_v25, %v3373_v16 }
 0x91d   : > { %5192 = vmatprep.mubr.bf16.mxu0 %v9596_v8  ;;  %3291 = vmatprep.mubr.bf16.mxu1 %v8635_v17  ;;  %v7136_v36 = vcombine.high %v3399_v48, %v3403_v45  ;;  %v7135_v0 = vcombine.low %v3399_v48, %v3403_v45  ;;  %v7116_v30 = vcombine.high %v3377_v19, %v3381_v21  ;;  %v4323_v48 = vld [vmem:[#allocation18 + $0x8] sm:$0xff] }
 0x91e   : > { %5193 = vmatmul.mubr.bf16.gmra.mrb[108].mxu0 %v9594_v7  ;;  %3848 = vmatpush1.bf16.msra.mxu1 %v7111_v33  ;;  %v7115_v32 = vcombine.low %v3377_v19, %v3381_v21  ;;  %v7124_v33 = vcombine.high %v3385_v31, %v3389_v39  ;;  %v4327_v45 = vld [vmem:[#allocation18 + $0x28] sm:$0xff] }
 0x91f   : > { %5345 = vmatpush1.bf16.msra.mxu0 %v7257_v9  ;;  %5348 = vmatprep.mubr.bf16.mxu0 %v9530_v28  ;;  %v3393_v9 = vld [vmem:[#allocation16 + $0x198] sm:$0xff]  ;;  %v4355_v16 = vld [vmem:[#allocation18 + $0x108] sm:$0xff] }
 0x920   : > { %5346 = vmatprep.subr.bf16.mxu0 %v7266_v34  ;;  %3849 = vmatprep.subr.bf16.mxu1 %v7120_v42  ;;  %v3397_v34 = vld [vmem:[#allocation16 + $0x1b8] sm:$0xff]  ;;  %v7123_v42 = vcombine.low %v3385_v31, %v3389_v39  ;;  %v4363_v19 = vld [vmem:[#allocation18 + $0x148] sm:$0xff] }
 0x921   : > { %v7132_v1 = vcombine.high %v3393_v9, %v3397_v34  ;;  %v4367_v21 = vld [vmem:[#allocation18 + $0x168] sm:$0xff] }
 0x922   : > { %3850 = vmatpush1.bf16.msra.mxu1 %v7119_v11  ;;  %v3405_v11 = vld [vmem:[#allocation16 + $0x1f8] sm:$0xff]  ;;  %v4371_v31 = vld [vmem:[#allocation18 + $0x188] sm:$0xff] }
 0x923   : > { %5347 = vmatpush1.bf16.msra.mxu0 %v7265_v43  ;;  %3851 = vmatprep.subr.bf16.mxu1 %v7128_v4  ;;  %v7131_v43 = vcombine.low %v3393_v9, %v3397_v34  ;;  %v7140_v4 = vcombine.high %v3401_v41, %v3405_v11  ;;  %v4375_v39 = vld [vmem:[#allocation18 + $0x1a8] sm:$0xff] }
 0x924   : > { %7072 = vmatmul.mubr.msk.bf16.gmra.mrb[124].mxu1 %vm1068_vm0, %v9102_v46  ;;  %v3353_v46 = vld [vmem:[#allocation16 + $0x58] sm:$0xff]  ;;  %v4383_v9 = vld [vmem:[#allocation18 + $0x1e8] sm:$0xff]  ;;  %v7191_v34 = vcombine.low %v4371_v31, %v4375_v39 }
 0x925   : > { %3301 = vmatprep.mubr.bf16.mxu1 %v8635_v17 }
 0x926   : > { %5349 = vmatmul.mubr.bf16.vlgmr.msra.gmra.mrb[112].mxu0 %v9528_v27  ;;  %3852 = vmatpush1.bf16.msra.mxu1 %v7127_v56  ;;  %v7139_v56 = vcombine.low %v3401_v41, %v3405_v11  ;;  %v4391_v41 = vld [vmem:[#allocation18 + $0x228] sm:$0xff] }
 0x927   : > { %5358 = vmatprep.mubr.bf16.mxu0 %v9540_v18  ;;  %3853 = vmatprep.subr.bf16.mxu1 %v7136_v36  ;;  %v7144_v36 = vcombine.high %v4323_v48, %v4327_v45 }
 0x92a   : > { %3854 = vmatpush1.bf16.msra.mxu1 %v7135_v0  ;;  %v4335_v0 = vld [vmem:[#allocation18 + $0x68] sm:$0xff] }
 0x92b   : > { %4065 = vmatprep.subr.bf16.mxu1 %v7084_v62  ;;  %v7143_v62 = vcombine.low %v4323_v48, %v4327_v45 }
 0x92c   : > { %7073 = vmatmul.mubr.msk.bf16.gmra.mrb[128].mxu1 %vm1068_vm0, %v9112_v54  ;;  %v7083_v54 = vcombine.low %v3345_v38, %v3349_v51  ;;  %v8636_v38 = vmov 0.0   ;;  %v4331_v51 = vld [vmem:[#allocation18 + $0x48] sm:$0xff] }
 0x92d   : > { %3311 = vmatprep.mubr.bf16.mxu1 %v8635_v17 }
 0x92e   : > { %5359 = vmatmul.mubr.bf16.gmra.mrb[116].mxu0 %v9538_v47 }
 0x92f   : > { %5368 = vmatprep.mubr.bf16.mxu0 %v9549_v57 }
 0x934   : > { %7074 = vmatmul.mubr.msk.bf16.gmra.mrb[132].mxu1 %vm1068_vm0, %v9110_v52  ;;  %v3357_v52 = vld [vmem:[#allocation16 + $0x78] sm:$0xff] }
 0x935   : > { %3321 = vmatprep.mubr.bf16.mxu1 %v8635_v17  ;;  %v7092_v63 = vcombine.high %v3353_v46, %v3357_v52  ;;  %v7091_v5 = vcombine.low %v3353_v46, %v3357_v52  ;;  %v7152_v46 = vcombine.high %v4331_v51, %v4335_v0  ;;  %v4339_v52 = vld [vmem:[#allocation18 + $0x88] sm:$0xff] }
 0x936   : > { %5369 = vmatmul.mubr.bf16.gmra.mrb[120].mxu0 %v9547_v53 }
 0x937   : > { %5378 = vmatprep.mubr.bf16.mxu0 %v9558_v29 }
 0x93c   : > { %7075 = vmatmul.mubr.msk.bf16.gmra.mrb[136].mxu1 %vm1068_vm0, %v9120_v60  ;;  %v3361_v60 = vld [vmem:[#allocation16 + $0x98] sm:$0xff] }
 0x93d   : > { %3331 = vmatprep.mubr.bf16.mxu1 %v8635_v17  ;;  %v7099_v24 = vcombine.low %v3361_v60, %v3365_v2 }
 0x93e   : > { %5379 = vmatmul.mubr.bf16.gmra.mrb[124].mxu0 %v9556_v26 }
 0x93f   : > { %5388 = vmatprep.mubr.bf16.mxu0 %v9567_v49 }
 0x944   : > { %7076 = vmatmul.mubr.msk.bf16.gmra.mrb[140].mxu1 %vm1068_vm0, %v9118_v58  ;;  %v7100_v58 = vcombine.high %v3361_v60, %v3365_v2  ;;  %v4347_v2 = vld [vmem:[#allocation18 + $0xc8] sm:$0xff] }
 0x945   : > { %3871 = vmatprep.mubr.bf16.mxu1 %v8635_v17 }
 0x946   : > { %5389 = vmatmul.mubr.bf16.gmra.mrb[128].mxu0 %v9565_v44 }
 0x947   : > { %5398 = vmatprep.mubr.bf16.mxu0 %v9578_v13 }
 0x94c   : > { %3872 = vmatmul.mubr.bf16.vlgmr.msra.gmra.mrb[80].mxu1 %v9213_v23 }
 0x94d   : > { %4066 = vmatpush1.bf16.msra.mxu1 %v7083_v54  ;;  %3881 = vmatprep.mubr.bf16.mxu1 %v8635_v17  ;;  %v4343_v54 = vld [vmem:[#allocation18 + $0xa8] sm:$0xff] }
 0x94e   : > { %5399 = vmatmul.mubr.bf16.gmra.mrb[132].mxu0 %v9576_v10  ;;  %4067 = vmatprep.subr.bf16.mxu1 %v7092_v63  ;;  %v7151_v63 = vcombine.low %v4331_v51, %v4335_v0  ;;  %v7160_v60 = vcombine.high %v4339_v52, %v4343_v54  ;;  %v4411_v0 = vld [vmem:[#allocation18 + $0x2c8] sm:$0xff] }
 0x94f   : > { %5408 = vmatprep.mubr.bf16.mxu0 %v9587_v61 }
 0x951   : > { %4068 = vmatpush1.bf16.msra.mxu1 %v7091_v5  ;;  %v4351_v5 = vld [vmem:[#allocation18 + $0xe8] sm:$0xff] }
 0x952   : > { %4069 = vmatprep.subr.bf16.mxu1 %v7100_v58  ;;  %v7159_v58 = vcombine.low %v4339_v52, %v4343_v54  ;;  %v7168_v25 = vcombine.high %v4347_v2, %v4351_v5  ;;  %v9661_v54 = vld [vmem:[#allocation19] sm:$0xff] }
 0x954   : > { %3882 = vmatmul.mubr.bf16.gmra.mrb[84].mxu1 %v9211_v15 }
 0x955   : > { %3891 = vmatprep.mubr.bf16.mxu1 %v8635_v17  ;;  %4070 = vmatpush1.bf16.msra.mxu1 %v7099_v24  ;;  %v4359_v24 = vld [vmem:[#allocation18 + $0x128] sm:$0xff] }
 0x956   : > { %5409 = vmatmul.mubr.bf16.gmra.mrb[136].mxu0 %v9585_v50  ;;  %4071 = vmatprep.subr.bf16.mxu1 %v7108_v40  ;;  %v7167_v40 = vcombine.low %v4347_v2, %v4351_v5  ;;  %v9668_v2 = vrot.slane %v9661_v54, %v1660_v14 }
 0x957   : > { %5418 = vmatprep.mubr.bf16.mxu0 %v9596_v8 }
 0x959   : > { %4072 = vmatpush1.bf16.msra.mxu1 %v7107_v20  ;;  %v7175_v20 = vcombine.low %v4355_v16, %v4359_v24 }
 0x95a   : > { %4073 = vmatprep.subr.bf16.mxu1 %v7116_v30  ;;  %v7184_v30 = vcombine.high %v4363_v19, %v4367_v21 }
 0x95c   : > { %3892 = vmatmul.mubr.bf16.gmra.mrb[88].mxu1 %v9219_v37 }
 0x95d   : > { %3901 = vmatprep.mubr.bf16.mxu1 %v8635_v17  ;;  %4074 = vmatpush1.bf16.msra.mxu1 %v7115_v32  ;;  %v7183_v32 = vcombine.low %v4363_v19, %v4367_v21 }
 0x95e   : > { %5419 = vmatmul.mubr.bf16.gmra.mrb[140].mxu0 %v9594_v7  ;;  %4075 = vmatprep.subr.bf16.mxu1 %v7124_v33  ;;  %v4379_v33 = vld [vmem:[#allocation18 + $0x1c8] sm:$0xff] }
 0x95f   : > { %6328 = vmatprep.mubr.f32.mxu0 %v8636_v38  ;;  %v7199_v11 = vcombine.low %v4379_v33, %v4383_v9 }
 0x961   : > { %4076 = vmatpush1.bf16.msra.mxu1 %v7123_v42  ;;  %v7200_v42 = vcombine.high %v4379_v33, %v4383_v9 }
 0x962   : > { %4077 = vmatprep.subr.bf16.mxu1 %v7132_v1  ;;  %v4387_v1 = vld [vmem:[#allocation18 + $0x208] sm:$0xff] }
 0x963   : > { %v7207_v48 = vcombine.low %v4387_v1, %v4391_v41 }
 0x964   : > { %3902 = vmatmul.mubr.bf16.gmra.mrb[92].mxu1 %v9217_v35 }
 0x965   : > { %3911 = vmatprep.mubr.bf16.mxu1 %v8635_v17  ;;  %4078 = vmatpush1.bf16.msra.mxu1 %v7131_v43  ;;  %v4395_v43 = vld [vmem:[#allocation18 + $0x248] sm:$0xff] }
 0x966   : > { %4079 = vmatprep.subr.bf16.mxu1 %v7140_v4  ;;  %v4399_v4 = vld [vmem:[#allocation18 + $0x268] sm:$0xff] }
 0x967   : > { %v7216_v45 = vcombine.high %v4395_v43, %v4399_v4  ;;  %v7215_v51 = vcombine.low %v4395_v43, %v4399_v4 }
 0x969   : > { %4080 = vmatpush1.bf16.msra.mxu1 %v7139_v56  ;;  %v4403_v56 = vld [vmem:[#allocation18 + $0x288] sm:$0xff] }
 0x96a   : > { %5203 = vmatprep.subr.bf16.mxu1 %v7144_v36  ;;  %v4407_v36 = vld [vmem:[#allocation18 + $0x2a8] sm:$0xff] }
 0x96c   : > { %3912 = vmatmul.mubr.bf16.gmra.mrb[96].mxu1 %v9225_v59 }
 0x96d   : > { %3921 = vmatprep.mubr.bf16.mxu1 %v8635_v17 }
 0x974   : > { %3922 = vmatmul.mubr.bf16.gmra.mrb[100].mxu1 %v9223_v55 }
 0x975   : > { %3931 = vmatprep.mubr.bf16.mxu1 %v8635_v17 }
 0x97c   : > { %3932 = vmatmul.mubr.bf16.gmra.mrb[104].mxu1 %v9231_v6 }
 0x97d   : > { %3941 = vmatprep.mubr.bf16.mxu1 %v8635_v17 }
 0x984   : > { %3942 = vmatmul.mubr.bf16.gmra.mrb[108].mxu1 %v9229_v3 }
 0x985   : > { %4097 = vmatprep.mubr.bf16.mxu1 %v8635_v17 }
 0x98c   : > { %4098 = vmatmul.mubr.bf16.vlgmr.msra.gmra.mrb[112].mxu1 %v9213_v23  ;;  %v7176_v23 = vcombine.high %v4355_v16, %v4359_v24  ;;  %v4431_v16 = vld [vmem:[#allocation18 + $0x368] sm:$0xff] }
 0x98d   : > { %5204 = vmatpush1.bf16.msra.mxu1 %v7143_v62  ;;  %4107 = vmatprep.mubr.bf16.mxu1 %v8635_v17  ;;  %v4415_v62 = vld [vmem:[#allocation18 + $0x2e8] sm:$0xff] }
 0x98e   : > { %5205 = vmatprep.subr.bf16.mxu1 %v7152_v46  ;;  %v7223_v46 = vcombine.low %v4403_v56, %v4407_v36  ;;  %v7232_v52 = vcombine.high %v4411_v0, %v4415_v62 }
 0x991   : > { %5206 = vmatpush1.bf16.msra.mxu1 %v7151_v63  ;;  %v4419_v63 = vld [vmem:[#allocation18 + $0x308] sm:$0xff] }
 0x992   : > { %5207 = vmatprep.subr.bf16.mxu1 %v7160_v60  ;;  %v4423_v60 = vld [vmem:[#allocation18 + $0x328] sm:$0xff] }
 0x993   : > { %v7240_v5 = vcombine.high %v4419_v63, %v4423_v60 }
 0x994   : > { %4108 = vmatmul.mubr.bf16.gmra.mrb[116].mxu1 %v9211_v15  ;;  %v7192_v15 = vcombine.high %v4371_v31, %v4375_v39 }
 0x995   : > { %5208 = vmatpush1.bf16.msra.mxu1 %v7159_v58  ;;  %4117 = vmatprep.mubr.bf16.mxu1 %v8635_v17  ;;  %v9673_v58 = vrot.slane %v9661_v54, %v1664_v22 }
 0x996   : > { %5209 = vmatprep.subr.bf16.mxu1 %v7168_v25  ;;  %v4427_v25 = vld [vmem:[#allocation18 + $0x348] sm:$0xff] }
 0x997   : > { %v7248_v19 = vcombine.high %v4427_v25, %v4431_v16  ;;  %v7247_v33 = vcombine.low %v4427_v25, %v4431_v16 }
 0x999   : > { %5210 = vmatpush1.bf16.msra.mxu1 %v7167_v40 }
 0x99a   : > { %5211 = vmatprep.subr.bf16.mxu1 %v7176_v23 }
 0x99c   : > { %4118 = vmatmul.mubr.bf16.gmra.mrb[120].mxu1 %v9219_v37  ;;  %v7208_v37 = vcombine.high %v4387_v1, %v4391_v41  ;;  %v4443_v1 = vld [vmem:[#allocation18 + $0x3c8] sm:$0xff] }
 0x99d   : > { %5212 = vmatpush1.bf16.msra.mxu1 %v7175_v20  ;;  %4127 = vmatprep.mubr.bf16.mxu1 %v8635_v17  ;;  %v4435_v20 = vld [vmem:[#allocation18 + $0x388] sm:$0xff] }
 0x99e   : > { %5213 = vmatprep.subr.bf16.mxu1 %v7184_v30  ;;  %v4439_v30 = vld [vmem:[#allocation18 + $0x3a8] sm:$0xff] }
 0x99f   : > { %v4447_v41 = vld [vmem:[#allocation18 + $0x3e8] sm:$0xff] }
 0x9a1   : > { %5214 = vmatpush1.bf16.msra.mxu1 %v7183_v32 }
 0x9a2   : > { %5215 = vmatprep.subr.bf16.mxu1 %v7192_v15 }
 0x9a4   : > { %4128 = vmatmul.mubr.bf16.gmra.mrb[124].mxu1 %v9217_v35  ;;  %v7224_v35 = vcombine.high %v4403_v56, %v4407_v36 }
 0x9a5   : > { %5216 = vmatpush1.bf16.msra.mxu1 %v7191_v34  ;;  %4137 = vmatprep.mubr.bf16.mxu1 %v8635_v17  ;;  %v7256_v34 = vcombine.high %v4435_v20, %v4439_v30 }
 0x9a6   : > { %5217 = vmatprep.subr.bf16.mxu1 %v7200_v42 }
 0x9a9   : > { %5218 = vmatpush1.bf16.msra.mxu1 %v7199_v11 }
 0x9aa   : > { %5219 = vmatprep.subr.bf16.mxu1 %v7208_v37 }
 0x9ac   : > { %4138 = vmatmul.mubr.bf16.gmra.mrb[128].mxu1 %v9225_v59  ;;  %v7231_v59 = vcombine.low %v4411_v0, %v4415_v62 }
 0x9ad   : > { %5220 = vmatpush1.bf16.msra.mxu1 %v7207_v48  ;;  %4147 = vmatprep.mubr.bf16.mxu1 %v8635_v17 }
 0x9ae   : > { %5221 = vmatprep.subr.bf16.mxu1 %v7216_v45 }
 0x9b1   : > { %5222 = vmatpush1.bf16.msra.mxu1 %v7215_v51 }
 0x9b2   : > { %5223 = vmatprep.subr.bf16.mxu1 %v7224_v35 }
 0x9b4   : > { %4148 = vmatmul.mubr.bf16.gmra.mrb[132].mxu1 %v9223_v55  ;;  %v7239_v55 = vcombine.low %v4419_v63, %v4423_v60  ;;  %v4329_v63 = vld [vmem:[#allocation18 + $0x38] sm:$0xff] }
 0x9b5   : > { %5224 = vmatpush1.bf16.msra.mxu1 %v7223_v46  ;;  %4157 = vmatprep.mubr.bf16.mxu1 %v8635_v17 }
 0x9b6   : > { %5225 = vmatprep.subr.bf16.mxu1 %v7232_v52  ;;  %v4325_v52 = vld [vmem:[#allocation18 + $0x18] sm:$0xff] }
 0x9b9   : > { %v5124_v24 = vpop.f32.mrb[80].mxu0  ;;  %5226 = vmatpush1.bf16.msra.mxu1 %v7231_v59 }
 0x9ba   : > { %v5712_v40 = vadd.f32 %v9668_v2, %v5124_v24  ;;  %v5126_v23 = vpop.f32.mrb[81].mxu0  ;;  %5227 = vmatprep.subr.bf16.mxu1 %v7240_v5  ;;  %v7263_v24 = vcombine.low %v4443_v1, %v4447_v41 }
 0x9bb   : > { %v5713_v21 = vadd.f32 %v9673_v58, %v5126_v23  ;;  %v5128_v14 = vpop.f32.mrb[82].mxu0  ;;  %v7148_v23 = vcombine.high %v4325_v52, %v4329_v63 }
 0x9bc   : > { %v5840_v31 = vmul.f32 0.2, %v5712_v40  ;;  %v5720_v39 = vadd.f32 %v9668_v2, %v5128_v14  ;;  %4158 = vmatmul.mubr.bf16.gmra.mrb[136].mxu1 %v9231_v6  ;;  %v5130_v22 = vpop.f32.mrb[83].mxu0  ;;  %v7255_v6 = vcombine.low %v4435_v20, %v4439_v30  ;;  %v4333_v14 = vld [vmem:[#allocation18 + $0x58] sm:$0xff] }
 0x9bd   : > { %v5841_v32 = vmul.f32 0.2, %v5713_v21  ;;  %v5721_v15 = vadd.f32 %v9673_v58, %v5130_v22  ;;  %5228 = vmatpush1.bf16.msra.mxu1 %v7239_v55  ;;  %4167 = vmatprep.mubr.bf16.mxu1 %v8635_v17  ;;  %v7264_v17 = vcombine.high %v4443_v1, %v4447_v41  ;;  %v4337_v20 = vld [vmem:[#allocation18 + $0x78] sm:$0xff] }
 0x9be   : > { %v5848_v9 = vmul.f32 0.2, %v5720_v39  ;;  %5229 = vmatprep.subr.bf16.mxu1 %v7248_v19  ;;  %v5968_v11 = vmax.f32 %v5712_v40, %v5840_v31 }
 0x9bf   : > { %v5849_v42 = vmul.f32 0.2, %v5721_v15  ;;  %v5969_v43 = vmax.f32 %v5713_v21, %v5841_v32  ;;  %v7147_v32 = vcombine.low %v4325_v52, %v4329_v63  ;;  %v4349_v52 = vld [vmem:[#allocation18 + $0xd8] sm:$0xff] }
 0x9c0   : > { %v5976_v37 = vmax.f32 %v5720_v39, %v5848_v9  ;;  %v4353_v63 = vld [vmem:[#allocation18 + $0xf8] sm:$0xff] }
 0x9c1   : > { %v5977_v4 = vmax.f32 %v5721_v15, %v5849_v42  ;;  %v5134_v48 = vpop.f32.mrb[84].mxu0  ;;  %5230 = vmatpush1.bf16.msra.mxu1 %v7247_v33  ;;  %v7156_v42 = vcombine.high %v4333_v14, %v4337_v20 }
 0x9c2   : > { %v6096_v45 = vmax.f32 %v5968_v11, %v5976_v37  ;;  %v7539_v56 = vpack.c.bf16 %v5976_v37, %v5968_v11  ;;  %v5728_v36 = vadd.f32 %v9668_v2, %v5134_v48  ;;  %v5136_v51 = vpop.f32.mrb[85].mxu0  ;;  %5231 = vmatprep.subr.bf16.mxu1 %v7256_v34 }
 0x9c3   : > { %v6117_v35 = vmax.f32 %v5969_v43, %v5977_v4  ;;  %v5729_v0 = vadd.f32 %v9673_v58, %v5136_v51  ;;  %v5138_v62 = vpop.f32.mrb[86].mxu0  ;;  %v7537_v46 = vpack.c.bf16 %v5977_v4, %v5969_v43  ;;  %v4341_v43 = vld [vmem:[#allocation18 + $0x98] sm:$0xff]  ;;  %v7155_v51 = vcombine.low %v4333_v14, %v4337_v20 }
 0x9c4   : > { %v5856_v60 = vmul.f32 0.2, %v5728_v36  ;;  %v5736_v59 = vadd.f32 %v9668_v2, %v5138_v62  ;;  %4168 = vmatmul.mubr.bf16.gmra.mrb[140].mxu1 %v9229_v3  ;;  %v5140_v5 = vpop.f32.mrb[87].mxu0  ;;  %v4345_v4 = vld [vmem:[#allocation18 + $0xb8] sm:$0xff] }
 0x9c5   : > { %v5857_v25 = vmul.f32 0.2, %v5729_v0  ;;  %v5737_v16 = vadd.f32 %v9673_v58, %v5140_v5  ;;  %5232 = vmatpush1.bf16.msra.mxu1 %v7255_v6  ;;  %5235 = vmatprep.mubr.bf16.mxu1 %v9530_v28 }
 0x9c6   : > { %v5984_v55 = vmax.f32 %v5728_v36, %v5856_v60  ;;  %v5864_v40 = vmul.f32 0.2, %v5736_v59  ;;  %7538 = vmatprep.subr.bf16.mxu0 %v7537_v46  ;;  %5233 = vmatprep.subr.bf16.mxu1 %v7264_v17 }
 0x9c7   : > { %v5985_v19 = vmax.f32 %v5729_v0, %v5857_v25  ;;  %v5865_v21 = vmul.f32 0.2, %v5737_v16  ;;  %7540 = vmatpush1.bf16.msra.mxu0 %v7539_v56  ;;  %v7164_v0 = vcombine.high %v4341_v43, %v4345_v4 }
 0x9c8   : > { %v6097_v30 = vmax.f32 %v6096_v45, %v5984_v55  ;;  %v5992_v3 = vmax.f32 %v5736_v59, %v5864_v40 }
 0x9c9   : > { %v6118_v31 = vmax.f32 %v6117_v35, %v5985_v19  ;;  %v5993_v39 = vmax.f32 %v5737_v16, %v5865_v21  ;;  %v5144_v22 = vpop.f32.mrb[88].mxu0  ;;  %5234 = vmatpush1.bf16.msra.mxu1 %v7263_v24  ;;  %v7163_v24 = vcombine.low %v4341_v43, %v4345_v4  ;;  %v7172_v21 = vcombine.high %v4349_v52, %v4353_v63  ;;  %v4365_v43 = vld [vmem:[#allocation18 + $0x158] sm:$0xff] }
 0x9ca   : > { %v6098_v15 = vmax.f32 %v6097_v30, %v5992_v3  ;;  %v7543_v33 = vpack.c.bf16 %v5992_v3, %v5984_v55  ;;  %v5744_v9 = vadd.f32 %v9668_v2, %v5144_v22  ;;  %v5146_v34 = vpop.f32.mrb[89].mxu0  ;;  %5429 = vmatprep.subr.bf16.mxu1 %v7148_v23  ;;  %v4369_v4 = vld [vmem:[#allocation18 + $0x178] sm:$0xff] }
 0x9cb   : > { %v6119_v1 = vmax.f32 %v6118_v31, %v5993_v39  ;;  %v5745_v41 = vadd.f32 %v9673_v58, %v5146_v34  ;;  %v5148_v11 = vpop.f32.mrb[90].mxu0  ;;  %v7541_v37 = vpack.c.bf16 %v5993_v39, %v5985_v19  ;;  %v4357_v31 = vld [vmem:[#allocation18 + $0x118] sm:$0xff]  ;;  %v7171_v34 = vcombine.low %v4349_v52, %v4353_v63 }
 0x9cc   : > { %v5872_v48 = vmul.f32 0.2, %v5744_v9  ;;  %v5752_v6 = vadd.f32 %v9668_v2, %v5148_v11  ;;  %v5150_v45 = vpop.f32.mrb[91].mxu0  ;;  %5236 = vmatmul.mubr.bf16.vlgmr.msra.gmra.mrb[80].mxu1 %v9528_v27  ;;  %v4361_v39 = vld [vmem:[#allocation18 + $0x138] sm:$0xff] }
 0x9cd   : > { %v5873_v56 = vmul.f32 0.2, %v5745_v41  ;;  %v5753_v36 = vadd.f32 %v9673_v58, %v5150_v45  ;;  %5245 = vmatprep.mubr.bf16.mxu1 %v9540_v18  ;;  %5430 = vmatpush1.bf16.msra.mxu1 %v7147_v32 }
 0x9ce   : > { %v6000_v17 = vmax.f32 %v5744_v9, %v5872_v48  ;;  %v5880_v35 = vmul.f32 0.2, %v5752_v6  ;;  %7542 = vmatprep.subr.bf16.mxu0 %v7541_v37  ;;  %5431 = vmatprep.subr.bf16.mxu1 %v7156_v42 }
 0x9cf   : > { %v6001_v62 = vmax.f32 %v5745_v41, %v5873_v56  ;;  %v5881_v46 = vmul.f32 0.2, %v5753_v36  ;;  %7544 = vmatpush1.bf16.msra.mxu0 %v7543_v33  ;;  %v7180_v41 = vcombine.high %v4357_v31, %v4361_v39 }
 0x9d0   : > { %v6099_v60 = vmax.f32 %v6098_v15, %v6000_v17  ;;  %v6008_v59 = vmax.f32 %v5752_v6, %v5880_v35 }
 0x9d1   : > { %v6120_v5 = vmax.f32 %v6119_v1, %v6001_v62  ;;  %v6009_v25 = vmax.f32 %v5753_v36, %v5881_v46  ;;  %v5154_v16 = vpop.f32.mrb[92].mxu0  ;;  %5432 = vmatpush1.bf16.msra.mxu1 %v7155_v51  ;;  %v7179_v51 = vcombine.low %v4357_v31, %v4361_v39  ;;  %v7188_v46 = vcombine.high %v4365_v43, %v4369_v4  ;;  %v4381_v31 = vld [vmem:[#allocation18 + $0x1d8] sm:$0xff] }
 0x9d2   : > { %v6100_v55 = vmax.f32 %v6099_v60, %v6008_v59  ;;  %v7547_v40 = vpack.c.bf16 %v6008_v59, %v6000_v17  ;;  %v5760_v23 = vadd.f32 %v9668_v2, %v5154_v16  ;;  %v5156_v19 = vpop.f32.mrb[93].mxu0  ;;  %5433 = vmatprep.subr.bf16.mxu1 %v7164_v0  ;;  %v4385_v39 = vld [vmem:[#allocation18 + $0x1f8] sm:$0xff] }
 0x9d3   : > { %v6121_v14 = vmax.f32 %v6120_v5, %v6009_v25  ;;  %v5761_v20 = vadd.f32 %v9673_v58, %v5156_v19  ;;  %v5158_v30 = vpop.f32.mrb[94].mxu0  ;;  %v7545_v3 = vpack.c.bf16 %v6009_v25, %v6001_v62  ;;  %v4373_v5 = vld [vmem:[#allocation18 + $0x198] sm:$0xff]  ;;  %v7187_v19 = vcombine.low %v4365_v43, %v4369_v4 }
 0x9d4   : > { %v5888_v22 = vmul.f32 0.2, %v5760_v23  ;;  %v5768_v32 = vadd.f32 %v9668_v2, %v5158_v30  ;;  %v5160_v15 = vpop.f32.mrb[95].mxu0  ;;  %5246 = vmatmul.mubr.bf16.gmra.mrb[84].mxu1 %v9538_v47  ;;  %v4377_v25 = vld [vmem:[#allocation18 + $0x1b8] sm:$0xff] }
 0x9d5   : > { %v5889_v33 = vmul.f32 0.2, %v5761_v20  ;;  %v5769_v9 = vadd.f32 %v9673_v58, %v5160_v15  ;;  %5255 = vmatprep.mubr.bf16.mxu1 %v9549_v57  ;;  %5434 = vmatpush1.bf16.msra.mxu1 %v7163_v24 }
 0x9d6   : > { %v6016_v42 = vmax.f32 %v5760_v23, %v5888_v22  ;;  %v5896_v1 = vmul.f32 0.2, %v5768_v32  ;;  %7546 = vmatprep.subr.bf16.mxu0 %v7545_v3  ;;  %5435 = vmatprep.subr.bf16.mxu1 %v7172_v21 }
 0x9d7   : > { %v6017_v11 = vmax.f32 %v5761_v20, %v5889_v33  ;;  %v5897_v37 = vmul.f32 0.2, %v5769_v9  ;;  %7548 = vmatpush1.bf16.msra.mxu0 %v7547_v40  ;;  %v7196_v20 = vcombine.high %v4373_v5, %v4377_v25 }
 0x9d8   : > { %v6101_v48 = vmax.f32 %v6100_v55, %v6016_v42  ;;  %v6024_v6 = vmax.f32 %v5768_v32, %v5896_v1 }
 0x9d9   : > { %v6122_v45 = vmax.f32 %v6121_v14, %v6017_v11  ;;  %v6025_v56 = vmax.f32 %v5769_v9, %v5897_v37  ;;  %v5164_v36 = vpop.f32.mrb[96].mxu0  ;;  %5436 = vmatpush1.bf16.msra.mxu1 %v7171_v34  ;;  %v7195_v34 = vcombine.low %v4373_v5, %v4377_v25  ;;  %v7204_v37 = vcombine.high %v4381_v31, %v4385_v39  ;;  %v4397_v5 = vld [vmem:[#allocation18 + $0x258] sm:$0xff] }
 0x9da   : > { %v6102_v17 = vmax.f32 %v6101_v48, %v6024_v6  ;;  %v7551_v35 = vpack.c.bf16 %v6024_v6, %v6016_v42  ;;  %v5776_v0 = vadd.f32 %v9668_v2, %v5164_v36  ;;  %v5166_v62 = vpop.f32.mrb[97].mxu0  ;;  %5437 = vmatprep.subr.bf16.mxu1 %v7180_v41  ;;  %v4401_v25 = vld [vmem:[#allocation18 + $0x278] sm:$0xff] }
 0x9db   : > { %v6123_v52 = vmax.f32 %v6122_v45, %v6025_v56  ;;  %v5777_v63 = vadd.f32 %v9673_v58, %v5166_v62  ;;  %v5168_v60 = vpop.f32.mrb[98].mxu0  ;;  %v7549_v59 = vpack.c.bf16 %v6025_v56, %v6017_v11  ;;  %v4389_v45 = vld [vmem:[#allocation18 + $0x218] sm:$0xff]  ;;  %v7203_v62 = vcombine.low %v4381_v31, %v4385_v39 }
 0x9dc   : > { %v5904_v16 = vmul.f32 0.2, %v5776_v0  ;;  %v5784_v24 = vadd.f32 %v9668_v2, %v5168_v60  ;;  %v5170_v55 = vpop.f32.mrb[99].mxu0  ;;  %5256 = vmatmul.mubr.bf16.gmra.mrb[88].mxu1 %v9547_v53  ;;  %v4393_v56 = vld [vmem:[#allocation18 + $0x238] sm:$0xff] }
 0x9dd   : > { %v5905_v40 = vmul.f32 0.2, %v5777_v63  ;;  %v5785_v23 = vadd.f32 %v9673_v58, %v5170_v55  ;;  %5265 = vmatprep.mubr.bf16.mxu1 %v9558_v29  ;;  %5438 = vmatpush1.bf16.msra.mxu1 %v7179_v51 }
 0x9de   : > { %v6032_v21 = vmax.f32 %v5776_v0, %v5904_v16  ;;  %v5912_v14 = vmul.f32 0.2, %v5784_v24  ;;  %7550 = vmatprep.subr.bf16.mxu0 %v7549_v59  ;;  %5439 = vmatprep.subr.bf16.mxu1 %v7188_v46 }
 0x9df   : > { %v6033_v30 = vmax.f32 %v5777_v63, %v5905_v40  ;;  %v5913_v3 = vmul.f32 0.2, %v5785_v23  ;;  %7552 = vmatpush1.bf16.msra.mxu0 %v7551_v35  ;;  %v7212_v63 = vcombine.high %v4389_v45, %v4393_v56 }
 0x9e0   : > { %v6103_v22 = vmax.f32 %v6102_v17, %v6032_v21  ;;  %v6040_v32 = vmax.f32 %v5784_v24, %v5912_v14 }
 0x9e1   : > { %v6124_v15 = vmax.f32 %v6123_v52, %v6033_v30  ;;  %v6041_v33 = vmax.f32 %v5785_v23, %v5913_v3  ;;  %v5174_v9 = vpop.f32.mrb[100].mxu0  ;;  %5440 = vmatpush1.bf16.msra.mxu1 %v7187_v19  ;;  %v7211_v19 = vcombine.low %v4389_v45, %v4393_v56  ;;  %v7220_v3 = vcombine.high %v4397_v5, %v4401_v25 }
 0x9e2   : > { %v6104_v42 = vmax.f32 %v6103_v22, %v6040_v32  ;;  %v7555_v1 = vpack.c.bf16 %v6040_v32, %v6032_v21  ;;  %v5792_v41 = vadd.f32 %v9668_v2, %v5174_v9  ;;  %v5176_v11 = vpop.f32.mrb[101].mxu0  ;;  %5441 = vmatprep.subr.bf16.mxu1 %v7196_v20 }
 0x9e3   : > { %v6125_v43 = vmax.f32 %v6124_v15, %v6041_v33  ;;  %v5793_v4 = vadd.f32 %v9673_v58, %v5176_v11  ;;  %v5178_v48 = vpop.f32.mrb[102].mxu0  ;;  %v7553_v6 = vpack.c.bf16 %v6041_v33, %v6033_v30  ;;  %v4405_v15 = vld [vmem:[#allocation18 + $0x298] sm:$0xff]  ;;  %v7219_v11 = vcombine.low %v4397_v5, %v4401_v25 }
 0x9e4   : > { %v5920_v36 = vmul.f32 0.2, %v5792_v41  ;;  %v5800_v51 = vadd.f32 %v9668_v2, %v5178_v48  ;;  %v5180_v17 = vpop.f32.mrb[103].mxu0  ;;  %5266 = vmatmul.mubr.bf16.gmra.mrb[92].mxu1 %v9556_v26  ;;  %v4409_v33 = vld [vmem:[#allocation18 + $0x2b8] sm:$0xff]  ;;  %v5690_v5 = vsub.s32 4, %v9300_v12 }
 0x9e5   : > { %v5921_v35 = vmul.f32 0.2, %v5793_v4  ;;  %v5801_v0 = vadd.f32 %v9673_v58, %v5180_v17  ;;  %5275 = vmatprep.mubr.bf16.mxu1 %v9567_v49  ;;  %5442 = vmatpush1.bf16.msra.mxu1 %v7195_v34  ;;  %v4413_v48 = vld [vmem:[#allocation18 + $0x2d8] sm:$0xff] }
 0x9e6   : > { %v6048_v46 = vmax.f32 %v5792_v41, %v5920_v36  ;;  %v5928_v52 = vmul.f32 0.2, %v5800_v51  ;;  %7554 = vmatprep.subr.bf16.mxu0 %v7553_v6  ;;  %5443 = vmatprep.subr.bf16.mxu1 %v7204_v37  ;;  %v4417_v6 = vld [vmem:[#allocation18 + $0x2f8] sm:$0xff] }
 0x9e7   : > { %v6049_v60 = vmax.f32 %v5793_v4, %v5921_v35  ;;  %v5929_v59 = vmul.f32 0.2, %v5801_v0  ;;  %7556 = vmatpush1.bf16.msra.mxu0 %v7555_v1  ;;  %v7228_v4 = vcombine.high %v4405_v15, %v4409_v33 }
 0x9e8   : > { %v6105_v16 = vmax.f32 %v6104_v42, %v6048_v46  ;;  %v6056_v24 = vmax.f32 %v5800_v51, %v5928_v52 }
 0x9e9   : > { %v6126_v55 = vmax.f32 %v6125_v43, %v6049_v60  ;;  %v6057_v40 = vmax.f32 %v5801_v0, %v5929_v59  ;;  %v5184_v23 = vpop.f32.mrb[104].mxu0  ;;  %5444 = vmatpush1.bf16.msra.mxu1 %v7203_v62  ;;  %v7227_v62 = vcombine.low %v4405_v15, %v4409_v33 }
 0x9ea   : > { %v6106_v21 = vmax.f32 %v6105_v16, %v6056_v24  ;;  %v7559_v14 = vpack.c.bf16 %v6056_v24, %v6048_v46  ;;  %v5808_v20 = vadd.f32 %v9668_v2, %v5184_v23  ;;  %v5186_v30 = vpop.f32.mrb[105].mxu0  ;;  %5445 = vmatprep.subr.bf16.mxu1 %v7212_v63  ;;  %v7236_v46 = vcombine.high %v4413_v48, %v4417_v6  ;;  %v4421_v23 = vld [vmem:[#allocation18 + $0x318] sm:$0xff] }
 0x9eb   : > { %v6127_v31 = vmax.f32 %v6126_v55, %v6057_v40  ;;  %v5809_v39 = vadd.f32 %v9673_v58, %v5186_v30  ;;  %v5188_v22 = vpop.f32.mrb[106].mxu0  ;;  %v7557_v32 = vpack.c.bf16 %v6057_v40, %v6049_v60  ;;  %v5694_v40 = vsub.s32 5, %v9300_v12 }
 0x9ec   : > { %v5936_v9 = vmul.f32 0.2, %v5808_v20  ;;  %v5816_v34 = vadd.f32 %v9668_v2, %v5188_v22  ;;  %v5190_v42 = vpop.f32.mrb[107].mxu0  ;;  %5276 = vmatmul.mubr.bf16.gmra.mrb[96].mxu1 %v9565_v44 }
 0x9ed   : > { %v5937_v1 = vmul.f32 0.2, %v5809_v39  ;;  %v5817_v41 = vadd.f32 %v9673_v58, %v5190_v42  ;;  %5285 = vmatprep.mubr.bf16.mxu1 %v9578_v13  ;;  %5446 = vmatpush1.bf16.msra.mxu1 %v7211_v19  ;;  %v4425_v19 = vld [vmem:[#allocation18 + $0x338] sm:$0xff] }
 0x9ee   : > { %v6064_v37 = vmax.f32 %v5808_v20, %v5936_v9  ;;  %v5944_v43 = vmul.f32 0.2, %v5816_v34  ;;  %7558 = vmatprep.subr.bf16.mxu0 %v7557_v32  ;;  %5447 = vmatprep.subr.bf16.mxu1 %v7220_v3  ;;  %v9726_v32 = vrot.slane %v9661_v54, %v5690_v5  ;;  %v7244_v15 = vcombine.high %v4421_v23, %v4425_v19 }
 0x9ef   : > { %v6065_v45 = vmax.f32 %v5809_v39, %v5937_v1  ;;  %v5945_v56 = vmul.f32 0.2, %v5817_v41  ;;  %7560 = vmatpush1.bf16.msra.mxu0 %v7559_v14  ;;  %v9729_v9 = vrot.slane %v9661_v54, %v5694_v40  ;;  %v4445_v40 = vld [vmem:[#allocation18 + $0x3d8] sm:$0xff] }
 0x9f0   : > { %v6107_v36 = vmax.f32 %v6106_v21, %v6064_v37  ;;  %v6072_v51 = vmax.f32 %v5816_v34, %v5944_v43  ;;  %v4429_v34 = vld [vmem:[#allocation18 + $0x358] sm:$0xff]  ;;  %v7243_v43 = vcombine.low %v4421_v23, %v4425_v19 }
 0x9f1   : > { %v6128_v17 = vmax.f32 %v6127_v31, %v6065_v45  ;;  %v6073_v35 = vmax.f32 %v5817_v41, %v5945_v56  ;;  %v5194_v0 = vpop.f32.mrb[108].mxu0  ;;  %5448 = vmatpush1.bf16.msra.mxu1 %v7219_v11  ;;  %v7235_v31 = vcombine.low %v4413_v48, %v4417_v6  ;;  %v4449_v23 = vld [vmem:[#allocation18 + $0x3f8] sm:$0xff] }
 0x9f2   : > { %v6108_v52 = vmax.f32 %v6107_v36, %v6072_v51  ;;  %v7563_v63 = vpack.c.bf16 %v6072_v51, %v6064_v37  ;;  %v5824_v60 = vadd.f32 %v9668_v2, %v5194_v0  ;;  %v5196_v59 = vpop.f32.mrb[109].mxu0  ;;  %5449 = vmatprep.subr.bf16.mxu1 %v7228_v4  ;;  %v4441_v0 = vld [vmem:[#allocation18 + $0x3b8] sm:$0xff] }
 0x9f3   : > { %v6129_v25 = vmax.f32 %v6128_v17, %v6073_v35  ;;  %v5825_v16 = vadd.f32 %v9673_v58, %v5196_v59  ;;  %v5198_v24 = vpop.f32.mrb[110].mxu0  ;;  %v7561_v55 = vpack.c.bf16 %v6073_v35, %v6065_v45  ;;  %v4437_v35 = vld [vmem:[#allocation18 + $0x398] sm:$0xff] }
 0x9f4   : > { %v5952_v21 = vmul.f32 0.2, %v5824_v60  ;;  %v5832_v14 = vadd.f32 %v9668_v2, %v5198_v24  ;;  %v5200_v20 = vpop.f32.mrb[111].mxu0  ;;  %5286 = vmatmul.mubr.bf16.gmra.mrb[100].mxu1 %v9576_v10 }
 0x9f5   : > { %v5953_v30 = vmul.f32 0.2, %v5825_v16  ;;  %v5833_v3 = vadd.f32 %v9673_v58, %v5200_v20  ;;  %5295 = vmatprep.mubr.bf16.mxu1 %v9587_v61  ;;  %5450 = vmatpush1.bf16.msra.mxu1 %v7227_v62  ;;  %v4433_v58 = vld [vmem:[#allocation18 + $0x378] sm:$0xff] }
 0x9f6   : > { %v6080_v39 = vmax.f32 %v5824_v60, %v5952_v21  ;;  %v5960_v22 = vmul.f32 0.2, %v5832_v14  ;;  %7562 = vmatprep.subr.bf16.mxu0 %v7561_v55  ;;  %5451 = vmatprep.subr.bf16.mxu1 %v7236_v46  ;;  %v7252_v56 = vcombine.high %v4429_v34, %v4433_v58  ;;  %v7260_v55 = vcombine.high %v4437_v35, %v4441_v0 }
 0x9f7   : > { %v6081_v33 = vmax.f32 %v5825_v16, %v5953_v30  ;;  %v5961_v2 = vmul.f32 0.2, %v5833_v3  ;;  %7564 = vmatpush1.bf16.msra.mxu0 %v7563_v63 }
 0x9f8   : > { %v6109_v42 = vmax.f32 %v6108_v52, %v6080_v39  ;;  %v6088_v1 = vmax.f32 %v5832_v14, %v5960_v22  ;;  %v7259_v14 = vcombine.low %v4437_v35, %v4441_v0  ;;  %v7267_v35 = vcombine.low %v4445_v40, %v4449_v23 }
 0x9f9   : > { %v6130_v41 = vmax.f32 %v6129_v25, %v6081_v33  ;;  %v6089_v11 = vmax.f32 %v5833_v3, %v5961_v2  ;;  %v5350_v37 = vpop.f32.mrb[112].mxu0  ;;  %5452 = vmatpush1.bf16.msra.mxu1 %v7235_v31  ;;  %v7251_v25 = vcombine.low %v4429_v34, %v4433_v58 }
 0x9fa   : > { %v6110_v4 = vmax.f32 %v6109_v42, %v6088_v1  ;;  %v7567_v48 = vpack.c.bf16 %v6088_v1, %v6080_v39  ;;  %v5716_v6 = vadd.f32 %v9726_v32, %v5350_v37  ;;  %v5352_v45 = vpop.f32.mrb[113].mxu0  ;;  %5453 = vmatprep.subr.bf16.mxu1 %v7244_v15 }
 0x9fb   : > { %v6131_v36 = vmax.f32 %v6130_v41, %v6089_v11  ;;  %v5717_v54 = vadd.f32 %v9729_v9, %v5352_v45  ;;  %v5354_v51 = vpop.f32.mrb[114].mxu0  ;;  %v7565_v17 = vpack.c.bf16 %v6089_v11, %v6081_v33  ;;  %v7268_v33 = vcombine.high %v4445_v40, %v4449_v23 }
 0x9fc   : > { %v6111_v62 = vrot.slane %v6110_v4, 4  ;;  %v5844_v46 = vmul.f32 0.2, %v5716_v6  ;;  %v5724_v52 = vadd.f32 %v9726_v32, %v5354_v51  ;;  %5296 = vmatmul.mubr.bf16.gmra.mrb[104].mxu1 %v9585_v50  ;;  %v5356_v63 = vpop.f32.mrb[115].mxu0 }
 0x9fd   : > { %v6132_v60 = vrot.slane %v6131_v36, 4  ;;  %v5845_v59 = vmul.f32 0.2, %v5717_v54  ;;  %v5725_v5 = vadd.f32 %v9729_v9, %v5356_v63  ;;  %5305 = vmatprep.mubr.bf16.mxu1 %v9596_v8  ;;  %5454 = vmatpush1.bf16.msra.mxu1 %v7243_v43 }
 0x9fe   : > { %v6112_v16 = vmax.f32 %v6110_v4, %v6111_v62  ;;  %v5852_v24 = vmul.f32 0.2, %v5724_v52  ;;  %7566 = vmatprep.subr.bf16.mxu0 %v7565_v17  ;;  %5455 = vmatprep.subr.bf16.mxu1 %v7252_v56  ;;  %v5972_v30 = vmax.f32 %v5716_v6, %v5844_v46 }
 0x9ff   : > { %v6133_v19 = vmax.f32 %v6131_v36, %v6132_v60  ;;  %v5853_v21 = vmul.f32 0.2, %v5725_v5  ;;  %7568 = vmatpush1.bf16.msra.mxu0 %v7567_v48  ;;  %v5973_v39 = vmax.f32 %v5717_v54, %v5845_v59  ;;  %v8637_v48 = vmov 1.0  }
 0xa00   : > { %v6113_v20 = vrot.slane %v6112_v16, 2  ;;  %v5980_v3 = vmax.f32 %v5724_v52, %v5852_v24 }
 0xa01   : > { %v6134_v31 = vrot.slane %v6133_v19, 2  ;;  %v5981_v22 = vmax.f32 %v5725_v5, %v5853_v21  ;;  %v5360_v15 = vpop.f32.mrb[116].mxu0  ;;  %5456 = vmatpush1.bf16.msra.mxu1 %v7251_v25 }
 0xa02   : > { %v6114_v2 = vmax.f32 %v6112_v16, %v6113_v20  ;;  %v6180_v34 = vmax.f32 %v5972_v30, %v5980_v3  ;;  %v7603_v58 = vpack.c.bf16 %v5980_v3, %v5972_v30  ;;  %v5732_v42 = vadd.f32 %v9726_v32, %v5360_v15  ;;  %v5362_v1 = vpop.f32.mrb[117].mxu0  ;;  %5457 = vmatprep.subr.bf16.mxu1 %v7260_v55 }
 0xa03   : > { %v6135_v41 = vmax.f32 %v6133_v19, %v6134_v31  ;;  %v6201_v11 = vmax.f32 %v5973_v39, %v5981_v22  ;;  %v5733_v37 = vadd.f32 %v9729_v9, %v5362_v1  ;;  %v5364_v43 = vpop.f32.mrb[118].mxu0  ;;  %v7601_v4 = vpack.c.bf16 %v5981_v22, %v5973_v39  ;;  %6329 = vmatmul.mubr.f32.vlgmr.msra.gmra.mrb[144].mxu0 %v8637_v48 }
 0xa04   : > { %v6115_v6 = vrot.slane %v6114_v2, 1  ;;  %v5860_v45 = vmul.f32 0.2, %v5732_v42  ;;  %v5740_v56 = vadd.f32 %v9726_v32, %v5364_v43  ;;  %5306 = vmatmul.mubr.bf16.gmra.mrb[108].mxu1 %v9594_v7  ;;  %v5366_v36 = vpop.f32.mrb[119].mxu0  ;;  %6470 = vmatprep.mubr.f32.mxu0 %v8636_v38 }
 0xa05   : > { %v6136_v54 = vrot.slane %v6135_v41, 1  ;;  %v5861_v51 = vmul.f32 0.2, %v5733_v37  ;;  %v5741_v17 = vadd.f32 %v9729_v9, %v5366_v36  ;;  %5458 = vmatpush1.bf16.msra.mxu1 %v7259_v14  ;;  %5461 = vmatprep.mubr.bf16.mxu1 %v9530_v28 }
 0xa06   : > { %v9745_v0 = vmax.f32 %v6114_v2, %v6115_v6  ;;  %v5988_v62 = vmax.f32 %v5732_v42, %v5860_v45  ;;  %v5868_v46 = vmul.f32 0.2, %v5740_v56  ;;  %7602 = vmatprep.subr.bf16.mxu0 %v7601_v4  ;;  %5459 = vmatprep.subr.bf16.mxu1 %v7268_v33 }
 0xa07   : > { %v9747_v52 = vmax.f32 %v6135_v41, %v6136_v54  ;;  %v5989_v63 = vmax.f32 %v5733_v37, %v5861_v51  ;;  %v5869_v60 = vmul.f32 0.2, %v5741_v17  ;;  %7604 = vmatpush1.bf16.msra.mxu0 %v7603_v58 }
 0xa08   : > { %v6181_v59 = vmax.f32 %v6180_v34, %v5988_v62  ;;  %v5996_v5 = vmax.f32 %v5740_v56, %v5868_v46 }
 0xa09   : > { %v6572_v25 = vcombine.low %v9745_v0, %v9747_v52  ;;  %v6202_v16 = vmax.f32 %v6201_v11, %v5989_v63  ;;  %v5997_v24 = vmax.f32 %v5741_v17, %v5869_v60  ;;  %v5370_v28 = vpop.f32.mrb[120].mxu0  ;;  %5460 = vmatpush1.bf16.msra.mxu1 %v7267_v35 }
 0xa0a   : > { %v6182_v55 = vmax.f32 %v6181_v59, %v5996_v5  ;;  %v7607_v40 = vpack.c.bf16 %v5996_v5, %v5988_v62  ;;  %v5748_v23 = vadd.f32 %v9726_v32, %v5370_v28  ;;  %v5372_v19 = vpop.f32.mrb[121].mxu0 }
 0xa0b   : > { %v6203_v21 = vmax.f32 %v6202_v16, %v5997_v24  ;;  %v5749_v14 = vadd.f32 %v9729_v9, %v5372_v19  ;;  %v5374_v20 = vpop.f32.mrb[122].mxu0  ;;  %v7605_v30 = vpack.c.bf16 %v5997_v24, %v5989_v63 }
 0xa0c   : > { %v5876_v3 = vmul.f32 0.2, %v5748_v23  ;;  %v5756_v31 = vadd.f32 %v9726_v32, %v5374_v20  ;;  %v5376_v39 = vpop.f32.mrb[123].mxu0  ;;  %5462 = vmatmul.mubr.bf16.vlgmr.msra.gmra.mrb[112].mxu1 %v9528_v27 }
 0xa0d   : > { %v5877_v22 = vmul.f32 0.2, %v5749_v14  ;;  %v5757_v15 = vadd.f32 %v9729_v9, %v5376_v39  ;;  %5471 = vmatprep.mubr.bf16.mxu1 %v9540_v18  ;;  %7606 = vmatprep.subr.bf16.mxu0 %v7605_v30 }
 0xa0e   : > { %v6004_v33 = vmax.f32 %v5748_v23, %v5876_v3  ;;  %v5884_v2 = vmul.f32 0.2, %v5756_v31  ;;  %7608 = vmatpush1.bf16.msra.mxu0 %v7607_v40 }
 0xa0f   : > { %v6005_v34 = vmax.f32 %v5749_v14, %v5877_v22  ;;  %v5885_v58 = vmul.f32 0.2, %v5757_v15 }
 0xa10   : > { %v6183_v42 = vmax.f32 %v6182_v55, %v6004_v33  ;;  %v6012_v1 = vmax.f32 %v5756_v31, %v5884_v2 }
 0xa11   : > { %v6204_v41 = vmax.f32 %v6203_v21, %v6005_v34  ;;  %v6013_v11 = vmax.f32 %v5757_v15, %v5885_v58  ;;  %v5380_v37 = vpop.f32.mrb[124].mxu0 }
 0xa12   : > { %v6184_v43 = vmax.f32 %v6183_v42, %v6012_v1  ;;  %v7611_v4 = vpack.c.bf16 %v6012_v1, %v6004_v33  ;;  %v5764_v27 = vadd.f32 %v9726_v32, %v5380_v37  ;;  %v5382_v6 = vpop.f32.mrb[125].mxu0 }
 0xa13   : > { %v6205_v45 = vmax.f32 %v6204_v41, %v6013_v11  ;;  %v5765_v56 = vadd.f32 %v9729_v9, %v5382_v6  ;;  %v5384_v18 = vpop.f32.mrb[126].mxu0  ;;  %v7609_v36 = vpack.c.bf16 %v6013_v11, %v6005_v34 }
 0xa14   : > { %v5892_v54 = vmul.f32 0.2, %v5764_v27  ;;  %v5772_v51 = vadd.f32 %v9726_v32, %v5384_v18  ;;  %v5386_v17 = vpop.f32.mrb[127].mxu0  ;;  %5472 = vmatmul.mubr.bf16.gmra.mrb[116].mxu1 %v9538_v47 }
 0xa15   : > { %v5893_v35 = vmul.f32 0.2, %v5765_v56  ;;  %v5773_v62 = vadd.f32 %v9729_v9, %v5386_v17  ;;  %5481 = vmatprep.mubr.bf16.mxu1 %v9549_v57  ;;  %7610 = vmatprep.subr.bf16.mxu0 %v7609_v36 }
 0xa16   : > { %v6020_v46 = vmax.f32 %v5764_v27, %v5892_v54  ;;  %v5900_v63 = vmul.f32 0.2, %v5772_v51  ;;  %7612 = vmatpush1.bf16.msra.mxu0 %v7611_v4 }
 0xa17   : > { %v6021_v60 = vmax.f32 %v5765_v56, %v5893_v35  ;;  %v5901_v59 = vmul.f32 0.2, %v5773_v62 }
 0xa18   : > { %v6185_v5 = vmax.f32 %v6184_v43, %v6020_v46  ;;  %v6028_v16 = vmax.f32 %v5772_v51, %v5900_v63 }
 0xa19   : > { %v6206_v24 = vmax.f32 %v6205_v45, %v6021_v60  ;;  %v6029_v28 = vmax.f32 %v5773_v62, %v5901_v59  ;;  %v5390_v55 = vpop.f32.mrb[128].mxu0 }
 0xa1a   : > { %v6186_v40 = vmax.f32 %v6185_v5, %v6028_v16  ;;  %v7615_v23 = vpack.c.bf16 %v6028_v16, %v6020_v46  ;;  %v5780_v47 = vadd.f32 %v9726_v32, %v5390_v55  ;;  %v5392_v19 = vpop.f32.mrb[129].mxu0 }
 0xa1b   : > { %v6207_v21 = vmax.f32 %v6206_v24, %v6029_v28  ;;  %v5781_v14 = vadd.f32 %v9729_v9, %v5392_v19  ;;  %v5394_v57 = vpop.f32.mrb[130].mxu0  ;;  %v7613_v20 = vpack.c.bf16 %v6029_v28, %v6021_v60 }
 0xa1c   : > { %v5908_v30 = vmul.f32 0.2, %v5780_v47  ;;  %v5788_v3 = vadd.f32 %v9726_v32, %v5394_v57  ;;  %v5396_v31 = vpop.f32.mrb[131].mxu0  ;;  %5482 = vmatmul.mubr.bf16.gmra.mrb[120].mxu1 %v9547_v53 }
 0xa1d   : > { %v5909_v39 = vmul.f32 0.2, %v5781_v14  ;;  %v5789_v22 = vadd.f32 %v9729_v9, %v5396_v31  ;;  %5491 = vmatprep.mubr.bf16.mxu1 %v9558_v29  ;;  %7614 = vmatprep.subr.bf16.mxu0 %v7613_v20 }
 0xa1e   : > { %v6036_v15 = vmax.f32 %v5780_v47, %v5908_v30  ;;  %v5916_v33 = vmul.f32 0.2, %v5788_v3  ;;  %7616 = vmatpush1.bf16.msra.mxu0 %v7615_v23 }
 0xa1f   : > { %v6037_v2 = vmax.f32 %v5781_v14, %v5909_v39  ;;  %v5917_v34 = vmul.f32 0.2, %v5789_v22 }
 0xa20   : > { %v6187_v58 = vmax.f32 %v6186_v40, %v6036_v15  ;;  %v6044_v42 = vmax.f32 %v5788_v3, %v5916_v33 }
 0xa21   : > { %v6208_v1 = vmax.f32 %v6207_v21, %v6037_v2  ;;  %v6045_v41 = vmax.f32 %v5789_v22, %v5917_v34  ;;  %v5400_v11 = vpop.f32.mrb[132].mxu0 }
 0xa22   : > { %v6188_v37 = vmax.f32 %v6187_v58, %v6044_v42  ;;  %v7619_v43 = vpack.c.bf16 %v6044_v42, %v6036_v15  ;;  %v5796_v53 = vadd.f32 %v9726_v32, %v5400_v11  ;;  %v5402_v4 = vpop.f32.mrb[133].mxu0 }
 0xa23   : > { %v6209_v27 = vmax.f32 %v6208_v1, %v6045_v41  ;;  %v5797_v6 = vadd.f32 %v9729_v9, %v5402_v4  ;;  %v5404_v29 = vpop.f32.mrb[134].mxu0  ;;  %v7617_v45 = vpack.c.bf16 %v6045_v41, %v6037_v2 }
 0xa24   : > { %v5924_v56 = vmul.f32 0.2, %v5796_v53  ;;  %v5804_v18 = vadd.f32 %v9726_v32, %v5404_v29  ;;  %v5406_v36 = vpop.f32.mrb[135].mxu0  ;;  %5492 = vmatmul.mubr.bf16.gmra.mrb[124].mxu1 %v9556_v26 }
 0xa25   : > { %v5925_v54 = vmul.f32 0.2, %v5797_v6  ;;  %v5805_v51 = vadd.f32 %v9729_v9, %v5406_v36  ;;  %5501 = vmatprep.mubr.bf16.mxu1 %v9567_v49  ;;  %7618 = vmatprep.subr.bf16.mxu0 %v7617_v45 }
 0xa26   : > { %v6052_v17 = vmax.f32 %v5796_v53, %v5924_v56  ;;  %v5932_v35 = vmul.f32 0.2, %v5804_v18  ;;  %7620 = vmatpush1.bf16.msra.mxu0 %v7619_v43 }
 0xa27   : > { %v6053_v62 = vmax.f32 %v5797_v6, %v5925_v54  ;;  %v5933_v46 = vmul.f32 0.2, %v5805_v51 }
 0xa28   : > { %v6189_v63 = vmax.f32 %v6188_v37, %v6052_v17  ;;  %v6060_v60 = vmax.f32 %v5804_v18, %v5932_v35 }
 0xa29   : > { %v6210_v59 = vmax.f32 %v6209_v27, %v6053_v62  ;;  %v6061_v5 = vmax.f32 %v5805_v51, %v5933_v46  ;;  %v5410_v16 = vpop.f32.mrb[136].mxu0 }
 0xa2a   : > { %v6190_v24 = vmax.f32 %v6189_v63, %v6060_v60  ;;  %v7623_v28 = vpack.c.bf16 %v6060_v60, %v6052_v17  ;;  %v5812_v26 = vadd.f32 %v9726_v32, %v5410_v16  ;;  %v5412_v55 = vpop.f32.mrb[137].mxu0 }
 0xa2b   : > { %v6211_v40 = vmax.f32 %v6210_v59, %v6061_v5  ;;  %v5813_v23 = vadd.f32 %v9729_v9, %v5412_v55  ;;  %v5414_v49 = vpop.f32.mrb[138].mxu0  ;;  %v7621_v47 = vpack.c.bf16 %v6061_v5, %v6053_v62  ;;  %v5682_v55 = vsub.s32 2, %v9300_v12 }
 0xa2c   : > { %v5940_v19 = vmul.f32 0.2, %v5812_v26  ;;  %v5820_v21 = vadd.f32 %v9726_v32, %v5414_v49  ;;  %v5416_v14 = vpop.f32.mrb[139].mxu0  ;;  %5502 = vmatmul.mubr.bf16.gmra.mrb[128].mxu1 %v9565_v44 }
 0xa2d   : > { %v5941_v57 = vmul.f32 0.2, %v5813_v23  ;;  %v5821_v20 = vadd.f32 %v9729_v9, %v5416_v14  ;;  %5511 = vmatprep.mubr.bf16.mxu1 %v9578_v13  ;;  %7622 = vmatprep.subr.bf16.mxu0 %v7621_v47 }
 0xa2e   : > { %v6068_v30 = vmax.f32 %v5812_v26, %v5940_v19  ;;  %v5948_v3 = vmul.f32 0.2, %v5820_v21  ;;  %7624 = vmatpush1.bf16.msra.mxu0 %v7623_v28 }
 0xa2f   : > { %v6069_v31 = vmax.f32 %v5813_v23, %v5941_v57  ;;  %v5949_v39 = vmul.f32 0.2, %v5821_v20  ;;  %v9800_v23 = vld [vmem:[#allocation19] sm:$0xff] }
 0xa30   : > { %v6191_v22 = vmax.f32 %v6190_v24, %v6068_v30  ;;  %v6076_v15 = vmax.f32 %v5820_v21, %v5948_v3  ;;  %v9803_v49 = vrot.slane %v9800_v23, %v5682_v55 }
 0xa31   : > { %v6212_v33 = vmax.f32 %v6211_v40, %v6069_v31  ;;  %v6077_v2 = vmax.f32 %v5821_v20, %v5949_v39  ;;  %v5420_v34 = vpop.f32.mrb[140].mxu0  ;;  %v5686_v40 = vsub.s32 3, %v9300_v12 }
 0xa32   : > { %v6192_v58 = vmax.f32 %v6191_v22, %v6076_v15  ;;  %v7627_v42 = vpack.c.bf16 %v6076_v15, %v6068_v30  ;;  %v5828_v44 = vadd.f32 %v9726_v32, %v5420_v34  ;;  %v5422_v1 = vpop.f32.mrb[141].mxu0 }
 0xa33   : > { %v6213_v41 = vmax.f32 %v6212_v33, %v6077_v2  ;;  %v5829_v11 = vadd.f32 %v9729_v9, %v5422_v1  ;;  %v5424_v13 = vpop.f32.mrb[142].mxu0  ;;  %v7625_v37 = vpack.c.bf16 %v6077_v2, %v6069_v31 }
 0xa34   : > { %v5956_v43 = vmul.f32 0.2, %v5828_v44  ;;  %v5836_v53 = vadd.f32 %v9726_v32, %v5424_v13  ;;  %v5426_v4 = vpop.f32.mrb[143].mxu0  ;;  %5512 = vmatmul.mubr.bf16.gmra.mrb[132].mxu1 %v9576_v10 }
 0xa35   : > { %v5957_v27 = vmul.f32 0.2, %v5829_v11  ;;  %v5837_v6 = vadd.f32 %v9729_v9, %v5426_v4  ;;  %5521 = vmatprep.mubr.bf16.mxu1 %v9587_v61  ;;  %7626 = vmatprep.subr.bf16.mxu0 %v7625_v37 }
 0xa36   : > { %v6084_v29 = vmax.f32 %v5828_v44, %v5956_v43  ;;  %v5964_v45 = vmul.f32 0.2, %v5836_v53  ;;  %7628 = vmatpush1.bf16.msra.mxu0 %v7627_v42 }
 0xa37   : > { %v6085_v56 = vmax.f32 %v5829_v11, %v5957_v27  ;;  %v5965_v18 = vmul.f32 0.2, %v5837_v6 }
 0xa38   : > { %v6193_v36 = vmax.f32 %v6192_v58, %v6084_v29  ;;  %v6092_v54 = vmax.f32 %v5836_v53, %v5964_v45 }
 0xa39   : > { %v6214_v51 = vmax.f32 %v6213_v41, %v6085_v56  ;;  %v6093_v17 = vmax.f32 %v5837_v6, %v5965_v18 }
 0xa3a   : > { %v6194_v35 = vmax.f32 %v6193_v36, %v6092_v54  ;;  %v7631_v32 = vpack.c.bf16 %v6092_v54, %v6084_v29 }
 0xa3b   : > { %v6215_v62 = vmax.f32 %v6214_v51, %v6093_v17  ;;  %v7629_v46 = vpack.c.bf16 %v6093_v17, %v6085_v56 }
 0xa3c   : > { %v6195_v10 = vrot.slane %v6194_v35, 4  ;;  %5522 = vmatmul.mubr.bf16.gmra.mrb[136].mxu1 %v9585_v50 }
 0xa3d   : > { %v6216_v9 = vrot.slane %v6215_v62, 4  ;;  %5531 = vmatprep.mubr.bf16.mxu1 %v9596_v8  ;;  %7630 = vmatprep.subr.bf16.mxu0 %v7629_v46 }
 0xa3e   : > { %v6196_v61 = vmax.f32 %v6194_v35, %v6195_v10  ;;  %7632 = vmatpush1.bf16.msra.mxu0 %v7631_v32 }
 0xa3f   : > { %v6217_v63 = vmax.f32 %v6215_v62, %v6216_v9 }
 0xa40   : > { %v6197_v60 = vrot.slane %v6196_v61, 2 }
 0xa41   : > { %v6218_v59 = vrot.slane %v6217_v63, 2  ;;  %6471 = vmatmul.mubr.f32.vlgmr.msra.gmra.mrb[146].mxu0 %v8637_v48 }
 0xa42   : > { %v6198_v5 = vmax.f32 %v6196_v61, %v6197_v60 }
 0xa43   : > { %v6219_v16 = vmax.f32 %v6217_v63, %v6218_v59 }
 0xa44   : > { %v6199_v24 = vrot.slane %v6198_v5, 1  ;;  %5532 = vmatmul.mubr.bf16.gmra.mrb[140].mxu1 %v9594_v7  ;;  %v9806_v7 = vrot.slane %v9800_v23, %v5686_v40 }
 0xa45   : > { %v6220_v28 = vrot.slane %v6219_v16, 1  ;;  %6399 = vmatprep.mubr.f32.mxu1 %v8636_v38 }
 0xa46   : > { %v9792_v50 = vmax.f32 %v6198_v5, %v6199_v24 }
 0xa47   : > { %v9794_v26 = vmax.f32 %v6219_v16, %v6220_v28 }
 0xa49   : > { %v6574_v8 = vcombine.low %v9792_v50, %v9794_v26 }
 0xa9f   : > { %v5237_v47 = vpop.f32.mrb[80].mxu1 }
 0xaa0   : > { %v5714_v19 = vadd.f32 %v9803_v49, %v5237_v47  ;;  %v5239_v21 = vpop.f32.mrb[81].mxu1 }
 0xaa1   : > { %v5715_v14 = vadd.f32 %v9806_v7, %v5239_v21  ;;  %v5241_v57 = vpop.f32.mrb[82].mxu1 }
 0xaa2   : > { %v5842_v20 = vmul.f32 0.2, %v5714_v19  ;;  %v5722_v30 = vadd.f32 %v9803_v49, %v5241_v57  ;;  %v5243_v3 = vpop.f32.mrb[83].mxu1 }
 0xaa3   : > { %v5843_v31 = vmul.f32 0.2, %v5715_v14  ;;  %v5723_v39 = vadd.f32 %v9806_v7, %v5243_v3 }
 0xaa4   : > { %v5850_v22 = vmul.f32 0.2, %v5722_v30  ;;  %v5970_v33 = vmax.f32 %v5714_v19, %v5842_v20 }
 0xaa5   : > { %v5851_v15 = vmul.f32 0.2, %v5723_v39  ;;  %v5971_v34 = vmax.f32 %v5715_v14, %v5843_v31 }
 0xaa6   : > { %v5978_v2 = vmax.f32 %v5722_v30, %v5850_v22 }
 0xaa7   : > { %v5979_v58 = vmax.f32 %v5723_v39, %v5851_v15  ;;  %v5247_v42 = vpop.f32.mrb[84].mxu1 }
 0xaa8   : > { %v6138_v44 = vmax.f32 %v5970_v33, %v5978_v2  ;;  %v7571_v1 = vpack.c.bf16 %v5978_v2, %v5970_v33  ;;  %v5730_v41 = vadd.f32 %v9803_v49, %v5247_v42  ;;  %v5249_v11 = vpop.f32.mrb[85].mxu1 }
 0xaa9   : > { %v6159_v13 = vmax.f32 %v5971_v34, %v5979_v58  ;;  %v5731_v37 = vadd.f32 %v9806_v7, %v5249_v11  ;;  %v5251_v43 = vpop.f32.mrb[86].mxu1  ;;  %v7569_v53 = vpack.c.bf16 %v5979_v58, %v5971_v34 }
 0xaaa   : > { %v5858_v4 = vmul.f32 0.2, %v5730_v41  ;;  %v5738_v27 = vadd.f32 %v9803_v49, %v5251_v43  ;;  %v5253_v6 = vpop.f32.mrb[87].mxu1 }
 0xaab   : > { %v5859_v29 = vmul.f32 0.2, %v5731_v37  ;;  %v5739_v45 = vadd.f32 %v9806_v7, %v5253_v6  ;;  %7570 = vmatprep.subr.bf16.mxu1 %v7569_v53 }
 0xaac   : > { %v5986_v56 = vmax.f32 %v5730_v41, %v5858_v4  ;;  %v5866_v18 = vmul.f32 0.2, %v5738_v27  ;;  %7572 = vmatpush1.bf16.msra.mxu1 %v7571_v1 }
 0xaad   : > { %v5987_v36 = vmax.f32 %v5731_v37, %v5859_v29  ;;  %v5867_v54 = vmul.f32 0.2, %v5739_v45 }
 0xaae   : > { %v6139_v51 = vmax.f32 %v6138_v44, %v5986_v56  ;;  %v5994_v17 = vmax.f32 %v5738_v27, %v5866_v18 }
 0xaaf   : > { %v6160_v35 = vmax.f32 %v6159_v13, %v5987_v36  ;;  %v5995_v32 = vmax.f32 %v5739_v45, %v5867_v54  ;;  %v5257_v62 = vpop.f32.mrb[88].mxu1 }
 0xab0   : > { %v6140_v46 = vmax.f32 %v6139_v51, %v5994_v17  ;;  %v7575_v10 = vpack.c.bf16 %v5994_v17, %v5986_v56  ;;  %v5746_v9 = vadd.f32 %v9803_v49, %v5257_v62  ;;  %v5259_v61 = vpop.f32.mrb[89].mxu1 }
 0xab1   : > { %v6161_v63 = vmax.f32 %v6160_v35, %v5995_v32  ;;  %v5747_v60 = vadd.f32 %v9806_v7, %v5259_v61  ;;  %v5261_v59 = vpop.f32.mrb[90].mxu1  ;;  %v7573_v5 = vpack.c.bf16 %v5995_v32, %v5987_v36 }
 0xab2   : > { %v5874_v16 = vmul.f32 0.2, %v5746_v9  ;;  %v5754_v24 = vadd.f32 %v9803_v49, %v5261_v59  ;;  %v5263_v28 = vpop.f32.mrb[91].mxu1 }
 0xab3   : > { %v5875_v55 = vmul.f32 0.2, %v5747_v60  ;;  %v5755_v40 = vadd.f32 %v9806_v7, %v5263_v28  ;;  %7574 = vmatprep.subr.bf16.mxu1 %v7573_v5 }
 0xab4   : > { %v6002_v47 = vmax.f32 %v5746_v9, %v5874_v16  ;;  %v5882_v19 = vmul.f32 0.2, %v5754_v24  ;;  %7576 = vmatpush1.bf16.msra.mxu1 %v7575_v10 }
 0xab5   : > { %v6003_v21 = vmax.f32 %v5747_v60, %v5875_v55  ;;  %v5883_v14 = vmul.f32 0.2, %v5755_v40 }
 0xab6   : > { %v6141_v57 = vmax.f32 %v6140_v46, %v6002_v47  ;;  %v6010_v20 = vmax.f32 %v5754_v24, %v5882_v19 }
 0xab7   : > { %v6162_v30 = vmax.f32 %v6161_v63, %v6003_v21  ;;  %v6011_v3 = vmax.f32 %v5755_v40, %v5883_v14  ;;  %v5267_v31 = vpop.f32.mrb[92].mxu1 }
 0xab8   : > { %v6142_v39 = vmax.f32 %v6141_v57, %v6010_v20  ;;  %v7579_v22 = vpack.c.bf16 %v6010_v20, %v6002_v47  ;;  %v5762_v15 = vadd.f32 %v9803_v49, %v5267_v31  ;;  %v5269_v33 = vpop.f32.mrb[93].mxu1 }
 0xab9   : > { %v6163_v2 = vmax.f32 %v6162_v30, %v6011_v3  ;;  %v5763_v34 = vadd.f32 %v9806_v7, %v5269_v33  ;;  %v5271_v58 = vpop.f32.mrb[94].mxu1  ;;  %v7577_v42 = vpack.c.bf16 %v6011_v3, %v6003_v21 }
 0xaba   : > { %v5890_v44 = vmul.f32 0.2, %v5762_v15  ;;  %v5770_v1 = vadd.f32 %v9803_v49, %v5271_v58  ;;  %v5273_v41 = vpop.f32.mrb[95].mxu1 }
 0xabb   : > { %v5891_v11 = vmul.f32 0.2, %v5763_v34  ;;  %v5771_v13 = vadd.f32 %v9806_v7, %v5273_v41  ;;  %7578 = vmatprep.subr.bf16.mxu1 %v7577_v42 }
 0xabc   : > { %v6018_v37 = vmax.f32 %v5762_v15, %v5890_v44  ;;  %v5898_v43 = vmul.f32 0.2, %v5770_v1  ;;  %7580 = vmatpush1.bf16.msra.mxu1 %v7579_v22 }
 0xabd   : > { %v6019_v53 = vmax.f32 %v5763_v34, %v5891_v11  ;;  %v5899_v4 = vmul.f32 0.2, %v5771_v13 }
 0xabe   : > { %v6143_v27 = vmax.f32 %v6142_v39, %v6018_v37  ;;  %v6026_v6 = vmax.f32 %v5770_v1, %v5898_v43 }
 0xabf   : > { %v6164_v29 = vmax.f32 %v6163_v2, %v6019_v53  ;;  %v6027_v45 = vmax.f32 %v5771_v13, %v5899_v4  ;;  %v5277_v56 = vpop.f32.mrb[96].mxu1 }
 0xac0   : > { %v6144_v18 = vmax.f32 %v6143_v27, %v6026_v6  ;;  %v7583_v36 = vpack.c.bf16 %v6026_v6, %v6018_v37  ;;  %v5778_v54 = vadd.f32 %v9803_v49, %v5277_v56  ;;  %v5279_v51 = vpop.f32.mrb[97].mxu1 }
 0xac1   : > { %v6165_v17 = vmax.f32 %v6164_v29, %v6027_v45  ;;  %v5779_v35 = vadd.f32 %v9806_v7, %v5279_v51  ;;  %v5281_v32 = vpop.f32.mrb[98].mxu1  ;;  %v7581_v62 = vpack.c.bf16 %v6027_v45, %v6019_v53 }
 0xac2   : > { %v5906_v46 = vmul.f32 0.2, %v5778_v54  ;;  %v5786_v10 = vadd.f32 %v9803_v49, %v5281_v32  ;;  %v5283_v9 = vpop.f32.mrb[99].mxu1 }
 0xac3   : > { %v5907_v61 = vmul.f32 0.2, %v5779_v35  ;;  %v5787_v63 = vadd.f32 %v9806_v7, %v5283_v9  ;;  %7582 = vmatprep.subr.bf16.mxu1 %v7581_v62 }
 0xac4   : > { %v6034_v60 = vmax.f32 %v5778_v54, %v5906_v46  ;;  %v5914_v59 = vmul.f32 0.2, %v5786_v10  ;;  %7584 = vmatpush1.bf16.msra.mxu1 %v7583_v36 }
 0xac5   : > { %v6035_v5 = vmax.f32 %v5779_v35, %v5907_v61  ;;  %v5915_v16 = vmul.f32 0.2, %v5787_v63 }
 0xac6   : > { %v6145_v24 = vmax.f32 %v6144_v18, %v6034_v60  ;;  %v6042_v28 = vmax.f32 %v5786_v10, %v5914_v59 }
 0xac7   : > { %v6166_v55 = vmax.f32 %v6165_v17, %v6035_v5  ;;  %v6043_v40 = vmax.f32 %v5787_v63, %v5915_v16  ;;  %v5287_v47 = vpop.f32.mrb[100].mxu1 }
 0xac8   : > { %v6146_v19 = vmax.f32 %v6145_v24, %v6042_v28  ;;  %v7587_v21 = vpack.c.bf16 %v6042_v28, %v6034_v60  ;;  %v5794_v14 = vadd.f32 %v9803_v49, %v5287_v47  ;;  %v5289_v57 = vpop.f32.mrb[101].mxu1 }
 0xac9   : > { %v6167_v20 = vmax.f32 %v6166_v55, %v6043_v40  ;;  %v5795_v30 = vadd.f32 %v9806_v7, %v5289_v57  ;;  %v5291_v3 = vpop.f32.mrb[102].mxu1  ;;  %v7585_v31 = vpack.c.bf16 %v6043_v40, %v6035_v5  ;;  %v5698_v55 = vsub.s32 6, %v9300_v12 }
 0xaca   : > { %v5922_v39 = vmul.f32 0.2, %v5794_v14  ;;  %v5802_v22 = vadd.f32 %v9803_v49, %v5291_v3  ;;  %v5293_v15 = vpop.f32.mrb[103].mxu1 }
 0xacb   : > { %v5923_v33 = vmul.f32 0.2, %v5795_v30  ;;  %v5803_v2 = vadd.f32 %v9806_v7, %v5293_v15  ;;  %7586 = vmatprep.subr.bf16.mxu1 %v7585_v31  ;;  %v9845_v15 = vrot.slane %v9800_v23, %v5698_v55 }
 0xacc   : > { %v6050_v34 = vmax.f32 %v5794_v14, %v5922_v39  ;;  %v5930_v58 = vmul.f32 0.2, %v5802_v22  ;;  %7588 = vmatpush1.bf16.msra.mxu1 %v7587_v21  ;;  %v5702_v14 = vsub.s32 7, %v9300_v12 }
 0xacd   : > { %v6051_v42 = vmax.f32 %v5795_v30, %v5923_v33  ;;  %v5931_v44 = vmul.f32 0.2, %v5803_v2 }
 0xace   : > { %v6147_v1 = vmax.f32 %v6146_v19, %v6050_v34  ;;  %v6058_v41 = vmax.f32 %v5802_v22, %v5930_v58 }
 0xacf   : > { %v6168_v11 = vmax.f32 %v6167_v20, %v6051_v42  ;;  %v6059_v13 = vmax.f32 %v5803_v2, %v5931_v44  ;;  %v5297_v37 = vpop.f32.mrb[104].mxu1 }
 0xad0   : > { %v6148_v43 = vmax.f32 %v6147_v1, %v6058_v41  ;;  %v7591_v53 = vpack.c.bf16 %v6058_v41, %v6050_v34  ;;  %v5810_v4 = vadd.f32 %v9803_v49, %v5297_v37  ;;  %v5299_v27 = vpop.f32.mrb[105].mxu1  ;;  %v9848_v34 = vrot.slane %v9800_v23, %v5702_v14 }
 0xad1   : > { %v6169_v6 = vmax.f32 %v6168_v11, %v6059_v13  ;;  %v5811_v29 = vadd.f32 %v9806_v7, %v5299_v27  ;;  %v5301_v45 = vpop.f32.mrb[106].mxu1  ;;  %v7589_v56 = vpack.c.bf16 %v6059_v13, %v6051_v42 }
 0xad2   : > { %v5938_v18 = vmul.f32 0.2, %v5810_v4  ;;  %v5818_v36 = vadd.f32 %v9803_v49, %v5301_v45  ;;  %v5303_v54 = vpop.f32.mrb[107].mxu1  ;;  %v8638_v45 = vmov 1966171168  }
 0xad3   : > { %v5939_v51 = vmul.f32 0.2, %v5811_v29  ;;  %v5819_v17 = vadd.f32 %v9806_v7, %v5303_v54  ;;  %7590 = vmatprep.subr.bf16.mxu1 %v7589_v56  ;;  %v6577_v56 = vunpack.c.l.s4 %v8638_v45 }
 0xad4   : > { %v6066_v35 = vmax.f32 %v5810_v4, %v5938_v18  ;;  %v5946_v32 = vmul.f32 0.2, %v5818_v36  ;;  %7592 = vmatpush1.bf16.msra.mxu1 %v7591_v53 }
 0xad5   : > { %v6067_v62 = vmax.f32 %v5811_v29, %v5939_v51  ;;  %v5947_v46 = vmul.f32 0.2, %v5819_v17 }
 0xad6   : > { %v6149_v10 = vmax.f32 %v6148_v43, %v6066_v35  ;;  %v6074_v9 = vmax.f32 %v5818_v36, %v5946_v32  ;;  %v9836_v61 = vpop.f32.mrb[144].mxu0 }
 0xad7   : > { %v6170_v63 = vmax.f32 %v6169_v6, %v6067_v62  ;;  %v6075_v60 = vmax.f32 %v5819_v17, %v5947_v46  ;;  %v5307_v59 = vpop.f32.mrb[108].mxu1  ;;  %v6548_v50 = vmul.f32 0.0078125, %v9836_v61  ;;  %v6332_v26 = vpop.f32.mrb[145].mxu0 }
 0xad8   : > { %v6150_v5 = vmax.f32 %v6149_v10, %v6074_v9  ;;  %v7595_v16 = vpack.c.bf16 %v6074_v9, %v6066_v35  ;;  %v5826_v24 = vadd.f32 %v9803_v49, %v5307_v59  ;;  %v5309_v28 = vpop.f32.mrb[109].mxu1  ;;  %v6578_v9 = vunpack.c.0.s8 %v6577_v56 }
 0xad9   : > { %v6171_v40 = vmax.f32 %v6170_v63, %v6075_v60  ;;  %v5827_v47 = vadd.f32 %v9806_v7, %v5309_v28  ;;  %v5311_v19 = vpop.f32.mrb[110].mxu1  ;;  %v7593_v21 = vpack.c.bf16 %v6075_v60, %v6067_v62 }
 0xada   : > { %v5954_v57 = vmul.f32 0.2, %v5826_v24  ;;  %v5834_v20 = vadd.f32 %v9803_v49, %v5311_v19  ;;  %v5313_v30 = vpop.f32.mrb[111].mxu1 }
 0xadb   : > { %v5955_v3 = vmul.f32 0.2, %v5827_v47  ;;  %v5835_v31 = vadd.f32 %v9806_v7, %v5313_v30  ;;  %7594 = vmatprep.subr.bf16.mxu1 %v7593_v21 }
 0xadc   : > { %v6082_v39 = vmax.f32 %v5826_v24, %v5954_v57  ;;  %v5962_v22 = vmul.f32 0.2, %v5834_v20  ;;  %7596 = vmatpush1.bf16.msra.mxu1 %v7595_v16 }
 0xadd   : > { %v6083_v33 = vmax.f32 %v5827_v47, %v5955_v3  ;;  %v5963_v2 = vmul.f32 0.2, %v5835_v31 }
 0xade   : > { %v6151_v58 = vmax.f32 %v6150_v5, %v6082_v39  ;;  %v6090_v42 = vmax.f32 %v5834_v20, %v5962_v22 }
 0xadf   : > { %v6172_v44 = vmax.f32 %v6171_v40, %v6083_v33  ;;  %v6091_v49 = vmax.f32 %v5835_v31, %v5963_v2  ;;  %v5463_v1 = vpop.f32.mrb[112].mxu1  ;;  %v9861_v2 = vsub.s32 %v6578_v9, %v9300_v12 }
 0xae0   : > { %v6152_v41 = vmax.f32 %v6151_v58, %v6090_v42  ;;  %v7599_v11 = vpack.c.bf16 %v6090_v42, %v6082_v39  ;;  %v5718_v7 = vadd.f32 %v9845_v15, %v5463_v1  ;;  %v5465_v13 = vpop.f32.mrb[113].mxu1 }
 0xae1   : > { %v6173_v37 = vmax.f32 %v6172_v44, %v6091_v49  ;;  %v5719_v43 = vadd.f32 %v9848_v34, %v5465_v13  ;;  %v5467_v53 = vpop.f32.mrb[114].mxu1  ;;  %v7597_v4 = vpack.c.bf16 %v6091_v49, %v6083_v33 }
 0xae2   : > { %v6153_v27 = vrot.slane %v6152_v41, 4  ;;  %v5846_v6 = vmul.f32 0.2, %v5718_v7  ;;  %v5726_v23 = vadd.f32 %v9845_v15, %v5467_v53  ;;  %v5469_v29 = vpop.f32.mrb[115].mxu1  ;;  %v9867_v53 = vrot.slane %v6572_v25, %v9861_v2 }
 0xae3   : > { %v6174_v18 = vrot.slane %v6173_v37, 4  ;;  %v5847_v36 = vmul.f32 0.2, %v5719_v43  ;;  %v5727_v54 = vadd.f32 %v9848_v34, %v5469_v29  ;;  %7598 = vmatprep.subr.bf16.mxu1 %v7597_v4 }
 0xae4   : > { %v6154_v51 = vmax.f32 %v6152_v41, %v6153_v27  ;;  %v5854_v17 = vmul.f32 0.2, %v5726_v23  ;;  %7600 = vmatpush1.bf16.msra.mxu1 %v7599_v11  ;;  %v5974_v46 = vmax.f32 %v5718_v7, %v5846_v6 }
 0xae5   : > { %v6175_v35 = vmax.f32 %v6173_v37, %v6174_v18  ;;  %v5855_v32 = vmul.f32 0.2, %v5727_v54  ;;  %v5975_v60 = vmax.f32 %v5719_v43, %v5847_v36 }
 0xae6   : > { %v6155_v62 = vrot.slane %v6154_v51, 2  ;;  %v5982_v10 = vmax.f32 %v5726_v23, %v5854_v17 }
 0xae7   : > { %v6176_v63 = vrot.slane %v6175_v35, 2  ;;  %v5983_v59 = vmax.f32 %v5727_v54, %v5855_v32  ;;  %v5473_v5 = vpop.f32.mrb[116].mxu1  ;;  %6400 = vmatmul.mubr.f32.vlgmr.msra.gmra.mrb[144].mxu1 %v8637_v48 }
 0xae8   : > { %v6156_v16 = vmax.f32 %v6154_v51, %v6155_v62  ;;  %v6222_v24 = vmax.f32 %v5974_v46, %v5982_v10  ;;  %v7635_v28 = vpack.c.bf16 %v5982_v10, %v5974_v46  ;;  %v5734_v55 = vadd.f32 %v9845_v15, %v5473_v5  ;;  %v5475_v40 = vpop.f32.mrb[117].mxu1  ;;  %6541 = vmatprep.mubr.f32.mxu1 %v8636_v38 }
 0xae9   : > { %v6177_v47 = vmax.f32 %v6175_v35, %v6176_v63  ;;  %v6243_v19 = vmax.f32 %v5975_v60, %v5983_v59  ;;  %v5735_v21 = vadd.f32 %v9848_v34, %v5475_v40  ;;  %v5477_v14 = vpop.f32.mrb[118].mxu1  ;;  %v7633_v57 = vpack.c.bf16 %v5983_v59, %v5975_v60 }
 0xaea   : > { %v6157_v20 = vrot.slane %v6156_v16, 1  ;;  %v5862_v30 = vmul.f32 0.2, %v5734_v55  ;;  %v5742_v3 = vadd.f32 %v9845_v15, %v5477_v14  ;;  %v5479_v31 = vpop.f32.mrb[119].mxu1 }
 0xaeb   : > { %v6178_v39 = vrot.slane %v6177_v47, 1  ;;  %v5863_v22 = vmul.f32 0.2, %v5735_v21  ;;  %v5743_v33 = vadd.f32 %v9848_v34, %v5479_v31  ;;  %7634 = vmatprep.subr.bf16.mxu1 %v7633_v57 }
 0xaec   : > { %v6158_v38 = vmax.f32 %v6156_v16, %v6157_v20  ;;  %v5990_v58 = vmax.f32 %v5734_v55, %v5862_v30  ;;  %v5870_v42 = vmul.f32 0.2, %v5742_v3  ;;  %7636 = vmatpush1.bf16.msra.mxu1 %v7635_v28 }
 0xaed   : > { %v6179_v44 = vmax.f32 %v6177_v47, %v6178_v39  ;;  %v5991_v49 = vmax.f32 %v5735_v21, %v5863_v22  ;;  %v5871_v1 = vmul.f32 0.2, %v5743_v33 }
 0xaee   : > { %v6223_v41 = vmax.f32 %v6222_v24, %v5990_v58  ;;  %v5998_v11 = vmax.f32 %v5742_v3, %v5870_v42 }
 0xaef   : > { %v6573_v7 = vcombine.low %v6158_v38, %v6179_v44  ;;  %v6244_v13 = vmax.f32 %v6243_v19, %v5991_v49  ;;  %v5999_v37 = vmax.f32 %v5743_v33, %v5871_v1  ;;  %v5483_v43 = vpop.f32.mrb[120].mxu1 }
 0xaf0   : > { %v6224_v12 = vmax.f32 %v6223_v41, %v5998_v11  ;;  %v7639_v4 = vpack.c.bf16 %v5998_v11, %v5990_v58  ;;  %v5750_v27 = vadd.f32 %v9845_v15, %v5483_v43  ;;  %v5485_v6 = vpop.f32.mrb[121].mxu1 }
 0xaf1   : > { %v9871_v23 = vrot.slane %v6573_v7, %v9861_v2  ;;  %v6245_v29 = vmax.f32 %v6244_v13, %v5999_v37  ;;  %v5751_v45 = vadd.f32 %v9848_v34, %v5485_v6  ;;  %v5487_v56 = vpop.f32.mrb[122].mxu1  ;;  %v7637_v18 = vpack.c.bf16 %v5999_v37, %v5991_v49 }
 0xaf2   : > { %v5878_v36 = vmul.f32 0.2, %v5750_v27  ;;  %v5758_v54 = vadd.f32 %v9845_v15, %v5487_v56  ;;  %v5489_v51 = vpop.f32.mrb[123].mxu1 }
 0xaf3   : > { %v6604_v0 = vcombine.low %v9867_v53, %v9871_v23  ;;  %v5879_v52 = vmul.f32 0.2, %v5751_v45  ;;  %v5759_v25 = vadd.f32 %v9848_v34, %v5489_v51  ;;  %7638 = vmatprep.subr.bf16.mxu1 %v7637_v18 }
 0xaf4   : > { %v6006_v17 = vmax.f32 %v5750_v27, %v5878_v36  ;;  %v5886_v35 = vmul.f32 0.2, %v5758_v54  ;;  %7640 = vmatpush1.bf16.msra.mxu1 %v7639_v4 }
 0xaf5   : > { %v6007_v32 = vmax.f32 %v5751_v45, %v5879_v52  ;;  %v5887_v62 = vmul.f32 0.2, %v5759_v25 }
 0xaf6   : > { %v6225_v46 = vmax.f32 %v6224_v12, %v6006_v17  ;;  %v6014_v10 = vmax.f32 %v5758_v54, %v5886_v35 }
 0xaf7   : > { %v6246_v9 = vmax.f32 %v6245_v29, %v6007_v32  ;;  %v6015_v63 = vmax.f32 %v5759_v25, %v5887_v62  ;;  %v5493_v60 = vpop.f32.mrb[124].mxu1 }
 0xaf8   : > { %v6226_v59 = vmax.f32 %v6225_v46, %v6014_v10  ;;  %v7643_v5 = vpack.c.bf16 %v6014_v10, %v6006_v17  ;;  %v5766_v16 = vadd.f32 %v9845_v15, %v5493_v60  ;;  %v5495_v24 = vpop.f32.mrb[125].mxu1 }
 0xaf9   : > { %v6247_v28 = vmax.f32 %v6246_v9, %v6015_v63  ;;  %v5767_v55 = vadd.f32 %v9848_v34, %v5495_v24  ;;  %v5497_v40 = vpop.f32.mrb[126].mxu1  ;;  %v7641_v47 = vpack.c.bf16 %v6015_v63, %v6007_v32 }
 0xafa   : > { %v5894_v19 = vmul.f32 0.2, %v5766_v16  ;;  %v5774_v21 = vadd.f32 %v9845_v15, %v5497_v40  ;;  %v5499_v14 = vpop.f32.mrb[127].mxu1 }
 0xafb   : > { %v5895_v57 = vmul.f32 0.2, %v5767_v55  ;;  %v5775_v20 = vadd.f32 %v9848_v34, %v5499_v14  ;;  %7642 = vmatprep.subr.bf16.mxu1 %v7641_v47 }
 0xafc   : > { %v6022_v30 = vmax.f32 %v5766_v16, %v5894_v19  ;;  %v5902_v3 = vmul.f32 0.2, %v5774_v21  ;;  %7644 = vmatpush1.bf16.msra.mxu1 %v7643_v5 }
 0xafd   : > { %v6023_v31 = vmax.f32 %v5767_v55, %v5895_v57  ;;  %v5903_v39 = vmul.f32 0.2, %v5775_v20 }
 0xafe   : > { %v6227_v22 = vmax.f32 %v6226_v59, %v6022_v30  ;;  %v6030_v33 = vmax.f32 %v5774_v21, %v5902_v3 }
 0xaff   : > { %v6248_v38 = vmax.f32 %v6247_v28, %v6023_v31  ;;  %v6031_v58 = vmax.f32 %v5775_v20, %v5903_v39  ;;  %v5503_v42 = vpop.f32.mrb[128].mxu1 }
 0xb00   : > { %v6228_v44 = vmax.f32 %v6227_v22, %v6030_v33  ;;  %v7647_v49 = vpack.c.bf16 %v6030_v33, %v6022_v30  ;;  %v5782_v1 = vadd.f32 %v9845_v15, %v5503_v42  ;;  %v5505_v41 = vpop.f32.mrb[129].mxu1 }
 0xb01   : > { %v6249_v11 = vmax.f32 %v6248_v38, %v6031_v58  ;;  %v5783_v7 = vadd.f32 %v9848_v34, %v5505_v41  ;;  %v5507_v13 = vpop.f32.mrb[130].mxu1  ;;  %v7645_v37 = vpack.c.bf16 %v6031_v58, %v6023_v31 }
 0xb02   : > { %v5910_v43 = vmul.f32 0.2, %v5782_v1  ;;  %v5790_v12 = vadd.f32 %v9845_v15, %v5507_v13  ;;  %v5509_v4 = vpop.f32.mrb[131].mxu1 }
 0xb03   : > { %v5911_v27 = vmul.f32 0.2, %v5783_v7  ;;  %v5791_v6 = vadd.f32 %v9848_v34, %v5509_v4  ;;  %7646 = vmatprep.subr.bf16.mxu1 %v7645_v37 }
 0xb04   : > { %v6038_v29 = vmax.f32 %v5782_v1, %v5910_v43  ;;  %v5918_v45 = vmul.f32 0.2, %v5790_v12  ;;  %7648 = vmatpush1.bf16.msra.mxu1 %v7647_v49 }
 0xb05   : > { %v6039_v56 = vmax.f32 %v5783_v7, %v5911_v27  ;;  %v5919_v18 = vmul.f32 0.2, %v5791_v6 }
 0xb06   : > { %v6229_v36 = vmax.f32 %v6228_v44, %v6038_v29  ;;  %v6046_v54 = vmax.f32 %v5790_v12, %v5918_v45 }
 0xb07   : > { %v6250_v51 = vmax.f32 %v6249_v11, %v6039_v56  ;;  %v6047_v52 = vmax.f32 %v5791_v6, %v5919_v18  ;;  %v5513_v25 = vpop.f32.mrb[132].mxu1 }
 0xb08   : > { %v6230_v17 = vmax.f32 %v6229_v36, %v6046_v54  ;;  %v7651_v35 = vpack.c.bf16 %v6046_v54, %v6038_v29  ;;  %v5798_v32 = vadd.f32 %v9845_v15, %v5513_v25  ;;  %v5515_v62 = vpop.f32.mrb[133].mxu1 }
 0xb09   : > { %v6251_v46 = vmax.f32 %v6250_v51, %v6047_v52  ;;  %v5799_v10 = vadd.f32 %v9848_v34, %v5515_v62  ;;  %v5517_v9 = vpop.f32.mrb[134].mxu1  ;;  %v7649_v63 = vpack.c.bf16 %v6047_v52, %v6039_v56 }
 0xb0a   : > { %v5926_v60 = vmul.f32 0.2, %v5798_v32  ;;  %v5806_v59 = vadd.f32 %v9845_v15, %v5517_v9  ;;  %v5519_v5 = vpop.f32.mrb[135].mxu1 }
 0xb0b   : > { %v5927_v16 = vmul.f32 0.2, %v5799_v10  ;;  %v5807_v24 = vadd.f32 %v9848_v34, %v5519_v5  ;;  %7650 = vmatprep.subr.bf16.mxu1 %v7649_v63 }
 0xb0c   : > { %v6054_v28 = vmax.f32 %v5798_v32, %v5926_v60  ;;  %v5934_v55 = vmul.f32 0.2, %v5806_v59  ;;  %7652 = vmatpush1.bf16.msra.mxu1 %v7651_v35 }
 0xb0d   : > { %v6055_v40 = vmax.f32 %v5799_v10, %v5927_v16  ;;  %v5935_v47 = vmul.f32 0.2, %v5807_v24 }
 0xb0e   : > { %v6231_v19 = vmax.f32 %v6230_v17, %v6054_v28  ;;  %v6062_v21 = vmax.f32 %v5806_v59, %v5934_v55 }
 0xb0f   : > { %v6252_v14 = vmax.f32 %v6251_v46, %v6055_v40  ;;  %v6063_v57 = vmax.f32 %v5807_v24, %v5935_v47  ;;  %v5523_v20 = vpop.f32.mrb[136].mxu1 }
 0xb10   : > { %v6232_v30 = vmax.f32 %v6231_v19, %v6062_v21  ;;  %v7655_v3 = vpack.c.bf16 %v6062_v21, %v6054_v28  ;;  %v5814_v31 = vadd.f32 %v9845_v15, %v5523_v20  ;;  %v5525_v39 = vpop.f32.mrb[137].mxu1 }
 0xb11   : > { %v6253_v22 = vmax.f32 %v6252_v14, %v6063_v57  ;;  %v5815_v33 = vadd.f32 %v9848_v34, %v5525_v39  ;;  %v5527_v38 = vpop.f32.mrb[138].mxu1  ;;  %v7653_v58 = vpack.c.bf16 %v6063_v57, %v6055_v40 }
 0xb12   : > { %v5942_v42 = vmul.f32 0.2, %v5814_v31  ;;  %v5822_v44 = vadd.f32 %v9845_v15, %v5527_v38  ;;  %v5529_v49 = vpop.f32.mrb[139].mxu1 }
 0xb13   : > { %v5943_v1 = vmul.f32 0.2, %v5815_v33  ;;  %v5823_v41 = vadd.f32 %v9848_v34, %v5529_v49  ;;  %7654 = vmatprep.subr.bf16.mxu1 %v7653_v58 }
 0xb14   : > { %v6070_v11 = vmax.f32 %v5814_v31, %v5942_v42  ;;  %v5950_v7 = vmul.f32 0.2, %v5822_v44  ;;  %7656 = vmatpush1.bf16.msra.mxu1 %v7655_v3 }
 0xb15   : > { %v6071_v13 = vmax.f32 %v5815_v33, %v5943_v1  ;;  %v5951_v37 = vmul.f32 0.2, %v5823_v41  ;;  %v6596_v33 = vrot.slane %v6574_v8, %v9861_v2  ;;  %v6549_v8 = vmul.f32 0.0078125, %v6332_v26  ;;  %v6472_v1 = vpop.f32.mrb[146].mxu0 }
 0xb16   : > { %v6233_v43 = vmax.f32 %v6232_v30, %v6070_v11  ;;  %v6078_v12 = vmax.f32 %v5822_v44, %v5950_v7 }
 0xb17   : > { %v6254_v4 = vmax.f32 %v6253_v22, %v6071_v13  ;;  %v6079_v27 = vmax.f32 %v5823_v41, %v5951_v37  ;;  %v5533_v6 = vpop.f32.mrb[140].mxu1  ;;  %v6621_v49 = vcombine.low %v6548_v50, %v6549_v8  ;;  %v6552_v41 = vmul.f32 0.0078125, %v6472_v1 }
 0xb18   : > { %v6234_v29 = vmax.f32 %v6233_v43, %v6078_v12  ;;  %v7659_v45 = vpack.c.bf16 %v6078_v12, %v6070_v11  ;;  %v5830_v56 = vadd.f32 %v9845_v15, %v5533_v6  ;;  %v5535_v18 = vpop.f32.mrb[141].mxu1  ;;  %v6474_v11 = vpop.f32.mrb[147].mxu0 }
 0xb19   : > { %v6255_v36 = vmax.f32 %v6254_v4, %v6079_v27  ;;  %v5831_v54 = vadd.f32 %v9848_v34, %v5535_v18  ;;  %v5537_v51 = vpop.f32.mrb[142].mxu1  ;;  %v7657_v52 = vpack.c.bf16 %v6079_v27, %v6071_v13  ;;  %v6553_v53 = vmul.f32 0.0078125, %v6474_v11 }
 0xb1a   : > { %v5958_v25 = vmul.f32 0.2, %v5830_v56  ;;  %v5838_v17 = vadd.f32 %v9845_v15, %v5537_v51  ;;  %v5539_v35 = vpop.f32.mrb[143].mxu1  ;;  %v6631_v43 = vrot.slane %v6621_v49, %v9861_v2 }
 0xb1b   : > { %v5959_v32 = vmul.f32 0.2, %v5831_v54  ;;  %v5839_v62 = vadd.f32 %v9848_v34, %v5539_v35  ;;  %7658 = vmatprep.subr.bf16.mxu1 %v7657_v52  ;;  %v6623_v23 = vcombine.low %v6552_v41, %v6553_v53 }
 0xb1c   : > { %v6086_v46 = vmax.f32 %v5830_v56, %v5958_v25  ;;  %v5966_v10 = vmul.f32 0.2, %v5838_v17  ;;  %7660 = vmatpush1.bf16.msra.mxu1 %v7659_v45 }
 0xb1d   : > { %v6087_v9 = vmax.f32 %v5831_v54, %v5959_v32  ;;  %v5967_v63 = vmul.f32 0.2, %v5839_v62  ;;  %v6645_v56 = vrot.slane %v6623_v23, %v9861_v2 }
 0xb1e   : > { %v6235_v60 = vmax.f32 %v6234_v29, %v6086_v46  ;;  %v6094_v59 = vmax.f32 %v5838_v17, %v5966_v10 }
 0xb1f   : > { %v6256_v5 = vmax.f32 %v6255_v36, %v6087_v9  ;;  %v6095_v16 = vmax.f32 %v5839_v62, %v5967_v63 }
 0xb20   : > { %v6236_v24 = vmax.f32 %v6235_v60, %v6094_v59  ;;  %v7663_v28 = vpack.c.bf16 %v6094_v59, %v6086_v46 }
 0xb21   : > { %v6257_v55 = vmax.f32 %v6256_v5, %v6095_v16  ;;  %v7661_v40 = vpack.c.bf16 %v6095_v16, %v6087_v9 }
 0xb22   : > { %v6237_v47 = vrot.slane %v6236_v24, 4 }
 0xb23   : > { %v6258_v15 = vrot.slane %v6257_v55, 4  ;;  %7662 = vmatprep.subr.bf16.mxu1 %v7661_v40 }
 0xb24   : > { %v6238_v19 = vmax.f32 %v6236_v24, %v6237_v47  ;;  %7664 = vmatpush1.bf16.msra.mxu1 %v7663_v28 }
 0xb25   : > { %v6259_v34 = vmax.f32 %v6257_v55, %v6258_v15 }
 0xb26   : > { %v6239_v21 = vrot.slane %v6238_v19, 2 }
 0xb27   : > { %v6260_v14 = vrot.slane %v6259_v34, 2  ;;  %6542 = vmatmul.mubr.f32.vlgmr.msra.gmra.mrb[146].mxu1 %v8637_v48  ;;  %v6612_v48 = vrot.slane %v6604_v0, %v9861_v2 }
 0xb28   : > { %v6240_v57 = vmax.f32 %v6238_v19, %v6239_v21 }
 0xb29   : > { %v6261_v20 = vmax.f32 %v6259_v34, %v6260_v14 }
 0xb2a   : > { %v6241_v30 = vrot.slane %v6240_v57, 1 }
 0xb2b   : > { %v6262_v3 = vrot.slane %v6261_v20, 1 }
 0xb2c   : > { %v6242_v31 = vmax.f32 %v6240_v57, %v6241_v30 }
 0xb2d   : > { %v6263_v39 = vmax.f32 %v6261_v20, %v6262_v3 }
 0xb2f   : > { %v6575_v22 = vcombine.low %v6242_v31, %v6263_v39 }
 0xb31   : > { %v6603_v38 = vrot.slane %v6575_v22, %v9861_v2 }
 0xb33   : > { %v6605_v58 = vcombine.low %v6596_v33, %v6603_v38 }
 0xb35   : > { %v6619_v42 = vrot.slane %v6605_v58, %v9861_v2 }
 0xb37   : > { %v6620_v44 = vcombine.low %v6612_v48, %v6619_v42 }
 0xb39   : > { %6672 = vst [vmem:[%s9913_s26] sm:$0xff] %v6620_v44 }
 0xbba   : > { %v6401_v0 = vpop.f32.mrb[144].mxu1 }
 0xbbb   : > { %v6550_v7 = vmul.f32 0.0078125, %v6401_v0  ;;  %v6403_v13 = vpop.f32.mrb[145].mxu1 }
 0xbbc   : > { %v6551_v37 = vmul.f32 0.0078125, %v6403_v13 }
 0xbbe   : > { %v6622_v12 = vcombine.low %v6550_v7, %v6551_v37 }
 0xbc0   : > { %v6638_v4 = vrot.slane %v6622_v12, %v9861_v2 }
 0xbc2   : > { %v6653_v27 = vcombine.low %v6631_v43, %v6638_v4 }
 0xbc4   : > { %v6661_v51 = vrot.slane %v6653_v27, %v9861_v2 }
 0xbfa   : > { %v6543_v61 = vpop.f32.mrb[146].mxu1 }
 0xbfb   : > { %v6554_v6 = vmul.f32 0.0078125, %v6543_v61  ;;  %v6545_v29 = vpop.f32.mrb[147].mxu1 }
 0xbfc   : > { %v6555_v45 = vmul.f32 0.0078125, %v6545_v29 }
 0xbfe   : > { %v6624_v18 = vcombine.low %v6554_v6, %v6555_v45 }
 0xc00   : > { %v6652_v36 = vrot.slane %v6624_v18, %v9861_v2 }
 0xc02   : > { %v6654_v54 = vcombine.low %v6645_v56, %v6652_v36 }
 0xc04   : > { %v6668_v52 = vrot.slane %v6654_v54, %v9861_v2 }
 0xc06   : > { %v6669_v25 = vcombine.low %v6661_v51, %v6668_v52 }
 0xc08   : > { %6673 = vst [vmem:[%s9913_s26 + $0x8] sm:$0xff] %v6669_v25 }
 0xc09 PF: > { %s9972_s16 = sld [smem:[#allocation28_spill]] }
 0xc0f   : > { %s31_s29 = sadd.s32 1, %s9972_s16  }
 0xc10   : > { %p28_p7 = scmp.ge.s32.totalorder %s31_s29, 4  }
 0xc12   :  { %30 = sbr.rel (!%p28_p7) target bundleno = 12 (0xc), region = 158 }
 0xc19   :  { %6693 = vsyncpa [#allocation3], 1 }
 0xc1a   :  { %6695 = vsyncpa [#allocation3 + $0x1], 1 }
 0xc1b   :  { %6696 = vsyncpa [#allocation5], 1 }
 0xc1c   :  { %6697 = vsyncpa [#allocation8], 1 }
 0xc1d   :  { %6698 = vsyncpa [#allocation11], 1 }
 0xc1e   :  { %6699 = vsyncpa [#allocation14], 1 }
 0xc1f   :  { %6700 = vsyncpa [#allocation17], 1 }
 0xc20   :  { %6701 = vsyncpa [#allocation20], 1 }

</bundles_post_ra>
